<compile_context>
chip_gen: v7x
topology: tpu7x:2x2x1
jax: 0.10.0
libtpu: 0.0.40
codegen_flags: <defaults>
</compile_context>

<pallas_src>
import jax
import jax.numpy as jnp
from jax.experimental import pallas as pl
from jax.experimental.pallas import tpu as pltpu

# -----------------------------------------------------------------------------
# Small deterministic config (mirrors EALSTMConfig fields used by the forward)
# -----------------------------------------------------------------------------
BATCH = 4
INPUT_LEN = 8          # past sequence length
OUTPUT_LEN = 4         # forecast horizon (= future-branch sequence length)
INPUT_SIZE = 5         # past dynamic feature count
FUTURE_INPUT_SIZE = 3  # future forcing feature count
STATIC_SIZE = 6
HIDDEN_SIZE = 32
NUM_LAYERS = 2
DTYPE = jnp.float32
# fusion_method = "concat" (BiEALSTM default)


# -----------------------------------------------------------------------------
# Fused kernel: both EA-LSTM branch recurrences + fusion projection, one launch
# -----------------------------------------------------------------------------
def make_bi_kernel(l_past: int, l_future: int, t_past: int, t_future: int,
                   batch: int):
    n_p = 6 + (2 if l_past > 1 else 0)
    n_f = 6 + (2 if l_future > 1 else 0)
    B = batch

    def kernel(*refs):
        s_ref = refs[0]
        past_refs = refs[1:1 + n_p]
        fut_refs = refs[1 + n_p:1 + n_p + n_f]
        w1p_ref, w1f_ref, b1_ref, w2_ref, b2_ref, out_ref = refs[1 + n_p + n_f:]

        s = s_ref[...]  # [B, S] static catchment attributes (shared)

        def cell(g_pre, i_t, c_prev):
            # gate order matches PyTorch chunk(3, 1): f | o | g
            f_t = jax.nn.sigmoid(g_pre[0])
            o_t = jax.nn.sigmoid(g_pre[1])
            g_t = jnp.tanh(g_pre[2])
            c_new = f_t * c_prev + i_t * g_t
            h_new = o_t * jnp.tanh(c_new)
            return h_new, c_new

        def prep(brefs, L):
            """Time-invariant per-branch work, hoisted out of the recurrence."""
            x_ref, wsh_ref, bsh_ref, wd0_ref, bd0_ref, whid_ref = brefs[:6]
            H = wsh_ref.shape[-1]

            # entity-aware input gate: depends only on static features & layer
            i_gate = [
                jax.nn.sigmoid(
                    jnp.dot(s, wsh_ref[l], preferred_element_type=jnp.float32)
                    + bsh_ref[l])
                for l in range(L)
            ]

            # hoisted layer-0 input projection over the whole sequence,
            # one matmul per gate: [T*B, D] @ [D, H] -> [T*B, H]
            x_flat = x_ref[...]
            gx = [
                jnp.dot(x_flat, wd0_ref[g], preferred_element_type=jnp.float32)
                + bd0_ref[g]
                for g in range(3)
            ]

            # per-layer, per-gate recurrent weights (lane-0 aligned [H, H])
            whid = [[whid_ref[l * 3 + g] for g in range(3)] for l in range(L)]

            wdU, bdU = [], []
            if L > 1:
                wdU_ref, bdU_ref = brefs[6], brefs[7]
                wdU = [[wdU_ref[l * 3 + g] for g in range(3)]
                       for l in range(L - 1)]
                # hoist bias broadcast out of the (unrolled) time loop
                bdU = [[jnp.broadcast_to(bdU_ref[l * 3 + g], (B, H))
                        for g in range(3)] for l in range(L - 1)]

            hs = [jnp.zeros((B, H), jnp.float32) for _ in range(L)]
            cs = [jnp.zeros((B, H), jnp.float32) for _ in range(L)]
            return dict(L=L, i=i_gate, gx=gx, whid=whid, wdU=wdU, bdU=bdU,
                        hs=hs, cs=cs)

        def step(br, t):
            """One recurrence step (t is a static Python int)."""
            L = br["L"]
            hs, cs = br["hs"], br["cs"]
            row = slice(t * B, (t + 1) * B)  # static, sublane-aligned slice

            # layer 0: input projection already hoisted; only h @ W_hid stays
            # on the per-step critical chain.
            g_pre = [
                br["gx"][g][row]
                + jnp.dot(hs[0], br["whid"][0][g],
                          preferred_element_type=jnp.float32)
                for g in range(3)
            ]
            h_new, c_new = cell(g_pre, br["i"][0], cs[0])
            new_hs, new_cs = [h_new], [c_new]

            # upper layers: hidden->input projection folded into wdU; the
            # hs[l] @ whid dot is kept separate so it can issue off-chain.
            for l in range(1, L):
                g_pre = [
                    jnp.dot(new_hs[l - 1], br["wdU"][l - 1][g],
                            preferred_element_type=jnp.float32)
                    + br["bdU"][l - 1][g]
                    + jnp.dot(hs[l], br["whid"][l][g],
                              preferred_element_type=jnp.float32)
                    for g in range(3)
                ]
                h_l, c_l = cell(g_pre, br["i"][l], cs[l])
                new_hs.append(h_l)
                new_cs.append(c_l)

            br["hs"], br["cs"] = new_hs, new_cs

        past = prep(past_refs, l_past)
        fut = prep(fut_refs, l_future)

        # Interleave the two independent recurrences: one step of each branch
        # per iteration (static Python loop == full unroll, same straight-line
        # code as fori_loop(unroll=True), but lets us interleave + tail).
        for t in range(max(t_past, t_future)):
            if t < t_past:
                step(past, t)
            if t < t_future:
                step(fut, t)

        # relu(concat(ph, fh)) == concat(relu(ph), relu(fh)); W1 is row-split
        # so no lane-concat relayout is needed before the fusion matmuls.
        ph = jnp.maximum(past["hs"][-1], 0.0)
        fh = jnp.maximum(fut["hs"][-1], 0.0)
        hidden = jnp.maximum(
            jnp.dot(ph, w1p_ref[...], preferred_element_type=jnp.float32)
            + jnp.dot(fh, w1f_ref[...], preferred_element_type=jnp.float32)
            + b1_ref[...], 0.0)
        out_ref[...] = (
            jnp.dot(hidden, w2_ref[...], preferred_element_type=jnp.float32)
            + b2_ref[...])

    return kernel


# -----------------------------------------------------------------------------
# Host wrapper: per-gate weight split, projection folding, batch padding,
# single pallas_call
# -----------------------------------------------------------------------------
def bi_ealstm_forward(x, static, future, past_p, future_p, fusion_p):
    B = x.shape[0]
    B_pad = ((B + 7) // 8) * 8  # fill sublanes

    def pad_b(a):
        if B_pad == B:
            return a
        return jnp.pad(a, [(0, B_pad - B)] + [(0, 0)] * (a.ndim - 1))

    Tp, Dp = x.shape[1], x.shape[2]
    Tf, Df = future.shape[1], future.shape[2]

    # time-major, batch-padded, flattened to [T*B_pad, D] (so the kernel's
    # hoisted input projection is one plain 2-D matmul, no in-kernel reshape)
    xp = jnp.transpose(pad_b(x), (1, 0, 2)).reshape(Tp * B_pad, Dp)
    xf = jnp.transpose(pad_b(future), (1, 0, 2)).reshape(Tf * B_pad, Df)
    s = pad_b(static)  # [B_pad, S]

    def split_gates(w, lead, k, H):
        # [..., k, 3H] -> [... * 3, k, H] with gate order f | o | g preserved
        return jnp.transpose(w.reshape(lead, k, 3, H),
                             (0, 2, 1, 3)).reshape(lead * 3, k, H)

    def prep_branch(x_flat, p):
        L, _, H = p["W_sh"].shape
        D = p["W_dyn"].shape[1]
        # layer-0 per-gate dynamic weights/biases: [3, D, H] / [3, 1, H]
        wd0 = split_gates(p["W_dyn"][:1], 1, D, H).reshape(3, D, H)
        bd0 = split_gates(p["b_dyn"][:1], 1, 1, H).reshape(3, 1, H)
        # per-layer per-gate hidden weights: [L*3, H, H]
        whid = split_gates(p["W_hid"], L, H, H)
        args = [x_flat, p["W_sh"], p["b_sh"], wd0, bd0, whid]
        if L > 1:
            # fold hidden->input projection into upper-layer gate weights
            wdU = jnp.einsum("lhd,ldg->lhg", p["W_proj"], p["W_dyn"][1:])
            bdU = (jnp.einsum("lod,ldg->log", p["b_proj"], p["W_dyn"][1:])
                   + p["b_dyn"][1:])
            args += [split_gates(wdU, L - 1, H, H),
                     split_gates(bdU, L - 1, 1, H)]
        return L, args

    Lp, past_args = prep_branch(xp, past_p)
    Lf, fut_args = prep_branch(xf, future_p)

    args = ([s] + past_args + fut_args +
            [fusion_p["W1_past"], fusion_p["W1_future"],
             fusion_p["b1"], fusion_p["W2"], fusion_p["b2"]])

    O = fusion_p["b2"].shape[-1]
    vmem = pl.BlockSpec(memory_space=pltpu.MemorySpace.VMEM)
    out = pl.pallas_call(
        make_bi_kernel(Lp, Lf, Tp, Tf, B_pad),
        out_shape=jax.ShapeDtypeStruct((B_pad, O), DTYPE),
        in_specs=[vmem] * len(args),
        out_specs=vmem,
        # real footprint is ~100 KB; 2 MiB documents the budget with headroom
        compiler_params=pltpu.CompilerParams(vmem_limit_bytes=2 * 1024 * 1024),
    )(*args)

    return out[:B, :, None]  # [B, output_len, 1]


# -----------------------------------------------------------------------------
# Deterministic parameter initialization (follows EALSTMCell __init__ layout:
# weight_sh, fused dynamic_to_gates [D,3H], hidden_to_gates [H,3H], and the
# forget-gate bias constant 1.0)
# -----------------------------------------------------------------------------
def _linear_init(key, fan_in, shape):
    bound = 1.0 / (float(fan_in) ** 0.5)
    return jax.random.uniform(key, shape, DTYPE, -bound, bound)


def init_branch_params(key, L, D, S, H):
    ks = jax.random.split(key, 7)
    G = 3 * H
    b_dyn = _linear_init(ks[3], D, (L, 1, G))
    b_dyn = b_dyn.at[:, :, :H].set(1.0)  # nn.init.constant_(bias[:hidden], 1.0)
    p = {
        "W_sh": _linear_init(ks[0], S, (L, S, H)),
        "b_sh": _linear_init(ks[1], S, (L, 1, H)),
        "W_dyn": _linear_init(ks[2], D, (L, D, G)),
        "b_dyn": b_dyn,
        "W_hid": _linear_init(ks[4], H, (L, H, G)),
    }
    if L > 1:
        p["W_proj"] = _linear_init(ks[5], H, (L - 1, H, D))
        p["b_proj"] = _linear_init(ks[6], H, (L - 1, 1, D))
    return p


def init_fusion_params(key, H, O):
    ks = jax.random.split(key, 5)
    C = 2 * H  # combined size for "concat" fusion
    return {
        "W1_past": _linear_init(ks[0], C, (H, C)),
        "W1_future": _linear_init(ks[1], C, (H, C)),
        "b1": _linear_init(ks[2], C, (1, C)),
        "W2": _linear_init(ks[3], C, (C, O)),
        "b2": _linear_init(ks[4], C, (1, O)),
    }


# -----------------------------------------------------------------------------
# Pure-JAX reference (mirrors the PyTorch EALSTMCell/BiEALSTM forward exactly,
# no weight folding / gate splitting) for verification
# -----------------------------------------------------------------------------
def _ref_branch(x, static, p):
    B, T, _ = x.shape
    L, _, H = p["W_sh"].shape
    h = [jnp.zeros((B, H), DTYPE) for _ in range(L)]
    c = [jnp.zeros((B, H), DTYPE) for _ in range(L)]
    for t in range(T):
        layer_input = x[:, t, :]
        for l in range(L):
            if l > 0:
                layer_input = h[l - 1] @ p["W_proj"][l - 1] + p["b_proj"][l - 1]
            i_t = jax.nn.sigmoid(static @ p["W_sh"][l] + p["b_sh"][l])
            gates = (layer_input @ p["W_dyn"][l] + p["b_dyn"][l]
                     + h[l] @ p["W_hid"][l])
            f_t = jax.nn.sigmoid(gates[:, :H])
            o_t = jax.nn.sigmoid(gates[:, H:2 * H])
            g_t = jnp.tanh(gates[:, 2 * H:])
            c[l] = f_t * c[l] + i_t * g_t
            h[l] = o_t * jnp.tanh(c[l])
    return h[-1]


def _ref_bi_ealstm(x, static, future, past_p, future_p, fusion_p):
    past_h = _ref_branch(x, static, past_p)
    fut_h = _ref_branch(future, static, future_p)
    combined = jnp.maximum(jnp.concatenate([past_h, fut_h], axis=1), 0.0)
    W1 = jnp.concatenate([fusion_p["W1_past"], fusion_p["W1_future"]], axis=0)
    hidden = jnp.maximum(combined @ W1 + fusion_p["b1"], 0.0)
    out = hidden @ fusion_p["W2"] + fusion_p["b2"]
    return out[:, :, None]


# -----------------------------------------------------------------------------
if __name__ == "__main__":
    key = jax.random.PRNGKey(0)
    kx, ks, kf, kp1, kp2, kp3 = jax.random.split(key, 6)

    x = jax.random.normal(kx, (BATCH, INPUT_LEN, INPUT_SIZE), DTYPE)
    static = jax.random.normal(ks, (BATCH, STATIC_SIZE), DTYPE)
    future = jax.random.normal(kf, (BATCH, OUTPUT_LEN, FUTURE_INPUT_SIZE), DTYPE)

    past_params = init_branch_params(kp1, NUM_LAYERS, INPUT_SIZE, STATIC_SIZE, HIDDEN_SIZE)
    future_params = init_branch_params(kp2, NUM_LAYERS, FUTURE_INPUT_SIZE, STATIC_SIZE, HIDDEN_SIZE)
    fusion_params = init_fusion_params(kp3, HIDDEN_SIZE, OUTPUT_LEN)

    out = bi_ealstm_forward(x, static, future, past_params, future_params, fusion_params)
    out = jax.block_until_ready(out)

    ref = _ref_bi_ealstm(x, static, future, past_params, future_params, fusion_params)
    assert out.shape == (BATCH, OUTPUT_LEN, 1), out.shape
    assert jnp.allclose(out, ref, atol=1e-4, rtol=1e-4), float(jnp.max(jnp.abs(out - ref)))
    print("KERNEL_OK")
</pallas_src>

<mosaic_0001>
module attributes {stable_mosaic.version = 11 : i64} {
  func.func @kernel(%arg0: memref<8x6xf32, #tpu.memory_space<vmem>>, %arg1: memref<64x5xf32, #tpu.memory_space<vmem>>, %arg2: memref<2x6x32xf32, #tpu.memory_space<vmem>>, %arg3: memref<2x1x32xf32, #tpu.memory_space<vmem>>, %arg4: memref<3x5x32xf32, #tpu.memory_space<vmem>>, %arg5: memref<3x1x32xf32, #tpu.memory_space<vmem>>, %arg6: memref<6x32x32xf32, #tpu.memory_space<vmem>>, %arg7: memref<3x32x32xf32, #tpu.memory_space<vmem>>, %arg8: memref<3x1x32xf32, #tpu.memory_space<vmem>>, %arg9: memref<32x3xf32, #tpu.memory_space<vmem>>, %arg10: memref<2x6x32xf32, #tpu.memory_space<vmem>>, %arg11: memref<2x1x32xf32, #tpu.memory_space<vmem>>, %arg12: memref<3x3x32xf32, #tpu.memory_space<vmem>>, %arg13: memref<3x1x32xf32, #tpu.memory_space<vmem>>, %arg14: memref<6x32x32xf32, #tpu.memory_space<vmem>>, %arg15: memref<3x32x32xf32, #tpu.memory_space<vmem>>, %arg16: memref<3x1x32xf32, #tpu.memory_space<vmem>>, %arg17: memref<32x64xf32, #tpu.memory_space<vmem>>, %arg18: memref<32x64xf32, #tpu.memory_space<vmem>>, %arg19: memref<1x64xf32, #tpu.memory_space<vmem>>, %arg20: memref<64x4xf32, #tpu.memory_space<vmem>>, %arg21: memref<1x4xf32, #tpu.memory_space<vmem>>, %arg22: memref<8x4xf32, #tpu.memory_space<vmem>>) attributes {dimension_semantics = [], scalar_prefetch = 0 : i64, scratch_operands = 0 : i64, tpu.core_type = #tpu.core_type<tc>} {
    %c0 = arith.constant 0 : index
    %c0_0 = arith.constant 0 : index
    %0 = vector.load %arg0[%c0, %c0_0] : memref<8x6xf32, #tpu.memory_space<vmem>>, vector<8x6xf32>
    %c0_1 = arith.constant 0 : index
    %c0_2 = arith.constant 0 : index
    %c0_3 = arith.constant 0 : index
    %1 = vector.load %arg2[%c0_1, %c0_2, %c0_3] : memref<2x6x32xf32, #tpu.memory_space<vmem>>, vector<1x6x32xf32>
    %2 = vector.shape_cast %1 : vector<1x6x32xf32> to vector<6x32xf32>
    %cst = arith.constant dense<0.000000e+00> : vector<8x32xf32>
    %3 = tpu.matmul %0, %2, %cst {dimension_numbers = #tpu.dot_dimension_numbers<[1], [0], [0], [1], [0, 0, 1, 1], [], []>} : vector<8x6xf32>, vector<6x32xf32>, vector<8x32xf32> -> vector<8x32xf32>
    %c0_4 = arith.constant 0 : index
    %c0_5 = arith.constant 0 : index
    %c0_6 = arith.constant 0 : index
    %4 = vector.load %arg3[%c0_4, %c0_5, %c0_6] : memref<2x1x32xf32, #tpu.memory_space<vmem>>, vector<1x1x32xf32>
    %5 = vector.shape_cast %4 : vector<1x1x32xf32> to vector<1x32xf32>
    %6 = vector.broadcast %5 : vector<1x32xf32> to vector<8x32xf32>
    %7 = arith.addf %3, %6 : vector<8x32xf32>
    %8 = arith.negf %7 : vector<8x32xf32>
    %9 = math.exp %8 : vector<8x32xf32>
    %cst_7 = arith.constant 1.000000e+00 : f32
    %10 = vector.broadcast %cst_7 : f32 to vector<8x32xf32>
    %11 = arith.addf %10, %9 : vector<8x32xf32>
    %12 = arith.divf %10, %11 : vector<8x32xf32>
    %c1 = arith.constant 1 : index
    %c0_8 = arith.constant 0 : index
    %c0_9 = arith.constant 0 : index
    %13 = vector.load %arg2[%c1, %c0_8, %c0_9] : memref<2x6x32xf32, #tpu.memory_space<vmem>>, vector<1x6x32xf32>
    %14 = vector.shape_cast %13 : vector<1x6x32xf32> to vector<6x32xf32>
    %cst_10 = arith.constant dense<0.000000e+00> : vector<8x32xf32>
    %15 = tpu.matmul %0, %14, %cst_10 {dimension_numbers = #tpu.dot_dimension_numbers<[1], [0], [0], [1], [0, 0, 1, 1], [], []>} : vector<8x6xf32>, vector<6x32xf32>, vector<8x32xf32> -> vector<8x32xf32>
    %c1_11 = arith.constant 1 : index
    %c0_12 = arith.constant 0 : index
    %c0_13 = arith.constant 0 : index
    %16 = vector.load %arg3[%c1_11, %c0_12, %c0_13] : memref<2x1x32xf32, #tpu.memory_space<vmem>>, vector<1x1x32xf32>
    %17 = vector.shape_cast %16 : vector<1x1x32xf32> to vector<1x32xf32>
    %18 = vector.broadcast %17 : vector<1x32xf32> to vector<8x32xf32>
    %19 = arith.addf %15, %18 : vector<8x32xf32>
    %20 = arith.negf %19 : vector<8x32xf32>
    %21 = math.exp %20 : vector<8x32xf32>
    %cst_14 = arith.constant 1.000000e+00 : f32
    %22 = vector.broadcast %cst_14 : f32 to vector<8x32xf32>
    %23 = arith.addf %22, %21 : vector<8x32xf32>
    %24 = arith.divf %22, %23 : vector<8x32xf32>
    %c0_15 = arith.constant 0 : index
    %c0_16 = arith.constant 0 : index
    %25 = vector.load %arg1[%c0_15, %c0_16] : memref<64x5xf32, #tpu.memory_space<vmem>>, vector<64x5xf32>
    %c0_17 = arith.constant 0 : index
    %c0_18 = arith.constant 0 : index
    %c0_19 = arith.constant 0 : index
    %26 = vector.load %arg4[%c0_17, %c0_18, %c0_19] : memref<3x5x32xf32, #tpu.memory_space<vmem>>, vector<1x5x32xf32>
    %27 = vector.shape_cast %26 : vector<1x5x32xf32> to vector<5x32xf32>
    %cst_20 = arith.constant dense<0.000000e+00> : vector<64x32xf32>
    %28 = tpu.matmul %25, %27, %cst_20 {dimension_numbers = #tpu.dot_dimension_numbers<[1], [0], [0], [1], [0, 0, 1, 1], [], []>} : vector<64x5xf32>, vector<5x32xf32>, vector<64x32xf32> -> vector<64x32xf32>
    %c0_21 = arith.constant 0 : index
    %c0_22 = arith.constant 0 : index
    %c0_23 = arith.constant 0 : index
    %29 = vector.load %arg5[%c0_21, %c0_22, %c0_23] : memref<3x1x32xf32, #tpu.memory_space<vmem>>, vector<1x1x32xf32>
    %30 = vector.shape_cast %29 : vector<1x1x32xf32> to vector<1x32xf32>
    %31 = vector.broadcast %30 : vector<1x32xf32> to vector<64x32xf32>
    %32 = arith.addf %28, %31 : vector<64x32xf32>
    %c1_24 = arith.constant 1 : index
    %c0_25 = arith.constant 0 : index
    %c0_26 = arith.constant 0 : index
    %33 = vector.load %arg4[%c1_24, %c0_25, %c0_26] : memref<3x5x32xf32, #tpu.memory_space<vmem>>, vector<1x5x32xf32>
    %34 = vector.shape_cast %33 : vector<1x5x32xf32> to vector<5x32xf32>
    %cst_27 = arith.constant dense<0.000000e+00> : vector<64x32xf32>
    %35 = tpu.matmul %25, %34, %cst_27 {dimension_numbers = #tpu.dot_dimension_numbers<[1], [0], [0], [1], [0, 0, 1, 1], [], []>} : vector<64x5xf32>, vector<5x32xf32>, vector<64x32xf32> -> vector<64x32xf32>
    %c1_28 = arith.constant 1 : index
    %c0_29 = arith.constant 0 : index
    %c0_30 = arith.constant 0 : index
    %36 = vector.load %arg5[%c1_28, %c0_29, %c0_30] : memref<3x1x32xf32, #tpu.memory_space<vmem>>, vector<1x1x32xf32>
    %37 = vector.shape_cast %36 : vector<1x1x32xf32> to vector<1x32xf32>
    %38 = vector.broadcast %37 : vector<1x32xf32> to vector<64x32xf32>
    %39 = arith.addf %35, %38 : vector<64x32xf32>
    %c2 = arith.constant 2 : index
    %c0_31 = arith.constant 0 : index
    %c0_32 = arith.constant 0 : index
    %40 = vector.load %arg4[%c2, %c0_31, %c0_32] : memref<3x5x32xf32, #tpu.memory_space<vmem>>, vector<1x5x32xf32>
    %41 = vector.shape_cast %40 : vector<1x5x32xf32> to vector<5x32xf32>
    %cst_33 = arith.constant dense<0.000000e+00> : vector<64x32xf32>
    %42 = tpu.matmul %25, %41, %cst_33 {dimension_numbers = #tpu.dot_dimension_numbers<[1], [0], [0], [1], [0, 0, 1, 1], [], []>} : vector<64x5xf32>, vector<5x32xf32>, vector<64x32xf32> -> vector<64x32xf32>
    %c2_34 = arith.constant 2 : index
    %c0_35 = arith.constant 0 : index
    %c0_36 = arith.constant 0 : index
    %43 = vector.load %arg5[%c2_34, %c0_35, %c0_36] : memref<3x1x32xf32, #tpu.memory_space<vmem>>, vector<1x1x32xf32>
    %44 = vector.shape_cast %43 : vector<1x1x32xf32> to vector<1x32xf32>
    %45 = vector.broadcast %44 : vector<1x32xf32> to vector<64x32xf32>
    %46 = arith.addf %42, %45 : vector<64x32xf32>
    %c0_37 = arith.constant 0 : index
    %c0_38 = arith.constant 0 : index
    %c0_39 = arith.constant 0 : index
    %47 = vector.load %arg6[%c0_37, %c0_38, %c0_39] : memref<6x32x32xf32, #tpu.memory_space<vmem>>, vector<1x32x32xf32>
    %48 = vector.shape_cast %47 : vector<1x32x32xf32> to vector<32x32xf32>
    %c1_40 = arith.constant 1 : index
    %c0_41 = arith.constant 0 : index
    %c0_42 = arith.constant 0 : index
    %49 = vector.load %arg6[%c1_40, %c0_41, %c0_42] : memref<6x32x32xf32, #tpu.memory_space<vmem>>, vector<1x32x32xf32>
    %50 = vector.shape_cast %49 : vector<1x32x32xf32> to vector<32x32xf32>
    %c2_43 = arith.constant 2 : index
    %c0_44 = arith.constant 0 : index
    %c0_45 = arith.constant 0 : index
    %51 = vector.load %arg6[%c2_43, %c0_44, %c0_45] : memref<6x32x32xf32, #tpu.memory_space<vmem>>, vector<1x32x32xf32>
    %52 = vector.shape_cast %51 : vector<1x32x32xf32> to vector<32x32xf32>
    %c3 = arith.constant 3 : index
    %c0_46 = arith.constant 0 : index
    %c0_47 = arith.constant 0 : index
    %53 = vector.load %arg6[%c3, %c0_46, %c0_47] : memref<6x32x32xf32, #tpu.memory_space<vmem>>, vector<1x32x32xf32>
    %54 = vector.shape_cast %53 : vector<1x32x32xf32> to vector<32x32xf32>
    %c4 = arith.constant 4 : index
    %c0_48 = arith.constant 0 : index
    %c0_49 = arith.constant 0 : index
    %55 = vector.load %arg6[%c4, %c0_48, %c0_49] : memref<6x32x32xf32, #tpu.memory_space<vmem>>, vector<1x32x32xf32>
    %56 = vector.shape_cast %55 : vector<1x32x32xf32> to vector<32x32xf32>
    %c5 = arith.constant 5 : index
    %c0_50 = arith.constant 0 : index
    %c0_51 = arith.constant 0 : index
    %57 = vector.load %arg6[%c5, %c0_50, %c0_51] : memref<6x32x32xf32, #tpu.memory_space<vmem>>, vector<1x32x32xf32>
    %58 = vector.shape_cast %57 : vector<1x32x32xf32> to vector<32x32xf32>
    %c0_52 = arith.constant 0 : index
    %c0_53 = arith.constant 0 : index
    %c0_54 = arith.constant 0 : index
    %59 = vector.load %arg7[%c0_52, %c0_53, %c0_54] : memref<3x32x32xf32, #tpu.memory_space<vmem>>, vector<1x32x32xf32>
    %60 = vector.shape_cast %59 : vector<1x32x32xf32> to vector<32x32xf32>
    %c1_55 = arith.constant 1 : index
    %c0_56 = arith.constant 0 : index
    %c0_57 = arith.constant 0 : index
    %61 = vector.load %arg7[%c1_55, %c0_56, %c0_57] : memref<3x32x32xf32, #tpu.memory_space<vmem>>, vector<1x32x32xf32>
    %62 = vector.shape_cast %61 : vector<1x32x32xf32> to vector<32x32xf32>
    %c2_58 = arith.constant 2 : index
    %c0_59 = arith.constant 0 : index
    %c0_60 = arith.constant 0 : index
    %63 = vector.load %arg7[%c2_58, %c0_59, %c0_60] : memref<3x32x32xf32, #tpu.memory_space<vmem>>, vector<1x32x32xf32>
    %64 = vector.shape_cast %63 : vector<1x32x32xf32> to vector<32x32xf32>
    %c0_61 = arith.constant 0 : index
    %c0_62 = arith.constant 0 : index
    %c0_63 = arith.constant 0 : index
    %65 = vector.load %arg8[%c0_61, %c0_62, %c0_63] : memref<3x1x32xf32, #tpu.memory_space<vmem>>, vector<1x1x32xf32>
    %66 = vector.shape_cast %65 : vector<1x1x32xf32> to vector<1x32xf32>
    %67 = vector.shape_cast %66 : vector<1x32xf32> to vector<1x32xf32>
    %68 = vector.broadcast %67 : vector<1x32xf32> to vector<8x32xf32>
    %c1_64 = arith.constant 1 : index
    %c0_65 = arith.constant 0 : index
    %c0_66 = arith.constant 0 : index
    %69 = vector.load %arg8[%c1_64, %c0_65, %c0_66] : memref<3x1x32xf32, #tpu.memory_space<vmem>>, vector<1x1x32xf32>
    %70 = vector.shape_cast %69 : vector<1x1x32xf32> to vector<1x32xf32>
    %71 = vector.shape_cast %70 : vector<1x32xf32> to vector<1x32xf32>
    %72 = vector.broadcast %71 : vector<1x32xf32> to vector<8x32xf32>
    %c2_67 = arith.constant 2 : index
    %c0_68 = arith.constant 0 : index
    %c0_69 = arith.constant 0 : index
    %73 = vector.load %arg8[%c2_67, %c0_68, %c0_69] : memref<3x1x32xf32, #tpu.memory_space<vmem>>, vector<1x1x32xf32>
    %74 = vector.shape_cast %73 : vector<1x1x32xf32> to vector<1x32xf32>
    %75 = vector.shape_cast %74 : vector<1x32xf32> to vector<1x32xf32>
    %76 = vector.broadcast %75 : vector<1x32xf32> to vector<8x32xf32>
    %cst_70 = arith.constant 0.000000e+00 : f32
    %77 = vector.broadcast %cst_70 : f32 to vector<8x32xf32>
    %cst_71 = arith.constant 0.000000e+00 : f32
    %78 = vector.broadcast %cst_71 : f32 to vector<8x32xf32>
    %cst_72 = arith.constant 0.000000e+00 : f32
    %79 = vector.broadcast %cst_72 : f32 to vector<8x32xf32>
    %cst_73 = arith.constant 0.000000e+00 : f32
    %80 = vector.broadcast %cst_73 : f32 to vector<8x32xf32>
    %c0_74 = arith.constant 0 : index
    %c0_75 = arith.constant 0 : index
    %c0_76 = arith.constant 0 : index
    %81 = vector.load %arg10[%c0_74, %c0_75, %c0_76] : memref<2x6x32xf32, #tpu.memory_space<vmem>>, vector<1x6x32xf32>
    %82 = vector.shape_cast %81 : vector<1x6x32xf32> to vector<6x32xf32>
    %cst_77 = arith.constant dense<0.000000e+00> : vector<8x32xf32>
    %83 = tpu.matmul %0, %82, %cst_77 {dimension_numbers = #tpu.dot_dimension_numbers<[1], [0], [0], [1], [0, 0, 1, 1], [], []>} : vector<8x6xf32>, vector<6x32xf32>, vector<8x32xf32> -> vector<8x32xf32>
    %c0_78 = arith.constant 0 : index
    %c0_79 = arith.constant 0 : index
    %c0_80 = arith.constant 0 : index
    %84 = vector.load %arg11[%c0_78, %c0_79, %c0_80] : memref<2x1x32xf32, #tpu.memory_space<vmem>>, vector<1x1x32xf32>
    %85 = vector.shape_cast %84 : vector<1x1x32xf32> to vector<1x32xf32>
    %86 = vector.broadcast %85 : vector<1x32xf32> to vector<8x32xf32>
    %87 = arith.addf %83, %86 : vector<8x32xf32>
    %88 = arith.negf %87 : vector<8x32xf32>
    %89 = math.exp %88 : vector<8x32xf32>
    %cst_81 = arith.constant 1.000000e+00 : f32
    %90 = vector.broadcast %cst_81 : f32 to vector<8x32xf32>
    %91 = arith.addf %90, %89 : vector<8x32xf32>
    %92 = arith.divf %90, %91 : vector<8x32xf32>
    %c1_82 = arith.constant 1 : index
    %c0_83 = arith.constant 0 : index
    %c0_84 = arith.constant 0 : index
    %93 = vector.load %arg10[%c1_82, %c0_83, %c0_84] : memref<2x6x32xf32, #tpu.memory_space<vmem>>, vector<1x6x32xf32>
    %94 = vector.shape_cast %93 : vector<1x6x32xf32> to vector<6x32xf32>
    %cst_85 = arith.constant dense<0.000000e+00> : vector<8x32xf32>
    %95 = tpu.matmul %0, %94, %cst_85 {dimension_numbers = #tpu.dot_dimension_numbers<[1], [0], [0], [1], [0, 0, 1, 1], [], []>} : vector<8x6xf32>, vector<6x32xf32>, vector<8x32xf32> -> vector<8x32xf32>
    %c1_86 = arith.constant 1 : index
    %c0_87 = arith.constant 0 : index
    %c0_88 = arith.constant 0 : index
    %96 = vector.load %arg11[%c1_86, %c0_87, %c0_88] : memref<2x1x32xf32, #tpu.memory_space<vmem>>, vector<1x1x32xf32>
    %97 = vector.shape_cast %96 : vector<1x1x32xf32> to vector<1x32xf32>
    %98 = vector.broadcast %97 : vector<1x32xf32> to vector<8x32xf32>
    %99 = arith.addf %95, %98 : vector<8x32xf32>
    %100 = arith.negf %99 : vector<8x32xf32>
    %101 = math.exp %100 : vector<8x32xf32>
    %cst_89 = arith.constant 1.000000e+00 : f32
    %102 = vector.broadcast %cst_89 : f32 to vector<8x32xf32>
    %103 = arith.addf %102, %101 : vector<8x32xf32>
    %104 = arith.divf %102, %103 : vector<8x32xf32>
    %c0_90 = arith.constant 0 : index
    %c0_91 = arith.constant 0 : index
    %105 = vector.load %arg9[%c0_90, %c0_91] : memref<32x3xf32, #tpu.memory_space<vmem>>, vector<32x3xf32>
    %c0_92 = arith.constant 0 : index
    %c0_93 = arith.constant 0 : index
    %c0_94 = arith.constant 0 : index
    %106 = vector.load %arg12[%c0_92, %c0_93, %c0_94] : memref<3x3x32xf32, #tpu.memory_space<vmem>>, vector<1x3x32xf32>
    %107 = vector.shape_cast %106 : vector<1x3x32xf32> to vector<3x32xf32>
    %cst_95 = arith.constant dense<0.000000e+00> : vector<32x32xf32>
    %108 = tpu.matmul %105, %107, %cst_95 {dimension_numbers = #tpu.dot_dimension_numbers<[1], [0], [0], [1], [0, 0, 1, 1], [], []>} : vector<32x3xf32>, vector<3x32xf32>, vector<32x32xf32> -> vector<32x32xf32>
    %c0_96 = arith.constant 0 : index
    %c0_97 = arith.constant 0 : index
    %c0_98 = arith.constant 0 : index
    %109 = vector.load %arg13[%c0_96, %c0_97, %c0_98] : memref<3x1x32xf32, #tpu.memory_space<vmem>>, vector<1x1x32xf32>
    %110 = vector.shape_cast %109 : vector<1x1x32xf32> to vector<1x32xf32>
    %111 = vector.broadcast %110 : vector<1x32xf32> to vector<32x32xf32>
    %112 = arith.addf %108, %111 : vector<32x32xf32>
    %c1_99 = arith.constant 1 : index
    %c0_100 = arith.constant 0 : index
    %c0_101 = arith.constant 0 : index
    %113 = vector.load %arg12[%c1_99, %c0_100, %c0_101] : memref<3x3x32xf32, #tpu.memory_space<vmem>>, vector<1x3x32xf32>
    %114 = vector.shape_cast %113 : vector<1x3x32xf32> to vector<3x32xf32>
    %cst_102 = arith.constant dense<0.000000e+00> : vector<32x32xf32>
    %115 = tpu.matmul %105, %114, %cst_102 {dimension_numbers = #tpu.dot_dimension_numbers<[1], [0], [0], [1], [0, 0, 1, 1], [], []>} : vector<32x3xf32>, vector<3x32xf32>, vector<32x32xf32> -> vector<32x32xf32>
    %c1_103 = arith.constant 1 : index
    %c0_104 = arith.constant 0 : index
    %c0_105 = arith.constant 0 : index
    %116 = vector.load %arg13[%c1_103, %c0_104, %c0_105] : memref<3x1x32xf32, #tpu.memory_space<vmem>>, vector<1x1x32xf32>
    %117 = vector.shape_cast %116 : vector<1x1x32xf32> to vector<1x32xf32>
    %118 = vector.broadcast %117 : vector<1x32xf32> to vector<32x32xf32>
    %119 = arith.addf %115, %118 : vector<32x32xf32>
    %c2_106 = arith.constant 2 : index
    %c0_107 = arith.constant 0 : index
    %c0_108 = arith.constant 0 : index
    %120 = vector.load %arg12[%c2_106, %c0_107, %c0_108] : memref<3x3x32xf32, #tpu.memory_space<vmem>>, vector<1x3x32xf32>
    %121 = vector.shape_cast %120 : vector<1x3x32xf32> to vector<3x32xf32>
    %cst_109 = arith.constant dense<0.000000e+00> : vector<32x32xf32>
    %122 = tpu.matmul %105, %121, %cst_109 {dimension_numbers = #tpu.dot_dimension_numbers<[1], [0], [0], [1], [0, 0, 1, 1], [], []>} : vector<32x3xf32>, vector<3x32xf32>, vector<32x32xf32> -> vector<32x32xf32>
    %c2_110 = arith.constant 2 : index
    %c0_111 = arith.constant 0 : index
    %c0_112 = arith.constant 0 : index
    %123 = vector.load %arg13[%c2_110, %c0_111, %c0_112] : memref<3x1x32xf32, #tpu.memory_space<vmem>>, vector<1x1x32xf32>
    %124 = vector.shape_cast %123 : vector<1x1x32xf32> to vector<1x32xf32>
    %125 = vector.broadcast %124 : vector<1x32xf32> to vector<32x32xf32>
    %126 = arith.addf %122, %125 : vector<32x32xf32>
    %c0_113 = arith.constant 0 : index
    %c0_114 = arith.constant 0 : index
    %c0_115 = arith.constant 0 : index
    %127 = vector.load %arg14[%c0_113, %c0_114, %c0_115] : memref<6x32x32xf32, #tpu.memory_space<vmem>>, vector<1x32x32xf32>
    %128 = vector.shape_cast %127 : vector<1x32x32xf32> to vector<32x32xf32>
    %c1_116 = arith.constant 1 : index
    %c0_117 = arith.constant 0 : index
    %c0_118 = arith.constant 0 : index
    %129 = vector.load %arg14[%c1_116, %c0_117, %c0_118] : memref<6x32x32xf32, #tpu.memory_space<vmem>>, vector<1x32x32xf32>
    %130 = vector.shape_cast %129 : vector<1x32x32xf32> to vector<32x32xf32>
    %c2_119 = arith.constant 2 : index
    %c0_120 = arith.constant 0 : index
    %c0_121 = arith.constant 0 : index
    %131 = vector.load %arg14[%c2_119, %c0_120, %c0_121] : memref<6x32x32xf32, #tpu.memory_space<vmem>>, vector<1x32x32xf32>
    %132 = vector.shape_cast %131 : vector<1x32x32xf32> to vector<32x32xf32>
    %c3_122 = arith.constant 3 : index
    %c0_123 = arith.constant 0 : index
    %c0_124 = arith.constant 0 : index
    %133 = vector.load %arg14[%c3_122, %c0_123, %c0_124] : memref<6x32x32xf32, #tpu.memory_space<vmem>>, vector<1x32x32xf32>
    %134 = vector.shape_cast %133 : vector<1x32x32xf32> to vector<32x32xf32>
    %c4_125 = arith.constant 4 : index
    %c0_126 = arith.constant 0 : index
    %c0_127 = arith.constant 0 : index
    %135 = vector.load %arg14[%c4_125, %c0_126, %c0_127] : memref<6x32x32xf32, #tpu.memory_space<vmem>>, vector<1x32x32xf32>
    %136 = vector.shape_cast %135 : vector<1x32x32xf32> to vector<32x32xf32>
    %c5_128 = arith.constant 5 : index
    %c0_129 = arith.constant 0 : index
    %c0_130 = arith.constant 0 : index
    %137 = vector.load %arg14[%c5_128, %c0_129, %c0_130] : memref<6x32x32xf32, #tpu.memory_space<vmem>>, vector<1x32x32xf32>
    %138 = vector.shape_cast %137 : vector<1x32x32xf32> to vector<32x32xf32>
    %c0_131 = arith.constant 0 : index
    %c0_132 = arith.constant 0 : index
    %c0_133 = arith.constant 0 : index
    %139 = vector.load %arg15[%c0_131, %c0_132, %c0_133] : memref<3x32x32xf32, #tpu.memory_space<vmem>>, vector<1x32x32xf32>
    %140 = vector.shape_cast %139 : vector<1x32x32xf32> to vector<32x32xf32>
    %c1_134 = arith.constant 1 : index
    %c0_135 = arith.constant 0 : index
    %c0_136 = arith.constant 0 : index
    %141 = vector.load %arg15[%c1_134, %c0_135, %c0_136] : memref<3x32x32xf32, #tpu.memory_space<vmem>>, vector<1x32x32xf32>
    %142 = vector.shape_cast %141 : vector<1x32x32xf32> to vector<32x32xf32>
    %c2_137 = arith.constant 2 : index
    %c0_138 = arith.constant 0 : index
    %c0_139 = arith.constant 0 : index
    %143 = vector.load %arg15[%c2_137, %c0_138, %c0_139] : memref<3x32x32xf32, #tpu.memory_space<vmem>>, vector<1x32x32xf32>
    %144 = vector.shape_cast %143 : vector<1x32x32xf32> to vector<32x32xf32>
    %c0_140 = arith.constant 0 : index
    %c0_141 = arith.constant 0 : index
    %c0_142 = arith.constant 0 : index
    %145 = vector.load %arg16[%c0_140, %c0_141, %c0_142] : memref<3x1x32xf32, #tpu.memory_space<vmem>>, vector<1x1x32xf32>
    %146 = vector.shape_cast %145 : vector<1x1x32xf32> to vector<1x32xf32>
    %147 = vector.shape_cast %146 : vector<1x32xf32> to vector<1x32xf32>
    %148 = vector.broadcast %147 : vector<1x32xf32> to vector<8x32xf32>
    %c1_143 = arith.constant 1 : index
    %c0_144 = arith.constant 0 : index
    %c0_145 = arith.constant 0 : index
    %149 = vector.load %arg16[%c1_143, %c0_144, %c0_145] : memref<3x1x32xf32, #tpu.memory_space<vmem>>, vector<1x1x32xf32>
    %150 = vector.shape_cast %149 : vector<1x1x32xf32> to vector<1x32xf32>
    %151 = vector.shape_cast %150 : vector<1x32xf32> to vector<1x32xf32>
    %152 = vector.broadcast %151 : vector<1x32xf32> to vector<8x32xf32>
    %c2_146 = arith.constant 2 : index
    %c0_147 = arith.constant 0 : index
    %c0_148 = arith.constant 0 : index
    %153 = vector.load %arg16[%c2_146, %c0_147, %c0_148] : memref<3x1x32xf32, #tpu.memory_space<vmem>>, vector<1x1x32xf32>
    %154 = vector.shape_cast %153 : vector<1x1x32xf32> to vector<1x32xf32>
    %155 = vector.shape_cast %154 : vector<1x32xf32> to vector<1x32xf32>
    %156 = vector.broadcast %155 : vector<1x32xf32> to vector<8x32xf32>
    %cst_149 = arith.constant 0.000000e+00 : f32
    %157 = vector.broadcast %cst_149 : f32 to vector<8x32xf32>
    %cst_150 = arith.constant 0.000000e+00 : f32
    %158 = vector.broadcast %cst_150 : f32 to vector<8x32xf32>
    %cst_151 = arith.constant 0.000000e+00 : f32
    %159 = vector.broadcast %cst_151 : f32 to vector<8x32xf32>
    %cst_152 = arith.constant 0.000000e+00 : f32
    %160 = vector.broadcast %cst_152 : f32 to vector<8x32xf32>
    %161 = vector.extract_strided_slice %32 {offsets = [0, 0], sizes = [8, 32], strides = [1, 1]} : vector<64x32xf32> to vector<8x32xf32>
    %cst_153 = arith.constant dense<0.000000e+00> : vector<8x32xf32>
    %162 = tpu.matmul %77, %48, %cst_153 {dimension_numbers = #tpu.dot_dimension_numbers<[1], [0], [0], [1], [0, 0, 1, 1], [], []>} : vector<8x32xf32>, vector<32x32xf32>, vector<8x32xf32> -> vector<8x32xf32>
    %163 = arith.addf %161, %162 : vector<8x32xf32>
    %164 = vector.extract_strided_slice %39 {offsets = [0, 0], sizes = [8, 32], strides = [1, 1]} : vector<64x32xf32> to vector<8x32xf32>
    %cst_154 = arith.constant dense<0.000000e+00> : vector<8x32xf32>
    %165 = tpu.matmul %77, %50, %cst_154 {dimension_numbers = #tpu.dot_dimension_numbers<[1], [0], [0], [1], [0, 0, 1, 1], [], []>} : vector<8x32xf32>, vector<32x32xf32>, vector<8x32xf32> -> vector<8x32xf32>
    %166 = arith.addf %164, %165 : vector<8x32xf32>
    %167 = vector.extract_strided_slice %46 {offsets = [0, 0], sizes = [8, 32], strides = [1, 1]} : vector<64x32xf32> to vector<8x32xf32>
    %cst_155 = arith.constant dense<0.000000e+00> : vector<8x32xf32>
    %168 = tpu.matmul %77, %52, %cst_155 {dimension_numbers = #tpu.dot_dimension_numbers<[1], [0], [0], [1], [0, 0, 1, 1], [], []>} : vector<8x32xf32>, vector<32x32xf32>, vector<8x32xf32> -> vector<8x32xf32>
    %169 = arith.addf %167, %168 : vector<8x32xf32>
    %170 = arith.negf %163 : vector<8x32xf32>
    %171 = math.exp %170 : vector<8x32xf32>
    %cst_156 = arith.constant 1.000000e+00 : f32
    %172 = vector.broadcast %cst_156 : f32 to vector<8x32xf32>
    %173 = arith.addf %172, %171 : vector<8x32xf32>
    %174 = arith.divf %172, %173 : vector<8x32xf32>
    %175 = arith.negf %166 : vector<8x32xf32>
    %176 = math.exp %175 : vector<8x32xf32>
    %cst_157 = arith.constant 1.000000e+00 : f32
    %177 = vector.broadcast %cst_157 : f32 to vector<8x32xf32>
    %178 = arith.addf %177, %176 : vector<8x32xf32>
    %179 = arith.divf %177, %178 : vector<8x32xf32>
    %180 = math.tanh %169 : vector<8x32xf32>
    %181 = arith.mulf %174, %79 : vector<8x32xf32>
    %182 = arith.mulf %12, %180 : vector<8x32xf32>
    %183 = arith.addf %181, %182 : vector<8x32xf32>
    %184 = math.tanh %183 : vector<8x32xf32>
    %185 = arith.mulf %179, %184 : vector<8x32xf32>
    %cst_158 = arith.constant dense<0.000000e+00> : vector<8x32xf32>
    %186 = tpu.matmul %185, %60, %cst_158 {dimension_numbers = #tpu.dot_dimension_numbers<[1], [0], [0], [1], [0, 0, 1, 1], [], []>} : vector<8x32xf32>, vector<32x32xf32>, vector<8x32xf32> -> vector<8x32xf32>
    %187 = arith.addf %186, %68 : vector<8x32xf32>
    %cst_159 = arith.constant dense<0.000000e+00> : vector<8x32xf32>
    %188 = tpu.matmul %78, %54, %cst_159 {dimension_numbers = #tpu.dot_dimension_numbers<[1], [0], [0], [1], [0, 0, 1, 1], [], []>} : vector<8x32xf32>, vector<32x32xf32>, vector<8x32xf32> -> vector<8x32xf32>
    %189 = arith.addf %187, %188 : vector<8x32xf32>
    %cst_160 = arith.constant dense<0.000000e+00> : vector<8x32xf32>
    %190 = tpu.matmul %185, %62, %cst_160 {dimension_numbers = #tpu.dot_dimension_numbers<[1], [0], [0], [1], [0, 0, 1, 1], [], []>} : vector<8x32xf32>, vector<32x32xf32>, vector<8x32xf32> -> vector<8x32xf32>
    %191 = arith.addf %190, %72 : vector<8x32xf32>
    %cst_161 = arith.constant dense<0.000000e+00> : vector<8x32xf32>
    %192 = tpu.matmul %78, %56, %cst_161 {dimension_numbers = #tpu.dot_dimension_numbers<[1], [0], [0], [1], [0, 0, 1, 1], [], []>} : vector<8x32xf32>, vector<32x32xf32>, vector<8x32xf32> -> vector<8x32xf32>
    %193 = arith.addf %191, %192 : vector<8x32xf32>
    %cst_162 = arith.constant dense<0.000000e+00> : vector<8x32xf32>
    %194 = tpu.matmul %185, %64, %cst_162 {dimension_numbers = #tpu.dot_dimension_numbers<[1], [0], [0], [1], [0, 0, 1, 1], [], []>} : vector<8x32xf32>, vector<32x32xf32>, vector<8x32xf32> -> vector<8x32xf32>
    %195 = arith.addf %194, %76 : vector<8x32xf32>
    %cst_163 = arith.constant dense<0.000000e+00> : vector<8x32xf32>
    %196 = tpu.matmul %78, %58, %cst_163 {dimension_numbers = #tpu.dot_dimension_numbers<[1], [0], [0], [1], [0, 0, 1, 1], [], []>} : vector<8x32xf32>, vector<32x32xf32>, vector<8x32xf32> -> vector<8x32xf32>
    %197 = arith.addf %195, %196 : vector<8x32xf32>
    %198 = arith.negf %189 : vector<8x32xf32>
    %199 = math.exp %198 : vector<8x32xf32>
    %cst_164 = arith.constant 1.000000e+00 : f32
    %200 = vector.broadcast %cst_164 : f32 to vector<8x32xf32>
    %201 = arith.addf %200, %199 : vector<8x32xf32>
    %202 = arith.divf %200, %201 : vector<8x32xf32>
    %203 = arith.negf %193 : vector<8x32xf32>
    %204 = math.exp %203 : vector<8x32xf32>
    %cst_165 = arith.constant 1.000000e+00 : f32
    %205 = vector.broadcast %cst_165 : f32 to vector<8x32xf32>
    %206 = arith.addf %205, %204 : vector<8x32xf32>
    %207 = arith.divf %205, %206 : vector<8x32xf32>
    %208 = math.tanh %197 : vector<8x32xf32>
    %209 = arith.mulf %202, %80 : vector<8x32xf32>
    %210 = arith.mulf %24, %208 : vector<8x32xf32>
    %211 = arith.addf %209, %210 : vector<8x32xf32>
    %212 = math.tanh %211 : vector<8x32xf32>
    %213 = arith.mulf %207, %212 : vector<8x32xf32>
    %214 = vector.extract_strided_slice %112 {offsets = [0, 0], sizes = [8, 32], strides = [1, 1]} : vector<32x32xf32> to vector<8x32xf32>
    %cst_166 = arith.constant dense<0.000000e+00> : vector<8x32xf32>
    %215 = tpu.matmul %157, %128, %cst_166 {dimension_numbers = #tpu.dot_dimension_numbers<[1], [0], [0], [1], [0, 0, 1, 1], [], []>} : vector<8x32xf32>, vector<32x32xf32>, vector<8x32xf32> -> vector<8x32xf32>
    %216 = arith.addf %214, %215 : vector<8x32xf32>
    %217 = vector.extract_strided_slice %119 {offsets = [0, 0], sizes = [8, 32], strides = [1, 1]} : vector<32x32xf32> to vector<8x32xf32>
    %cst_167 = arith.constant dense<0.000000e+00> : vector<8x32xf32>
    %218 = tpu.matmul %157, %130, %cst_167 {dimension_numbers = #tpu.dot_dimension_numbers<[1], [0], [0], [1], [0, 0, 1, 1], [], []>} : vector<8x32xf32>, vector<32x32xf32>, vector<8x32xf32> -> vector<8x32xf32>
    %219 = arith.addf %217, %218 : vector<8x32xf32>
    %220 = vector.extract_strided_slice %126 {offsets = [0, 0], sizes = [8, 32], strides = [1, 1]} : vector<32x32xf32> to vector<8x32xf32>
    %cst_168 = arith.constant dense<0.000000e+00> : vector<8x32xf32>
    %221 = tpu.matmul %157, %132, %cst_168 {dimension_numbers = #tpu.dot_dimension_numbers<[1], [0], [0], [1], [0, 0, 1, 1], [], []>} : vector<8x32xf32>, vector<32x32xf32>, vector<8x32xf32> -> vector<8x32xf32>
    %222 = arith.addf %220, %221 : vector<8x32xf32>
    %223 = arith.negf %216 : vector<8x32xf32>
    %224 = math.exp %223 : vector<8x32xf32>
    %cst_169 = arith.constant 1.000000e+00 : f32
    %225 = vector.broadcast %cst_169 : f32 to vector<8x32xf32>
    %226 = arith.addf %225, %224 : vector<8x32xf32>
    %227 = arith.divf %225, %226 : vector<8x32xf32>
    %228 = arith.negf %219 : vector<8x32xf32>
    %229 = math.exp %228 : vector<8x32xf32>
    %cst_170 = arith.constant 1.000000e+00 : f32
    %230 = vector.broadcast %cst_170 : f32 to vector<8x32xf32>
    %231 = arith.addf %230, %229 : vector<8x32xf32>
    %232 = arith.divf %230, %231 : vector<8x32xf32>
    %233 = math.tanh %222 : vector<8x32xf32>
    %234 = arith.mulf %227, %159 : vector<8x32xf32>
    %235 = arith.mulf %92, %233 : vector<8x32xf32>
    %236 = arith.addf %234, %235 : vector<8x32xf32>
    %237 = math.tanh %236 : vector<8x32xf32>
    %238 = arith.mulf %232, %237 : vector<8x32xf32>
    %cst_171 = arith.constant dense<0.000000e+00> : vector<8x32xf32>
    %239 = tpu.matmul %238, %140, %cst_171 {dimension_numbers = #tpu.dot_dimension_numbers<[1], [0], [0], [1], [0, 0, 1, 1], [], []>} : vector<8x32xf32>, vector<32x32xf32>, vector<8x32xf32> -> vector<8x32xf32>
    %240 = arith.addf %239, %148 : vector<8x32xf32>
    %cst_172 = arith.constant dense<0.000000e+00> : vector<8x32xf32>
    %241 = tpu.matmul %158, %134, %cst_172 {dimension_numbers = #tpu.dot_dimension_numbers<[1], [0], [0], [1], [0, 0, 1, 1], [], []>} : vector<8x32xf32>, vector<32x32xf32>, vector<8x32xf32> -> vector<8x32xf32>
    %242 = arith.addf %240, %241 : vector<8x32xf32>
    %cst_173 = arith.constant dense<0.000000e+00> : vector<8x32xf32>
    %243 = tpu.matmul %238, %142, %cst_173 {dimension_numbers = #tpu.dot_dimension_numbers<[1], [0], [0], [1], [0, 0, 1, 1], [], []>} : vector<8x32xf32>, vector<32x32xf32>, vector<8x32xf32> -> vector<8x32xf32>
    %244 = arith.addf %243, %152 : vector<8x32xf32>
    %cst_174 = arith.constant dense<0.000000e+00> : vector<8x32xf32>
    %245 = tpu.matmul %158, %136, %cst_174 {dimension_numbers = #tpu.dot_dimension_numbers<[1], [0], [0], [1], [0, 0, 1, 1], [], []>} : vector<8x32xf32>, vector<32x32xf32>, vector<8x32xf32> -> vector<8x32xf32>
    %246 = arith.addf %244, %245 : vector<8x32xf32>
    %cst_175 = arith.constant dense<0.000000e+00> : vector<8x32xf32>
    %247 = tpu.matmul %238, %144, %cst_175 {dimension_numbers = #tpu.dot_dimension_numbers<[1], [0], [0], [1], [0, 0, 1, 1], [], []>} : vector<8x32xf32>, vector<32x32xf32>, vector<8x32xf32> -> vector<8x32xf32>
    %248 = arith.addf %247, %156 : vector<8x32xf32>
    %cst_176 = arith.constant dense<0.000000e+00> : vector<8x32xf32>
    %249 = tpu.matmul %158, %138, %cst_176 {dimension_numbers = #tpu.dot_dimension_numbers<[1], [0], [0], [1], [0, 0, 1, 1], [], []>} : vector<8x32xf32>, vector<32x32xf32>, vector<8x32xf32> -> vector<8x32xf32>
    %250 = arith.addf %248, %249 : vector<8x32xf32>
    %251 = arith.negf %242 : vector<8x32xf32>
    %252 = math.exp %251 : vector<8x32xf32>
    %cst_177 = arith.constant 1.000000e+00 : f32
    %253 = vector.broadcast %cst_177 : f32 to vector<8x32xf32>
    %254 = arith.addf %253, %252 : vector<8x32xf32>
    %255 = arith.divf %253, %254 : vector<8x32xf32>
    %256 = arith.negf %246 : vector<8x32xf32>
    %257 = math.exp %256 : vector<8x32xf32>
    %cst_178 = arith.constant 1.000000e+00 : f32
    %258 = vector.broadcast %cst_178 : f32 to vector<8x32xf32>
    %259 = arith.addf %258, %257 : vector<8x32xf32>
    %260 = arith.divf %258, %259 : vector<8x32xf32>
    %261 = math.tanh %250 : vector<8x32xf32>
    %262 = arith.mulf %255, %160 : vector<8x32xf32>
    %263 = arith.mulf %104, %261 : vector<8x32xf32>
    %264 = arith.addf %262, %263 : vector<8x32xf32>
    %265 = math.tanh %264 : vector<8x32xf32>
    %266 = arith.mulf %260, %265 : vector<8x32xf32>
    %267 = vector.extract_strided_slice %32 {offsets = [8, 0], sizes = [8, 32], strides = [1, 1]} : vector<64x32xf32> to vector<8x32xf32>
    %cst_179 = arith.constant dense<0.000000e+00> : vector<8x32xf32>
    %268 = tpu.matmul %185, %48, %cst_179 {dimension_numbers = #tpu.dot_dimension_numbers<[1], [0], [0], [1], [0, 0, 1, 1], [], []>} : vector<8x32xf32>, vector<32x32xf32>, vector<8x32xf32> -> vector<8x32xf32>
    %269 = arith.addf %267, %268 : vector<8x32xf32>
    %270 = vector.extract_strided_slice %39 {offsets = [8, 0], sizes = [8, 32], strides = [1, 1]} : vector<64x32xf32> to vector<8x32xf32>
    %cst_180 = arith.constant dense<0.000000e+00> : vector<8x32xf32>
    %271 = tpu.matmul %185, %50, %cst_180 {dimension_numbers = #tpu.dot_dimension_numbers<[1], [0], [0], [1], [0, 0, 1, 1], [], []>} : vector<8x32xf32>, vector<32x32xf32>, vector<8x32xf32> -> vector<8x32xf32>
    %272 = arith.addf %270, %271 : vector<8x32xf32>
    %273 = vector.extract_strided_slice %46 {offsets = [8, 0], sizes = [8, 32], strides = [1, 1]} : vector<64x32xf32> to vector<8x32xf32>
    %cst_181 = arith.constant dense<0.000000e+00> : vector<8x32xf32>
    %274 = tpu.matmul %185, %52, %cst_181 {dimension_numbers = #tpu.dot_dimension_numbers<[1], [0], [0], [1], [0, 0, 1, 1], [], []>} : vector<8x32xf32>, vector<32x32xf32>, vector<8x32xf32> -> vector<8x32xf32>
    %275 = arith.addf %273, %274 : vector<8x32xf32>
    %276 = arith.negf %269 : vector<8x32xf32>
    %277 = math.exp %276 : vector<8x32xf32>
    %cst_182 = arith.constant 1.000000e+00 : f32
    %278 = vector.broadcast %cst_182 : f32 to vector<8x32xf32>
    %279 = arith.addf %278, %277 : vector<8x32xf32>
    %280 = arith.divf %278, %279 : vector<8x32xf32>
    %281 = arith.negf %272 : vector<8x32xf32>
    %282 = math.exp %281 : vector<8x32xf32>
    %cst_183 = arith.constant 1.000000e+00 : f32
    %283 = vector.broadcast %cst_183 : f32 to vector<8x32xf32>
    %284 = arith.addf %283, %282 : vector<8x32xf32>
    %285 = arith.divf %283, %284 : vector<8x32xf32>
    %286 = math.tanh %275 : vector<8x32xf32>
    %287 = arith.mulf %280, %183 : vector<8x32xf32>
    %288 = arith.mulf %12, %286 : vector<8x32xf32>
    %289 = arith.addf %287, %288 : vector<8x32xf32>
    %290 = math.tanh %289 : vector<8x32xf32>
    %291 = arith.mulf %285, %290 : vector<8x32xf32>
    %cst_184 = arith.constant dense<0.000000e+00> : vector<8x32xf32>
    %292 = tpu.matmul %291, %60, %cst_184 {dimension_numbers = #tpu.dot_dimension_numbers<[1], [0], [0], [1], [0, 0, 1, 1], [], []>} : vector<8x32xf32>, vector<32x32xf32>, vector<8x32xf32> -> vector<8x32xf32>
    %293 = arith.addf %292, %68 : vector<8x32xf32>
    %cst_185 = arith.constant dense<0.000000e+00> : vector<8x32xf32>
    %294 = tpu.matmul %213, %54, %cst_185 {dimension_numbers = #tpu.dot_dimension_numbers<[1], [0], [0], [1], [0, 0, 1, 1], [], []>} : vector<8x32xf32>, vector<32x32xf32>, vector<8x32xf32> -> vector<8x32xf32>
    %295 = arith.addf %293, %294 : vector<8x32xf32>
    %cst_186 = arith.constant dense<0.000000e+00> : vector<8x32xf32>
    %296 = tpu.matmul %291, %62, %cst_186 {dimension_numbers = #tpu.dot_dimension_numbers<[1], [0], [0], [1], [0, 0, 1, 1], [], []>} : vector<8x32xf32>, vector<32x32xf32>, vector<8x32xf32> -> vector<8x32xf32>
    %297 = arith.addf %296, %72 : vector<8x32xf32>
    %cst_187 = arith.constant dense<0.000000e+00> : vector<8x32xf32>
    %298 = tpu.matmul %213, %56, %cst_187 {dimension_numbers = #tpu.dot_dimension_numbers<[1], [0], [0], [1], [0, 0, 1, 1], [], []>} : vector<8x32xf32>, vector<32x32xf32>, vector<8x32xf32> -> vector<8x32xf32>
    %299 = arith.addf %297, %298 : vector<8x32xf32>
    %cst_188 = arith.constant dense<0.000000e+00> : vector<8x32xf32>
    %300 = tpu.matmul %291, %64, %cst_188 {dimension_numbers = #tpu.dot_dimension_numbers<[1], [0], [0], [1], [0, 0, 1, 1], [], []>} : vector<8x32xf32>, vector<32x32xf32>, vector<8x32xf32> -> vector<8x32xf32>
    %301 = arith.addf %300, %76 : vector<8x32xf32>
    %cst_189 = arith.constant dense<0.000000e+00> : vector<8x32xf32>
    %302 = tpu.matmul %213, %58, %cst_189 {dimension_numbers = #tpu.dot_dimension_numbers<[1], [0], [0], [1], [0, 0, 1, 1], [], []>} : vector<8x32xf32>, vector<32x32xf32>, vector<8x32xf32> -> vector<8x32xf32>
    %303 = arith.addf %301, %302 : vector<8x32xf32>
    %304 = arith.negf %295 : vector<8x32xf32>
    %305 = math.exp %304 : vector<8x32xf32>
    %cst_190 = arith.constant 1.000000e+00 : f32
    %306 = vector.broadcast %cst_190 : f32 to vector<8x32xf32>
    %307 = arith.addf %306, %305 : vector<8x32xf32>
    %308 = arith.divf %306, %307 : vector<8x32xf32>
    %309 = arith.negf %299 : vector<8x32xf32>
    %310 = math.exp %309 : vector<8x32xf32>
    %cst_191 = arith.constant 1.000000e+00 : f32
    %311 = vector.broadcast %cst_191 : f32 to vector<8x32xf32>
    %312 = arith.addf %311, %310 : vector<8x32xf32>
    %313 = arith.divf %311, %312 : vector<8x32xf32>
    %314 = math.tanh %303 : vector<8x32xf32>
    %315 = arith.mulf %308, %211 : vector<8x32xf32>
    %316 = arith.mulf %24, %314 : vector<8x32xf32>
    %317 = arith.addf %315, %316 : vector<8x32xf32>
    %318 = math.tanh %317 : vector<8x32xf32>
    %319 = arith.mulf %313, %318 : vector<8x32xf32>
    %320 = vector.extract_strided_slice %112 {offsets = [8, 0], sizes = [8, 32], strides = [1, 1]} : vector<32x32xf32> to vector<8x32xf32>
    %cst_192 = arith.constant dense<0.000000e+00> : vector<8x32xf32>
    %321 = tpu.matmul %238, %128, %cst_192 {dimension_numbers = #tpu.dot_dimension_numbers<[1], [0], [0], [1], [0, 0, 1, 1], [], []>} : vector<8x32xf32>, vector<32x32xf32>, vector<8x32xf32> -> vector<8x32xf32>
    %322 = arith.addf %320, %321 : vector<8x32xf32>
    %323 = vector.extract_strided_slice %119 {offsets = [8, 0], sizes = [8, 32], strides = [1, 1]} : vector<32x32xf32> to vector<8x32xf32>
    %cst_193 = arith.constant dense<0.000000e+00> : vector<8x32xf32>
    %324 = tpu.matmul %238, %130, %cst_193 {dimension_numbers = #tpu.dot_dimension_numbers<[1], [0], [0], [1], [0, 0, 1, 1], [], []>} : vector<8x32xf32>, vector<32x32xf32>, vector<8x32xf32> -> vector<8x32xf32>
    %325 = arith.addf %323, %324 : vector<8x32xf32>
    %326 = vector.extract_strided_slice %126 {offsets = [8, 0], sizes = [8, 32], strides = [1, 1]} : vector<32x32xf32> to vector<8x32xf32>
    %cst_194 = arith.constant dense<0.000000e+00> : vector<8x32xf32>
    %327 = tpu.matmul %238, %132, %cst_194 {dimension_numbers = #tpu.dot_dimension_numbers<[1], [0], [0], [1], [0, 0, 1, 1], [], []>} : vector<8x32xf32>, vector<32x32xf32>, vector<8x32xf32> -> vector<8x32xf32>
    %328 = arith.addf %326, %327 : vector<8x32xf32>
    %329 = arith.negf %322 : vector<8x32xf32>
    %330 = math.exp %329 : vector<8x32xf32>
    %cst_195 = arith.constant 1.000000e+00 : f32
    %331 = vector.broadcast %cst_195 : f32 to vector<8x32xf32>
    %332 = arith.addf %331, %330 : vector<8x32xf32>
    %333 = arith.divf %331, %332 : vector<8x32xf32>
    %334 = arith.negf %325 : vector<8x32xf32>
    %335 = math.exp %334 : vector<8x32xf32>
    %cst_196 = arith.constant 1.000000e+00 : f32
    %336 = vector.broadcast %cst_196 : f32 to vector<8x32xf32>
    %337 = arith.addf %336, %335 : vector<8x32xf32>
    %338 = arith.divf %336, %337 : vector<8x32xf32>
    %339 = math.tanh %328 : vector<8x32xf32>
    %340 = arith.mulf %333, %236 : vector<8x32xf32>
    %341 = arith.mulf %92, %339 : vector<8x32xf32>
    %342 = arith.addf %340, %341 : vector<8x32xf32>
    %343 = math.tanh %342 : vector<8x32xf32>
    %344 = arith.mulf %338, %343 : vector<8x32xf32>
    %cst_197 = arith.constant dense<0.000000e+00> : vector<8x32xf32>
    %345 = tpu.matmul %344, %140, %cst_197 {dimension_numbers = #tpu.dot_dimension_numbers<[1], [0], [0], [1], [0, 0, 1, 1], [], []>} : vector<8x32xf32>, vector<32x32xf32>, vector<8x32xf32> -> vector<8x32xf32>
    %346 = arith.addf %345, %148 : vector<8x32xf32>
    %cst_198 = arith.constant dense<0.000000e+00> : vector<8x32xf32>
    %347 = tpu.matmul %266, %134, %cst_198 {dimension_numbers = #tpu.dot_dimension_numbers<[1], [0], [0], [1], [0, 0, 1, 1], [], []>} : vector<8x32xf32>, vector<32x32xf32>, vector<8x32xf32> -> vector<8x32xf32>
    %348 = arith.addf %346, %347 : vector<8x32xf32>
    %cst_199 = arith.constant dense<0.000000e+00> : vector<8x32xf32>
    %349 = tpu.matmul %344, %142, %cst_199 {dimension_numbers = #tpu.dot_dimension_numbers<[1], [0], [0], [1], [0, 0, 1, 1], [], []>} : vector<8x32xf32>, vector<32x32xf32>, vector<8x32xf32> -> vector<8x32xf32>
    %350 = arith.addf %349, %152 : vector<8x32xf32>
    %cst_200 = arith.constant dense<0.000000e+00> : vector<8x32xf32>
    %351 = tpu.matmul %266, %136, %cst_200 {dimension_numbers = #tpu.dot_dimension_numbers<[1], [0], [0], [1], [0, 0, 1, 1], [], []>} : vector<8x32xf32>, vector<32x32xf32>, vector<8x32xf32> -> vector<8x32xf32>
    %352 = arith.addf %350, %351 : vector<8x32xf32>
    %cst_201 = arith.constant dense<0.000000e+00> : vector<8x32xf32>
    %353 = tpu.matmul %344, %144, %cst_201 {dimension_numbers = #tpu.dot_dimension_numbers<[1], [0], [0], [1], [0, 0, 1, 1], [], []>} : vector<8x32xf32>, vector<32x32xf32>, vector<8x32xf32> -> vector<8x32xf32>
    %354 = arith.addf %353, %156 : vector<8x32xf32>
    %cst_202 = arith.constant dense<0.000000e+00> : vector<8x32xf32>
    %355 = tpu.matmul %266, %138, %cst_202 {dimension_numbers = #tpu.dot_dimension_numbers<[1], [0], [0], [1], [0, 0, 1, 1], [], []>} : vector<8x32xf32>, vector<32x32xf32>, vector<8x32xf32> -> vector<8x32xf32>
    %356 = arith.addf %354, %355 : vector<8x32xf32>
    %357 = arith.negf %348 : vector<8x32xf32>
    %358 = math.exp %357 : vector<8x32xf32>
    %cst_203 = arith.constant 1.000000e+00 : f32
    %359 = vector.broadcast %cst_203 : f32 to vector<8x32xf32>
    %360 = arith.addf %359, %358 : vector<8x32xf32>
    %361 = arith.divf %359, %360 : vector<8x32xf32>
    %362 = arith.negf %352 : vector<8x32xf32>
    %363 = math.exp %362 : vector<8x32xf32>
    %cst_204 = arith.constant 1.000000e+00 : f32
    %364 = vector.broadcast %cst_204 : f32 to vector<8x32xf32>
    %365 = arith.addf %364, %363 : vector<8x32xf32>
    %366 = arith.divf %364, %365 : vector<8x32xf32>
    %367 = math.tanh %356 : vector<8x32xf32>
    %368 = arith.mulf %361, %264 : vector<8x32xf32>
    %369 = arith.mulf %104, %367 : vector<8x32xf32>
    %370 = arith.addf %368, %369 : vector<8x32xf32>
    %371 = math.tanh %370 : vector<8x32xf32>
    %372 = arith.mulf %366, %371 : vector<8x32xf32>
    %373 = vector.extract_strided_slice %32 {offsets = [16, 0], sizes = [8, 32], strides = [1, 1]} : vector<64x32xf32> to vector<8x32xf32>
    %cst_205 = arith.constant dense<0.000000e+00> : vector<8x32xf32>
    %374 = tpu.matmul %291, %48, %cst_205 {dimension_numbers = #tpu.dot_dimension_numbers<[1], [0], [0], [1], [0, 0, 1, 1], [], []>} : vector<8x32xf32>, vector<32x32xf32>, vector<8x32xf32> -> vector<8x32xf32>
    %375 = arith.addf %373, %374 : vector<8x32xf32>
    %376 = vector.extract_strided_slice %39 {offsets = [16, 0], sizes = [8, 32], strides = [1, 1]} : vector<64x32xf32> to vector<8x32xf32>
    %cst_206 = arith.constant dense<0.000000e+00> : vector<8x32xf32>
    %377 = tpu.matmul %291, %50, %cst_206 {dimension_numbers = #tpu.dot_dimension_numbers<[1], [0], [0], [1], [0, 0, 1, 1], [], []>} : vector<8x32xf32>, vector<32x32xf32>, vector<8x32xf32> -> vector<8x32xf32>
    %378 = arith.addf %376, %377 : vector<8x32xf32>
    %379 = vector.extract_strided_slice %46 {offsets = [16, 0], sizes = [8, 32], strides = [1, 1]} : vector<64x32xf32> to vector<8x32xf32>
    %cst_207 = arith.constant dense<0.000000e+00> : vector<8x32xf32>
    %380 = tpu.matmul %291, %52, %cst_207 {dimension_numbers = #tpu.dot_dimension_numbers<[1], [0], [0], [1], [0, 0, 1, 1], [], []>} : vector<8x32xf32>, vector<32x32xf32>, vector<8x32xf32> -> vector<8x32xf32>
    %381 = arith.addf %379, %380 : vector<8x32xf32>
    %382 = arith.negf %375 : vector<8x32xf32>
    %383 = math.exp %382 : vector<8x32xf32>
    %cst_208 = arith.constant 1.000000e+00 : f32
    %384 = vector.broadcast %cst_208 : f32 to vector<8x32xf32>
    %385 = arith.addf %384, %383 : vector<8x32xf32>
    %386 = arith.divf %384, %385 : vector<8x32xf32>
    %387 = arith.negf %378 : vector<8x32xf32>
    %388 = math.exp %387 : vector<8x32xf32>
    %cst_209 = arith.constant 1.000000e+00 : f32
    %389 = vector.broadcast %cst_209 : f32 to vector<8x32xf32>
    %390 = arith.addf %389, %388 : vector<8x32xf32>
    %391 = arith.divf %389, %390 : vector<8x32xf32>
    %392 = math.tanh %381 : vector<8x32xf32>
    %393 = arith.mulf %386, %289 : vector<8x32xf32>
    %394 = arith.mulf %12, %392 : vector<8x32xf32>
    %395 = arith.addf %393, %394 : vector<8x32xf32>
    %396 = math.tanh %395 : vector<8x32xf32>
    %397 = arith.mulf %391, %396 : vector<8x32xf32>
    %cst_210 = arith.constant dense<0.000000e+00> : vector<8x32xf32>
    %398 = tpu.matmul %397, %60, %cst_210 {dimension_numbers = #tpu.dot_dimension_numbers<[1], [0], [0], [1], [0, 0, 1, 1], [], []>} : vector<8x32xf32>, vector<32x32xf32>, vector<8x32xf32> -> vector<8x32xf32>
    %399 = arith.addf %398, %68 : vector<8x32xf32>
    %cst_211 = arith.constant dense<0.000000e+00> : vector<8x32xf32>
    %400 = tpu.matmul %319, %54, %cst_211 {dimension_numbers = #tpu.dot_dimension_numbers<[1], [0], [0], [1], [0, 0, 1, 1], [], []>} : vector<8x32xf32>, vector<32x32xf32>, vector<8x32xf32> -> vector<8x32xf32>
    %401 = arith.addf %399, %400 : vector<8x32xf32>
    %cst_212 = arith.constant dense<0.000000e+00> : vector<8x32xf32>
    %402 = tpu.matmul %397, %62, %cst_212 {dimension_numbers = #tpu.dot_dimension_numbers<[1], [0], [0], [1], [0, 0, 1, 1], [], []>} : vector<8x32xf32>, vector<32x32xf32>, vector<8x32xf32> -> vector<8x32xf32>
    %403 = arith.addf %402, %72 : vector<8x32xf32>
    %cst_213 = arith.constant dense<0.000000e+00> : vector<8x32xf32>
    %404 = tpu.matmul %319, %56, %cst_213 {dimension_numbers = #tpu.dot_dimension_numbers<[1], [0], [0], [1], [0, 0, 1, 1], [], []>} : vector<8x32xf32>, vector<32x32xf32>, vector<8x32xf32> -> vector<8x32xf32>
    %405 = arith.addf %403, %404 : vector<8x32xf32>
    %cst_214 = arith.constant dense<0.000000e+00> : vector<8x32xf32>
    %406 = tpu.matmul %397, %64, %cst_214 {dimension_numbers = #tpu.dot_dimension_numbers<[1], [0], [0], [1], [0, 0, 1, 1], [], []>} : vector<8x32xf32>, vector<32x32xf32>, vector<8x32xf32> -> vector<8x32xf32>
    %407 = arith.addf %406, %76 : vector<8x32xf32>
    %cst_215 = arith.constant dense<0.000000e+00> : vector<8x32xf32>
    %408 = tpu.matmul %319, %58, %cst_215 {dimension_numbers = #tpu.dot_dimension_numbers<[1], [0], [0], [1], [0, 0, 1, 1], [], []>} : vector<8x32xf32>, vector<32x32xf32>, vector<8x32xf32> -> vector<8x32xf32>
    %409 = arith.addf %407, %408 : vector<8x32xf32>
    %410 = arith.negf %401 : vector<8x32xf32>
    %411 = math.exp %410 : vector<8x32xf32>
    %cst_216 = arith.constant 1.000000e+00 : f32
    %412 = vector.broadcast %cst_216 : f32 to vector<8x32xf32>
    %413 = arith.addf %412, %411 : vector<8x32xf32>
    %414 = arith.divf %412, %413 : vector<8x32xf32>
    %415 = arith.negf %405 : vector<8x32xf32>
    %416 = math.exp %415 : vector<8x32xf32>
    %cst_217 = arith.constant 1.000000e+00 : f32
    %417 = vector.broadcast %cst_217 : f32 to vector<8x32xf32>
    %418 = arith.addf %417, %416 : vector<8x32xf32>
    %419 = arith.divf %417, %418 : vector<8x32xf32>
    %420 = math.tanh %409 : vector<8x32xf32>
    %421 = arith.mulf %414, %317 : vector<8x32xf32>
    %422 = arith.mulf %24, %420 : vector<8x32xf32>
    %423 = arith.addf %421, %422 : vector<8x32xf32>
    %424 = math.tanh %423 : vector<8x32xf32>
    %425 = arith.mulf %419, %424 : vector<8x32xf32>
    %426 = vector.extract_strided_slice %112 {offsets = [16, 0], sizes = [8, 32], strides = [1, 1]} : vector<32x32xf32> to vector<8x32xf32>
    %cst_218 = arith.constant dense<0.000000e+00> : vector<8x32xf32>
    %427 = tpu.matmul %344, %128, %cst_218 {dimension_numbers = #tpu.dot_dimension_numbers<[1], [0], [0], [1], [0, 0, 1, 1], [], []>} : vector<8x32xf32>, vector<32x32xf32>, vector<8x32xf32> -> vector<8x32xf32>
    %428 = arith.addf %426, %427 : vector<8x32xf32>
    %429 = vector.extract_strided_slice %119 {offsets = [16, 0], sizes = [8, 32], strides = [1, 1]} : vector<32x32xf32> to vector<8x32xf32>
    %cst_219 = arith.constant dense<0.000000e+00> : vector<8x32xf32>
    %430 = tpu.matmul %344, %130, %cst_219 {dimension_numbers = #tpu.dot_dimension_numbers<[1], [0], [0], [1], [0, 0, 1, 1], [], []>} : vector<8x32xf32>, vector<32x32xf32>, vector<8x32xf32> -> vector<8x32xf32>
    %431 = arith.addf %429, %430 : vector<8x32xf32>
    %432 = vector.extract_strided_slice %126 {offsets = [16, 0], sizes = [8, 32], strides = [1, 1]} : vector<32x32xf32> to vector<8x32xf32>
    %cst_220 = arith.constant dense<0.000000e+00> : vector<8x32xf32>
    %433 = tpu.matmul %344, %132, %cst_220 {dimension_numbers = #tpu.dot_dimension_numbers<[1], [0], [0], [1], [0, 0, 1, 1], [], []>} : vector<8x32xf32>, vector<32x32xf32>, vector<8x32xf32> -> vector<8x32xf32>
    %434 = arith.addf %432, %433 : vector<8x32xf32>
    %435 = arith.negf %428 : vector<8x32xf32>
    %436 = math.exp %435 : vector<8x32xf32>
    %cst_221 = arith.constant 1.000000e+00 : f32
    %437 = vector.broadcast %cst_221 : f32 to vector<8x32xf32>
    %438 = arith.addf %437, %436 : vector<8x32xf32>
    %439 = arith.divf %437, %438 : vector<8x32xf32>
    %440 = arith.negf %431 : vector<8x32xf32>
    %441 = math.exp %440 : vector<8x32xf32>
    %cst_222 = arith.constant 1.000000e+00 : f32
    %442 = vector.broadcast %cst_222 : f32 to vector<8x32xf32>
    %443 = arith.addf %442, %441 : vector<8x32xf32>
    %444 = arith.divf %442, %443 : vector<8x32xf32>
    %445 = math.tanh %434 : vector<8x32xf32>
    %446 = arith.mulf %439, %342 : vector<8x32xf32>
    %447 = arith.mulf %92, %445 : vector<8x32xf32>
    %448 = arith.addf %446, %447 : vector<8x32xf32>
    %449 = math.tanh %448 : vector<8x32xf32>
    %450 = arith.mulf %444, %449 : vector<8x32xf32>
    %cst_223 = arith.constant dense<0.000000e+00> : vector<8x32xf32>
    %451 = tpu.matmul %450, %140, %cst_223 {dimension_numbers = #tpu.dot_dimension_numbers<[1], [0], [0], [1], [0, 0, 1, 1], [], []>} : vector<8x32xf32>, vector<32x32xf32>, vector<8x32xf32> -> vector<8x32xf32>
    %452 = arith.addf %451, %148 : vector<8x32xf32>
    %cst_224 = arith.constant dense<0.000000e+00> : vector<8x32xf32>
    %453 = tpu.matmul %372, %134, %cst_224 {dimension_numbers = #tpu.dot_dimension_numbers<[1], [0], [0], [1], [0, 0, 1, 1], [], []>} : vector<8x32xf32>, vector<32x32xf32>, vector<8x32xf32> -> vector<8x32xf32>
    %454 = arith.addf %452, %453 : vector<8x32xf32>
    %cst_225 = arith.constant dense<0.000000e+00> : vector<8x32xf32>
    %455 = tpu.matmul %450, %142, %cst_225 {dimension_numbers = #tpu.dot_dimension_numbers<[1], [0], [0], [1], [0, 0, 1, 1], [], []>} : vector<8x32xf32>, vector<32x32xf32>, vector<8x32xf32> -> vector<8x32xf32>
    %456 = arith.addf %455, %152 : vector<8x32xf32>
    %cst_226 = arith.constant dense<0.000000e+00> : vector<8x32xf32>
    %457 = tpu.matmul %372, %136, %cst_226 {dimension_numbers = #tpu.dot_dimension_numbers<[1], [0], [0], [1], [0, 0, 1, 1], [], []>} : vector<8x32xf32>, vector<32x32xf32>, vector<8x32xf32> -> vector<8x32xf32>
    %458 = arith.addf %456, %457 : vector<8x32xf32>
    %cst_227 = arith.constant dense<0.000000e+00> : vector<8x32xf32>
    %459 = tpu.matmul %450, %144, %cst_227 {dimension_numbers = #tpu.dot_dimension_numbers<[1], [0], [0], [1], [0, 0, 1, 1], [], []>} : vector<8x32xf32>, vector<32x32xf32>, vector<8x32xf32> -> vector<8x32xf32>
    %460 = arith.addf %459, %156 : vector<8x32xf32>
    %cst_228 = arith.constant dense<0.000000e+00> : vector<8x32xf32>
    %461 = tpu.matmul %372, %138, %cst_228 {dimension_numbers = #tpu.dot_dimension_numbers<[1], [0], [0], [1], [0, 0, 1, 1], [], []>} : vector<8x32xf32>, vector<32x32xf32>, vector<8x32xf32> -> vector<8x32xf32>
    %462 = arith.addf %460, %461 : vector<8x32xf32>
    %463 = arith.negf %454 : vector<8x32xf32>
    %464 = math.exp %463 : vector<8x32xf32>
    %cst_229 = arith.constant 1.000000e+00 : f32
    %465 = vector.broadcast %cst_229 : f32 to vector<8x32xf32>
    %466 = arith.addf %465, %464 : vector<8x32xf32>
    %467 = arith.divf %465, %466 : vector<8x32xf32>
    %468 = arith.negf %458 : vector<8x32xf32>
    %469 = math.exp %468 : vector<8x32xf32>
    %cst_230 = arith.constant 1.000000e+00 : f32
    %470 = vector.broadcast %cst_230 : f32 to vector<8x32xf32>
    %471 = arith.addf %470, %469 : vector<8x32xf32>
    %472 = arith.divf %470, %471 : vector<8x32xf32>
    %473 = math.tanh %462 : vector<8x32xf32>
    %474 = arith.mulf %467, %370 : vector<8x32xf32>
    %475 = arith.mulf %104, %473 : vector<8x32xf32>
    %476 = arith.addf %474, %475 : vector<8x32xf32>
    %477 = math.tanh %476 : vector<8x32xf32>
    %478 = arith.mulf %472, %477 : vector<8x32xf32>
    %479 = vector.extract_strided_slice %32 {offsets = [24, 0], sizes = [8, 32], strides = [1, 1]} : vector<64x32xf32> to vector<8x32xf32>
    %cst_231 = arith.constant dense<0.000000e+00> : vector<8x32xf32>
    %480 = tpu.matmul %397, %48, %cst_231 {dimension_numbers = #tpu.dot_dimension_numbers<[1], [0], [0], [1], [0, 0, 1, 1], [], []>} : vector<8x32xf32>, vector<32x32xf32>, vector<8x32xf32> -> vector<8x32xf32>
    %481 = arith.addf %479, %480 : vector<8x32xf32>
    %482 = vector.extract_strided_slice %39 {offsets = [24, 0], sizes = [8, 32], strides = [1, 1]} : vector<64x32xf32> to vector<8x32xf32>
    %cst_232 = arith.constant dense<0.000000e+00> : vector<8x32xf32>
    %483 = tpu.matmul %397, %50, %cst_232 {dimension_numbers = #tpu.dot_dimension_numbers<[1], [0], [0], [1], [0, 0, 1, 1], [], []>} : vector<8x32xf32>, vector<32x32xf32>, vector<8x32xf32> -> vector<8x32xf32>
    %484 = arith.addf %482, %483 : vector<8x32xf32>
    %485 = vector.extract_strided_slice %46 {offsets = [24, 0], sizes = [8, 32], strides = [1, 1]} : vector<64x32xf32> to vector<8x32xf32>
    %cst_233 = arith.constant dense<0.000000e+00> : vector<8x32xf32>
    %486 = tpu.matmul %397, %52, %cst_233 {dimension_numbers = #tpu.dot_dimension_numbers<[1], [0], [0], [1], [0, 0, 1, 1], [], []>} : vector<8x32xf32>, vector<32x32xf32>, vector<8x32xf32> -> vector<8x32xf32>
    %487 = arith.addf %485, %486 : vector<8x32xf32>
    %488 = arith.negf %481 : vector<8x32xf32>
    %489 = math.exp %488 : vector<8x32xf32>
    %cst_234 = arith.constant 1.000000e+00 : f32
    %490 = vector.broadcast %cst_234 : f32 to vector<8x32xf32>
    %491 = arith.addf %490, %489 : vector<8x32xf32>
    %492 = arith.divf %490, %491 : vector<8x32xf32>
    %493 = arith.negf %484 : vector<8x32xf32>
    %494 = math.exp %493 : vector<8x32xf32>
    %cst_235 = arith.constant 1.000000e+00 : f32
    %495 = vector.broadcast %cst_235 : f32 to vector<8x32xf32>
    %496 = arith.addf %495, %494 : vector<8x32xf32>
    %497 = arith.divf %495, %496 : vector<8x32xf32>
    %498 = math.tanh %487 : vector<8x32xf32>
    %499 = arith.mulf %492, %395 : vector<8x32xf32>
    %500 = arith.mulf %12, %498 : vector<8x32xf32>
    %501 = arith.addf %499, %500 : vector<8x32xf32>
    %502 = math.tanh %501 : vector<8x32xf32>
    %503 = arith.mulf %497, %502 : vector<8x32xf32>
    %cst_236 = arith.constant dense<0.000000e+00> : vector<8x32xf32>
    %504 = tpu.matmul %503, %60, %cst_236 {dimension_numbers = #tpu.dot_dimension_numbers<[1], [0], [0], [1], [0, 0, 1, 1], [], []>} : vector<8x32xf32>, vector<32x32xf32>, vector<8x32xf32> -> vector<8x32xf32>
    %505 = arith.addf %504, %68 : vector<8x32xf32>
    %cst_237 = arith.constant dense<0.000000e+00> : vector<8x32xf32>
    %506 = tpu.matmul %425, %54, %cst_237 {dimension_numbers = #tpu.dot_dimension_numbers<[1], [0], [0], [1], [0, 0, 1, 1], [], []>} : vector<8x32xf32>, vector<32x32xf32>, vector<8x32xf32> -> vector<8x32xf32>
    %507 = arith.addf %505, %506 : vector<8x32xf32>
    %cst_238 = arith.constant dense<0.000000e+00> : vector<8x32xf32>
    %508 = tpu.matmul %503, %62, %cst_238 {dimension_numbers = #tpu.dot_dimension_numbers<[1], [0], [0], [1], [0, 0, 1, 1], [], []>} : vector<8x32xf32>, vector<32x32xf32>, vector<8x32xf32> -> vector<8x32xf32>
    %509 = arith.addf %508, %72 : vector<8x32xf32>
    %cst_239 = arith.constant dense<0.000000e+00> : vector<8x32xf32>
    %510 = tpu.matmul %425, %56, %cst_239 {dimension_numbers = #tpu.dot_dimension_numbers<[1], [0], [0], [1], [0, 0, 1, 1], [], []>} : vector<8x32xf32>, vector<32x32xf32>, vector<8x32xf32> -> vector<8x32xf32>
    %511 = arith.addf %509, %510 : vector<8x32xf32>
    %cst_240 = arith.constant dense<0.000000e+00> : vector<8x32xf32>
    %512 = tpu.matmul %503, %64, %cst_240 {dimension_numbers = #tpu.dot_dimension_numbers<[1], [0], [0], [1], [0, 0, 1, 1], [], []>} : vector<8x32xf32>, vector<32x32xf32>, vector<8x32xf32> -> vector<8x32xf32>
    %513 = arith.addf %512, %76 : vector<8x32xf32>
    %cst_241 = arith.constant dense<0.000000e+00> : vector<8x32xf32>
    %514 = tpu.matmul %425, %58, %cst_241 {dimension_numbers = #tpu.dot_dimension_numbers<[1], [0], [0], [1], [0, 0, 1, 1], [], []>} : vector<8x32xf32>, vector<32x32xf32>, vector<8x32xf32> -> vector<8x32xf32>
    %515 = arith.addf %513, %514 : vector<8x32xf32>
    %516 = arith.negf %507 : vector<8x32xf32>
    %517 = math.exp %516 : vector<8x32xf32>
    %cst_242 = arith.constant 1.000000e+00 : f32
    %518 = vector.broadcast %cst_242 : f32 to vector<8x32xf32>
    %519 = arith.addf %518, %517 : vector<8x32xf32>
    %520 = arith.divf %518, %519 : vector<8x32xf32>
    %521 = arith.negf %511 : vector<8x32xf32>
    %522 = math.exp %521 : vector<8x32xf32>
    %cst_243 = arith.constant 1.000000e+00 : f32
    %523 = vector.broadcast %cst_243 : f32 to vector<8x32xf32>
    %524 = arith.addf %523, %522 : vector<8x32xf32>
    %525 = arith.divf %523, %524 : vector<8x32xf32>
    %526 = math.tanh %515 : vector<8x32xf32>
    %527 = arith.mulf %520, %423 : vector<8x32xf32>
    %528 = arith.mulf %24, %526 : vector<8x32xf32>
    %529 = arith.addf %527, %528 : vector<8x32xf32>
    %530 = math.tanh %529 : vector<8x32xf32>
    %531 = arith.mulf %525, %530 : vector<8x32xf32>
    %532 = vector.extract_strided_slice %112 {offsets = [24, 0], sizes = [8, 32], strides = [1, 1]} : vector<32x32xf32> to vector<8x32xf32>
    %cst_244 = arith.constant dense<0.000000e+00> : vector<8x32xf32>
    %533 = tpu.matmul %450, %128, %cst_244 {dimension_numbers = #tpu.dot_dimension_numbers<[1], [0], [0], [1], [0, 0, 1, 1], [], []>} : vector<8x32xf32>, vector<32x32xf32>, vector<8x32xf32> -> vector<8x32xf32>
    %534 = arith.addf %532, %533 : vector<8x32xf32>
    %535 = vector.extract_strided_slice %119 {offsets = [24, 0], sizes = [8, 32], strides = [1, 1]} : vector<32x32xf32> to vector<8x32xf32>
    %cst_245 = arith.constant dense<0.000000e+00> : vector<8x32xf32>
    %536 = tpu.matmul %450, %130, %cst_245 {dimension_numbers = #tpu.dot_dimension_numbers<[1], [0], [0], [1], [0, 0, 1, 1], [], []>} : vector<8x32xf32>, vector<32x32xf32>, vector<8x32xf32> -> vector<8x32xf32>
    %537 = arith.addf %535, %536 : vector<8x32xf32>
    %538 = vector.extract_strided_slice %126 {offsets = [24, 0], sizes = [8, 32], strides = [1, 1]} : vector<32x32xf32> to vector<8x32xf32>
    %cst_246 = arith.constant dense<0.000000e+00> : vector<8x32xf32>
    %539 = tpu.matmul %450, %132, %cst_246 {dimension_numbers = #tpu.dot_dimension_numbers<[1], [0], [0], [1], [0, 0, 1, 1], [], []>} : vector<8x32xf32>, vector<32x32xf32>, vector<8x32xf32> -> vector<8x32xf32>
    %540 = arith.addf %538, %539 : vector<8x32xf32>
    %541 = arith.negf %534 : vector<8x32xf32>
    %542 = math.exp %541 : vector<8x32xf32>
    %cst_247 = arith.constant 1.000000e+00 : f32
    %543 = vector.broadcast %cst_247 : f32 to vector<8x32xf32>
    %544 = arith.addf %543, %542 : vector<8x32xf32>
    %545 = arith.divf %543, %544 : vector<8x32xf32>
    %546 = arith.negf %537 : vector<8x32xf32>
    %547 = math.exp %546 : vector<8x32xf32>
    %cst_248 = arith.constant 1.000000e+00 : f32
    %548 = vector.broadcast %cst_248 : f32 to vector<8x32xf32>
    %549 = arith.addf %548, %547 : vector<8x32xf32>
    %550 = arith.divf %548, %549 : vector<8x32xf32>
    %551 = math.tanh %540 : vector<8x32xf32>
    %552 = arith.mulf %545, %448 : vector<8x32xf32>
    %553 = arith.mulf %92, %551 : vector<8x32xf32>
    %554 = arith.addf %552, %553 : vector<8x32xf32>
    %555 = math.tanh %554 : vector<8x32xf32>
    %556 = arith.mulf %550, %555 : vector<8x32xf32>
    %cst_249 = arith.constant dense<0.000000e+00> : vector<8x32xf32>
    %557 = tpu.matmul %556, %140, %cst_249 {dimension_numbers = #tpu.dot_dimension_numbers<[1], [0], [0], [1], [0, 0, 1, 1], [], []>} : vector<8x32xf32>, vector<32x32xf32>, vector<8x32xf32> -> vector<8x32xf32>
    %558 = arith.addf %557, %148 : vector<8x32xf32>
    %cst_250 = arith.constant dense<0.000000e+00> : vector<8x32xf32>
    %559 = tpu.matmul %478, %134, %cst_250 {dimension_numbers = #tpu.dot_dimension_numbers<[1], [0], [0], [1], [0, 0, 1, 1], [], []>} : vector<8x32xf32>, vector<32x32xf32>, vector<8x32xf32> -> vector<8x32xf32>
    %560 = arith.addf %558, %559 : vector<8x32xf32>
    %cst_251 = arith.constant dense<0.000000e+00> : vector<8x32xf32>
    %561 = tpu.matmul %556, %142, %cst_251 {dimension_numbers = #tpu.dot_dimension_numbers<[1], [0], [0], [1], [0, 0, 1, 1], [], []>} : vector<8x32xf32>, vector<32x32xf32>, vector<8x32xf32> -> vector<8x32xf32>
    %562 = arith.addf %561, %152 : vector<8x32xf32>
    %cst_252 = arith.constant dense<0.000000e+00> : vector<8x32xf32>
    %563 = tpu.matmul %478, %136, %cst_252 {dimension_numbers = #tpu.dot_dimension_numbers<[1], [0], [0], [1], [0, 0, 1, 1], [], []>} : vector<8x32xf32>, vector<32x32xf32>, vector<8x32xf32> -> vector<8x32xf32>
    %564 = arith.addf %562, %563 : vector<8x32xf32>
    %cst_253 = arith.constant dense<0.000000e+00> : vector<8x32xf32>
    %565 = tpu.matmul %556, %144, %cst_253 {dimension_numbers = #tpu.dot_dimension_numbers<[1], [0], [0], [1], [0, 0, 1, 1], [], []>} : vector<8x32xf32>, vector<32x32xf32>, vector<8x32xf32> -> vector<8x32xf32>
    %566 = arith.addf %565, %156 : vector<8x32xf32>
    %cst_254 = arith.constant dense<0.000000e+00> : vector<8x32xf32>
    %567 = tpu.matmul %478, %138, %cst_254 {dimension_numbers = #tpu.dot_dimension_numbers<[1], [0], [0], [1], [0, 0, 1, 1], [], []>} : vector<8x32xf32>, vector<32x32xf32>, vector<8x32xf32> -> vector<8x32xf32>
    %568 = arith.addf %566, %567 : vector<8x32xf32>
    %569 = arith.negf %560 : vector<8x32xf32>
    %570 = math.exp %569 : vector<8x32xf32>
    %cst_255 = arith.constant 1.000000e+00 : f32
    %571 = vector.broadcast %cst_255 : f32 to vector<8x32xf32>
    %572 = arith.addf %571, %570 : vector<8x32xf32>
    %573 = arith.divf %571, %572 : vector<8x32xf32>
    %574 = arith.negf %564 : vector<8x32xf32>
    %575 = math.exp %574 : vector<8x32xf32>
    %cst_256 = arith.constant 1.000000e+00 : f32
    %576 = vector.broadcast %cst_256 : f32 to vector<8x32xf32>
    %577 = arith.addf %576, %575 : vector<8x32xf32>
    %578 = arith.divf %576, %577 : vector<8x32xf32>
    %579 = math.tanh %568 : vector<8x32xf32>
    %580 = arith.mulf %573, %476 : vector<8x32xf32>
    %581 = arith.mulf %104, %579 : vector<8x32xf32>
    %582 = arith.addf %580, %581 : vector<8x32xf32>
    %583 = math.tanh %582 : vector<8x32xf32>
    %584 = arith.mulf %578, %583 : vector<8x32xf32>
    %585 = vector.extract_strided_slice %32 {offsets = [32, 0], sizes = [8, 32], strides = [1, 1]} : vector<64x32xf32> to vector<8x32xf32>
    %cst_257 = arith.constant dense<0.000000e+00> : vector<8x32xf32>
    %586 = tpu.matmul %503, %48, %cst_257 {dimension_numbers = #tpu.dot_dimension_numbers<[1], [0], [0], [1], [0, 0, 1, 1], [], []>} : vector<8x32xf32>, vector<32x32xf32>, vector<8x32xf32> -> vector<8x32xf32>
    %587 = arith.addf %585, %586 : vector<8x32xf32>
    %588 = vector.extract_strided_slice %39 {offsets = [32, 0], sizes = [8, 32], strides = [1, 1]} : vector<64x32xf32> to vector<8x32xf32>
    %cst_258 = arith.constant dense<0.000000e+00> : vector<8x32xf32>
    %589 = tpu.matmul %503, %50, %cst_258 {dimension_numbers = #tpu.dot_dimension_numbers<[1], [0], [0], [1], [0, 0, 1, 1], [], []>} : vector<8x32xf32>, vector<32x32xf32>, vector<8x32xf32> -> vector<8x32xf32>
    %590 = arith.addf %588, %589 : vector<8x32xf32>
    %591 = vector.extract_strided_slice %46 {offsets = [32, 0], sizes = [8, 32], strides = [1, 1]} : vector<64x32xf32> to vector<8x32xf32>
    %cst_259 = arith.constant dense<0.000000e+00> : vector<8x32xf32>
    %592 = tpu.matmul %503, %52, %cst_259 {dimension_numbers = #tpu.dot_dimension_numbers<[1], [0], [0], [1], [0, 0, 1, 1], [], []>} : vector<8x32xf32>, vector<32x32xf32>, vector<8x32xf32> -> vector<8x32xf32>
    %593 = arith.addf %591, %592 : vector<8x32xf32>
    %594 = arith.negf %587 : vector<8x32xf32>
    %595 = math.exp %594 : vector<8x32xf32>
    %cst_260 = arith.constant 1.000000e+00 : f32
    %596 = vector.broadcast %cst_260 : f32 to vector<8x32xf32>
    %597 = arith.addf %596, %595 : vector<8x32xf32>
    %598 = arith.divf %596, %597 : vector<8x32xf32>
    %599 = arith.negf %590 : vector<8x32xf32>
    %600 = math.exp %599 : vector<8x32xf32>
    %cst_261 = arith.constant 1.000000e+00 : f32
    %601 = vector.broadcast %cst_261 : f32 to vector<8x32xf32>
    %602 = arith.addf %601, %600 : vector<8x32xf32>
    %603 = arith.divf %601, %602 : vector<8x32xf32>
    %604 = math.tanh %593 : vector<8x32xf32>
    %605 = arith.mulf %598, %501 : vector<8x32xf32>
    %606 = arith.mulf %12, %604 : vector<8x32xf32>
    %607 = arith.addf %605, %606 : vector<8x32xf32>
    %608 = math.tanh %607 : vector<8x32xf32>
    %609 = arith.mulf %603, %608 : vector<8x32xf32>
    %cst_262 = arith.constant dense<0.000000e+00> : vector<8x32xf32>
    %610 = tpu.matmul %609, %60, %cst_262 {dimension_numbers = #tpu.dot_dimension_numbers<[1], [0], [0], [1], [0, 0, 1, 1], [], []>} : vector<8x32xf32>, vector<32x32xf32>, vector<8x32xf32> -> vector<8x32xf32>
    %611 = arith.addf %610, %68 : vector<8x32xf32>
    %cst_263 = arith.constant dense<0.000000e+00> : vector<8x32xf32>
    %612 = tpu.matmul %531, %54, %cst_263 {dimension_numbers = #tpu.dot_dimension_numbers<[1], [0], [0], [1], [0, 0, 1, 1], [], []>} : vector<8x32xf32>, vector<32x32xf32>, vector<8x32xf32> -> vector<8x32xf32>
    %613 = arith.addf %611, %612 : vector<8x32xf32>
    %cst_264 = arith.constant dense<0.000000e+00> : vector<8x32xf32>
    %614 = tpu.matmul %609, %62, %cst_264 {dimension_numbers = #tpu.dot_dimension_numbers<[1], [0], [0], [1], [0, 0, 1, 1], [], []>} : vector<8x32xf32>, vector<32x32xf32>, vector<8x32xf32> -> vector<8x32xf32>
    %615 = arith.addf %614, %72 : vector<8x32xf32>
    %cst_265 = arith.constant dense<0.000000e+00> : vector<8x32xf32>
    %616 = tpu.matmul %531, %56, %cst_265 {dimension_numbers = #tpu.dot_dimension_numbers<[1], [0], [0], [1], [0, 0, 1, 1], [], []>} : vector<8x32xf32>, vector<32x32xf32>, vector<8x32xf32> -> vector<8x32xf32>
    %617 = arith.addf %615, %616 : vector<8x32xf32>
    %cst_266 = arith.constant dense<0.000000e+00> : vector<8x32xf32>
    %618 = tpu.matmul %609, %64, %cst_266 {dimension_numbers = #tpu.dot_dimension_numbers<[1], [0], [0], [1], [0, 0, 1, 1], [], []>} : vector<8x32xf32>, vector<32x32xf32>, vector<8x32xf32> -> vector<8x32xf32>
    %619 = arith.addf %618, %76 : vector<8x32xf32>
    %cst_267 = arith.constant dense<0.000000e+00> : vector<8x32xf32>
    %620 = tpu.matmul %531, %58, %cst_267 {dimension_numbers = #tpu.dot_dimension_numbers<[1], [0], [0], [1], [0, 0, 1, 1], [], []>} : vector<8x32xf32>, vector<32x32xf32>, vector<8x32xf32> -> vector<8x32xf32>
    %621 = arith.addf %619, %620 : vector<8x32xf32>
    %622 = arith.negf %613 : vector<8x32xf32>
    %623 = math.exp %622 : vector<8x32xf32>
    %cst_268 = arith.constant 1.000000e+00 : f32
    %624 = vector.broadcast %cst_268 : f32 to vector<8x32xf32>
    %625 = arith.addf %624, %623 : vector<8x32xf32>
    %626 = arith.divf %624, %625 : vector<8x32xf32>
    %627 = arith.negf %617 : vector<8x32xf32>
    %628 = math.exp %627 : vector<8x32xf32>
    %cst_269 = arith.constant 1.000000e+00 : f32
    %629 = vector.broadcast %cst_269 : f32 to vector<8x32xf32>
    %630 = arith.addf %629, %628 : vector<8x32xf32>
    %631 = arith.divf %629, %630 : vector<8x32xf32>
    %632 = math.tanh %621 : vector<8x32xf32>
    %633 = arith.mulf %626, %529 : vector<8x32xf32>
    %634 = arith.mulf %24, %632 : vector<8x32xf32>
    %635 = arith.addf %633, %634 : vector<8x32xf32>
    %636 = math.tanh %635 : vector<8x32xf32>
    %637 = arith.mulf %631, %636 : vector<8x32xf32>
    %638 = vector.extract_strided_slice %32 {offsets = [40, 0], sizes = [8, 32], strides = [1, 1]} : vector<64x32xf32> to vector<8x32xf32>
    %cst_270 = arith.constant dense<0.000000e+00> : vector<8x32xf32>
    %639 = tpu.matmul %609, %48, %cst_270 {dimension_numbers = #tpu.dot_dimension_numbers<[1], [0], [0], [1], [0, 0, 1, 1], [], []>} : vector<8x32xf32>, vector<32x32xf32>, vector<8x32xf32> -> vector<8x32xf32>
    %640 = arith.addf %638, %639 : vector<8x32xf32>
    %641 = vector.extract_strided_slice %39 {offsets = [40, 0], sizes = [8, 32], strides = [1, 1]} : vector<64x32xf32> to vector<8x32xf32>
    %cst_271 = arith.constant dense<0.000000e+00> : vector<8x32xf32>
    %642 = tpu.matmul %609, %50, %cst_271 {dimension_numbers = #tpu.dot_dimension_numbers<[1], [0], [0], [1], [0, 0, 1, 1], [], []>} : vector<8x32xf32>, vector<32x32xf32>, vector<8x32xf32> -> vector<8x32xf32>
    %643 = arith.addf %641, %642 : vector<8x32xf32>
    %644 = vector.extract_strided_slice %46 {offsets = [40, 0], sizes = [8, 32], strides = [1, 1]} : vector<64x32xf32> to vector<8x32xf32>
    %cst_272 = arith.constant dense<0.000000e+00> : vector<8x32xf32>
    %645 = tpu.matmul %609, %52, %cst_272 {dimension_numbers = #tpu.dot_dimension_numbers<[1], [0], [0], [1], [0, 0, 1, 1], [], []>} : vector<8x32xf32>, vector<32x32xf32>, vector<8x32xf32> -> vector<8x32xf32>
    %646 = arith.addf %644, %645 : vector<8x32xf32>
    %647 = arith.negf %640 : vector<8x32xf32>
    %648 = math.exp %647 : vector<8x32xf32>
    %cst_273 = arith.constant 1.000000e+00 : f32
    %649 = vector.broadcast %cst_273 : f32 to vector<8x32xf32>
    %650 = arith.addf %649, %648 : vector<8x32xf32>
    %651 = arith.divf %649, %650 : vector<8x32xf32>
    %652 = arith.negf %643 : vector<8x32xf32>
    %653 = math.exp %652 : vector<8x32xf32>
    %cst_274 = arith.constant 1.000000e+00 : f32
    %654 = vector.broadcast %cst_274 : f32 to vector<8x32xf32>
    %655 = arith.addf %654, %653 : vector<8x32xf32>
    %656 = arith.divf %654, %655 : vector<8x32xf32>
    %657 = math.tanh %646 : vector<8x32xf32>
    %658 = arith.mulf %651, %607 : vector<8x32xf32>
    %659 = arith.mulf %12, %657 : vector<8x32xf32>
    %660 = arith.addf %658, %659 : vector<8x32xf32>
    %661 = math.tanh %660 : vector<8x32xf32>
    %662 = arith.mulf %656, %661 : vector<8x32xf32>
    %cst_275 = arith.constant dense<0.000000e+00> : vector<8x32xf32>
    %663 = tpu.matmul %662, %60, %cst_275 {dimension_numbers = #tpu.dot_dimension_numbers<[1], [0], [0], [1], [0, 0, 1, 1], [], []>} : vector<8x32xf32>, vector<32x32xf32>, vector<8x32xf32> -> vector<8x32xf32>
    %664 = arith.addf %663, %68 : vector<8x32xf32>
    %cst_276 = arith.constant dense<0.000000e+00> : vector<8x32xf32>
    %665 = tpu.matmul %637, %54, %cst_276 {dimension_numbers = #tpu.dot_dimension_numbers<[1], [0], [0], [1], [0, 0, 1, 1], [], []>} : vector<8x32xf32>, vector<32x32xf32>, vector<8x32xf32> -> vector<8x32xf32>
    %666 = arith.addf %664, %665 : vector<8x32xf32>
    %cst_277 = arith.constant dense<0.000000e+00> : vector<8x32xf32>
    %667 = tpu.matmul %662, %62, %cst_277 {dimension_numbers = #tpu.dot_dimension_numbers<[1], [0], [0], [1], [0, 0, 1, 1], [], []>} : vector<8x32xf32>, vector<32x32xf32>, vector<8x32xf32> -> vector<8x32xf32>
    %668 = arith.addf %667, %72 : vector<8x32xf32>
    %cst_278 = arith.constant dense<0.000000e+00> : vector<8x32xf32>
    %669 = tpu.matmul %637, %56, %cst_278 {dimension_numbers = #tpu.dot_dimension_numbers<[1], [0], [0], [1], [0, 0, 1, 1], [], []>} : vector<8x32xf32>, vector<32x32xf32>, vector<8x32xf32> -> vector<8x32xf32>
    %670 = arith.addf %668, %669 : vector<8x32xf32>
    %cst_279 = arith.constant dense<0.000000e+00> : vector<8x32xf32>
    %671 = tpu.matmul %662, %64, %cst_279 {dimension_numbers = #tpu.dot_dimension_numbers<[1], [0], [0], [1], [0, 0, 1, 1], [], []>} : vector<8x32xf32>, vector<32x32xf32>, vector<8x32xf32> -> vector<8x32xf32>
    %672 = arith.addf %671, %76 : vector<8x32xf32>
    %cst_280 = arith.constant dense<0.000000e+00> : vector<8x32xf32>
    %673 = tpu.matmul %637, %58, %cst_280 {dimension_numbers = #tpu.dot_dimension_numbers<[1], [0], [0], [1], [0, 0, 1, 1], [], []>} : vector<8x32xf32>, vector<32x32xf32>, vector<8x32xf32> -> vector<8x32xf32>
    %674 = arith.addf %672, %673 : vector<8x32xf32>
    %675 = arith.negf %666 : vector<8x32xf32>
    %676 = math.exp %675 : vector<8x32xf32>
    %cst_281 = arith.constant 1.000000e+00 : f32
    %677 = vector.broadcast %cst_281 : f32 to vector<8x32xf32>
    %678 = arith.addf %677, %676 : vector<8x32xf32>
    %679 = arith.divf %677, %678 : vector<8x32xf32>
    %680 = arith.negf %670 : vector<8x32xf32>
    %681 = math.exp %680 : vector<8x32xf32>
    %cst_282 = arith.constant 1.000000e+00 : f32
    %682 = vector.broadcast %cst_282 : f32 to vector<8x32xf32>
    %683 = arith.addf %682, %681 : vector<8x32xf32>
    %684 = arith.divf %682, %683 : vector<8x32xf32>
    %685 = math.tanh %674 : vector<8x32xf32>
    %686 = arith.mulf %679, %635 : vector<8x32xf32>
    %687 = arith.mulf %24, %685 : vector<8x32xf32>
    %688 = arith.addf %686, %687 : vector<8x32xf32>
    %689 = math.tanh %688 : vector<8x32xf32>
    %690 = arith.mulf %684, %689 : vector<8x32xf32>
    %691 = vector.extract_strided_slice %32 {offsets = [48, 0], sizes = [8, 32], strides = [1, 1]} : vector<64x32xf32> to vector<8x32xf32>
    %cst_283 = arith.constant dense<0.000000e+00> : vector<8x32xf32>
    %692 = tpu.matmul %662, %48, %cst_283 {dimension_numbers = #tpu.dot_dimension_numbers<[1], [0], [0], [1], [0, 0, 1, 1], [], []>} : vector<8x32xf32>, vector<32x32xf32>, vector<8x32xf32> -> vector<8x32xf32>
    %693 = arith.addf %691, %692 : vector<8x32xf32>
    %694 = vector.extract_strided_slice %39 {offsets = [48, 0], sizes = [8, 32], strides = [1, 1]} : vector<64x32xf32> to vector<8x32xf32>
    %cst_284 = arith.constant dense<0.000000e+00> : vector<8x32xf32>
    %695 = tpu.matmul %662, %50, %cst_284 {dimension_numbers = #tpu.dot_dimension_numbers<[1], [0], [0], [1], [0, 0, 1, 1], [], []>} : vector<8x32xf32>, vector<32x32xf32>, vector<8x32xf32> -> vector<8x32xf32>
    %696 = arith.addf %694, %695 : vector<8x32xf32>
    %697 = vector.extract_strided_slice %46 {offsets = [48, 0], sizes = [8, 32], strides = [1, 1]} : vector<64x32xf32> to vector<8x32xf32>
    %cst_285 = arith.constant dense<0.000000e+00> : vector<8x32xf32>
    %698 = tpu.matmul %662, %52, %cst_285 {dimension_numbers = #tpu.dot_dimension_numbers<[1], [0], [0], [1], [0, 0, 1, 1], [], []>} : vector<8x32xf32>, vector<32x32xf32>, vector<8x32xf32> -> vector<8x32xf32>
    %699 = arith.addf %697, %698 : vector<8x32xf32>
    %700 = arith.negf %693 : vector<8x32xf32>
    %701 = math.exp %700 : vector<8x32xf32>
    %cst_286 = arith.constant 1.000000e+00 : f32
    %702 = vector.broadcast %cst_286 : f32 to vector<8x32xf32>
    %703 = arith.addf %702, %701 : vector<8x32xf32>
    %704 = arith.divf %702, %703 : vector<8x32xf32>
    %705 = arith.negf %696 : vector<8x32xf32>
    %706 = math.exp %705 : vector<8x32xf32>
    %cst_287 = arith.constant 1.000000e+00 : f32
    %707 = vector.broadcast %cst_287 : f32 to vector<8x32xf32>
    %708 = arith.addf %707, %706 : vector<8x32xf32>
    %709 = arith.divf %707, %708 : vector<8x32xf32>
    %710 = math.tanh %699 : vector<8x32xf32>
    %711 = arith.mulf %704, %660 : vector<8x32xf32>
    %712 = arith.mulf %12, %710 : vector<8x32xf32>
    %713 = arith.addf %711, %712 : vector<8x32xf32>
    %714 = math.tanh %713 : vector<8x32xf32>
    %715 = arith.mulf %709, %714 : vector<8x32xf32>
    %cst_288 = arith.constant dense<0.000000e+00> : vector<8x32xf32>
    %716 = tpu.matmul %715, %60, %cst_288 {dimension_numbers = #tpu.dot_dimension_numbers<[1], [0], [0], [1], [0, 0, 1, 1], [], []>} : vector<8x32xf32>, vector<32x32xf32>, vector<8x32xf32> -> vector<8x32xf32>
    %717 = arith.addf %716, %68 : vector<8x32xf32>
    %cst_289 = arith.constant dense<0.000000e+00> : vector<8x32xf32>
    %718 = tpu.matmul %690, %54, %cst_289 {dimension_numbers = #tpu.dot_dimension_numbers<[1], [0], [0], [1], [0, 0, 1, 1], [], []>} : vector<8x32xf32>, vector<32x32xf32>, vector<8x32xf32> -> vector<8x32xf32>
    %719 = arith.addf %717, %718 : vector<8x32xf32>
    %cst_290 = arith.constant dense<0.000000e+00> : vector<8x32xf32>
    %720 = tpu.matmul %715, %62, %cst_290 {dimension_numbers = #tpu.dot_dimension_numbers<[1], [0], [0], [1], [0, 0, 1, 1], [], []>} : vector<8x32xf32>, vector<32x32xf32>, vector<8x32xf32> -> vector<8x32xf32>
    %721 = arith.addf %720, %72 : vector<8x32xf32>
    %cst_291 = arith.constant dense<0.000000e+00> : vector<8x32xf32>
    %722 = tpu.matmul %690, %56, %cst_291 {dimension_numbers = #tpu.dot_dimension_numbers<[1], [0], [0], [1], [0, 0, 1, 1], [], []>} : vector<8x32xf32>, vector<32x32xf32>, vector<8x32xf32> -> vector<8x32xf32>
    %723 = arith.addf %721, %722 : vector<8x32xf32>
    %cst_292 = arith.constant dense<0.000000e+00> : vector<8x32xf32>
    %724 = tpu.matmul %715, %64, %cst_292 {dimension_numbers = #tpu.dot_dimension_numbers<[1], [0], [0], [1], [0, 0, 1, 1], [], []>} : vector<8x32xf32>, vector<32x32xf32>, vector<8x32xf32> -> vector<8x32xf32>
    %725 = arith.addf %724, %76 : vector<8x32xf32>
    %cst_293 = arith.constant dense<0.000000e+00> : vector<8x32xf32>
    %726 = tpu.matmul %690, %58, %cst_293 {dimension_numbers = #tpu.dot_dimension_numbers<[1], [0], [0], [1], [0, 0, 1, 1], [], []>} : vector<8x32xf32>, vector<32x32xf32>, vector<8x32xf32> -> vector<8x32xf32>
    %727 = arith.addf %725, %726 : vector<8x32xf32>
    %728 = arith.negf %719 : vector<8x32xf32>
    %729 = math.exp %728 : vector<8x32xf32>
    %cst_294 = arith.constant 1.000000e+00 : f32
    %730 = vector.broadcast %cst_294 : f32 to vector<8x32xf32>
    %731 = arith.addf %730, %729 : vector<8x32xf32>
    %732 = arith.divf %730, %731 : vector<8x32xf32>
    %733 = arith.negf %723 : vector<8x32xf32>
    %734 = math.exp %733 : vector<8x32xf32>
    %cst_295 = arith.constant 1.000000e+00 : f32
    %735 = vector.broadcast %cst_295 : f32 to vector<8x32xf32>
    %736 = arith.addf %735, %734 : vector<8x32xf32>
    %737 = arith.divf %735, %736 : vector<8x32xf32>
    %738 = math.tanh %727 : vector<8x32xf32>
    %739 = arith.mulf %732, %688 : vector<8x32xf32>
    %740 = arith.mulf %24, %738 : vector<8x32xf32>
    %741 = arith.addf %739, %740 : vector<8x32xf32>
    %742 = math.tanh %741 : vector<8x32xf32>
    %743 = arith.mulf %737, %742 : vector<8x32xf32>
    %744 = vector.extract_strided_slice %32 {offsets = [56, 0], sizes = [8, 32], strides = [1, 1]} : vector<64x32xf32> to vector<8x32xf32>
    %cst_296 = arith.constant dense<0.000000e+00> : vector<8x32xf32>
    %745 = tpu.matmul %715, %48, %cst_296 {dimension_numbers = #tpu.dot_dimension_numbers<[1], [0], [0], [1], [0, 0, 1, 1], [], []>} : vector<8x32xf32>, vector<32x32xf32>, vector<8x32xf32> -> vector<8x32xf32>
    %746 = arith.addf %744, %745 : vector<8x32xf32>
    %747 = vector.extract_strided_slice %39 {offsets = [56, 0], sizes = [8, 32], strides = [1, 1]} : vector<64x32xf32> to vector<8x32xf32>
    %cst_297 = arith.constant dense<0.000000e+00> : vector<8x32xf32>
    %748 = tpu.matmul %715, %50, %cst_297 {dimension_numbers = #tpu.dot_dimension_numbers<[1], [0], [0], [1], [0, 0, 1, 1], [], []>} : vector<8x32xf32>, vector<32x32xf32>, vector<8x32xf32> -> vector<8x32xf32>
    %749 = arith.addf %747, %748 : vector<8x32xf32>
    %750 = vector.extract_strided_slice %46 {offsets = [56, 0], sizes = [8, 32], strides = [1, 1]} : vector<64x32xf32> to vector<8x32xf32>
    %cst_298 = arith.constant dense<0.000000e+00> : vector<8x32xf32>
    %751 = tpu.matmul %715, %52, %cst_298 {dimension_numbers = #tpu.dot_dimension_numbers<[1], [0], [0], [1], [0, 0, 1, 1], [], []>} : vector<8x32xf32>, vector<32x32xf32>, vector<8x32xf32> -> vector<8x32xf32>
    %752 = arith.addf %750, %751 : vector<8x32xf32>
    %753 = arith.negf %746 : vector<8x32xf32>
    %754 = math.exp %753 : vector<8x32xf32>
    %cst_299 = arith.constant 1.000000e+00 : f32
    %755 = vector.broadcast %cst_299 : f32 to vector<8x32xf32>
    %756 = arith.addf %755, %754 : vector<8x32xf32>
    %757 = arith.divf %755, %756 : vector<8x32xf32>
    %758 = arith.negf %749 : vector<8x32xf32>
    %759 = math.exp %758 : vector<8x32xf32>
    %cst_300 = arith.constant 1.000000e+00 : f32
    %760 = vector.broadcast %cst_300 : f32 to vector<8x32xf32>
    %761 = arith.addf %760, %759 : vector<8x32xf32>
    %762 = arith.divf %760, %761 : vector<8x32xf32>
    %763 = math.tanh %752 : vector<8x32xf32>
    %764 = arith.mulf %757, %713 : vector<8x32xf32>
    %765 = arith.mulf %12, %763 : vector<8x32xf32>
    %766 = arith.addf %764, %765 : vector<8x32xf32>
    %767 = math.tanh %766 : vector<8x32xf32>
    %768 = arith.mulf %762, %767 : vector<8x32xf32>
    %cst_301 = arith.constant dense<0.000000e+00> : vector<8x32xf32>
    %769 = tpu.matmul %768, %60, %cst_301 {dimension_numbers = #tpu.dot_dimension_numbers<[1], [0], [0], [1], [0, 0, 1, 1], [], []>} : vector<8x32xf32>, vector<32x32xf32>, vector<8x32xf32> -> vector<8x32xf32>
    %770 = arith.addf %769, %68 : vector<8x32xf32>
    %cst_302 = arith.constant dense<0.000000e+00> : vector<8x32xf32>
    %771 = tpu.matmul %743, %54, %cst_302 {dimension_numbers = #tpu.dot_dimension_numbers<[1], [0], [0], [1], [0, 0, 1, 1], [], []>} : vector<8x32xf32>, vector<32x32xf32>, vector<8x32xf32> -> vector<8x32xf32>
    %772 = arith.addf %770, %771 : vector<8x32xf32>
    %cst_303 = arith.constant dense<0.000000e+00> : vector<8x32xf32>
    %773 = tpu.matmul %768, %62, %cst_303 {dimension_numbers = #tpu.dot_dimension_numbers<[1], [0], [0], [1], [0, 0, 1, 1], [], []>} : vector<8x32xf32>, vector<32x32xf32>, vector<8x32xf32> -> vector<8x32xf32>
    %774 = arith.addf %773, %72 : vector<8x32xf32>
    %cst_304 = arith.constant dense<0.000000e+00> : vector<8x32xf32>
    %775 = tpu.matmul %743, %56, %cst_304 {dimension_numbers = #tpu.dot_dimension_numbers<[1], [0], [0], [1], [0, 0, 1, 1], [], []>} : vector<8x32xf32>, vector<32x32xf32>, vector<8x32xf32> -> vector<8x32xf32>
    %776 = arith.addf %774, %775 : vector<8x32xf32>
    %cst_305 = arith.constant dense<0.000000e+00> : vector<8x32xf32>
    %777 = tpu.matmul %768, %64, %cst_305 {dimension_numbers = #tpu.dot_dimension_numbers<[1], [0], [0], [1], [0, 0, 1, 1], [], []>} : vector<8x32xf32>, vector<32x32xf32>, vector<8x32xf32> -> vector<8x32xf32>
    %778 = arith.addf %777, %76 : vector<8x32xf32>
    %cst_306 = arith.constant dense<0.000000e+00> : vector<8x32xf32>
    %779 = tpu.matmul %743, %58, %cst_306 {dimension_numbers = #tpu.dot_dimension_numbers<[1], [0], [0], [1], [0, 0, 1, 1], [], []>} : vector<8x32xf32>, vector<32x32xf32>, vector<8x32xf32> -> vector<8x32xf32>
    %780 = arith.addf %778, %779 : vector<8x32xf32>
    %781 = arith.negf %772 : vector<8x32xf32>
    %782 = math.exp %781 : vector<8x32xf32>
    %cst_307 = arith.constant 1.000000e+00 : f32
    %783 = vector.broadcast %cst_307 : f32 to vector<8x32xf32>
    %784 = arith.addf %783, %782 : vector<8x32xf32>
    %785 = arith.divf %783, %784 : vector<8x32xf32>
    %786 = arith.negf %776 : vector<8x32xf32>
    %787 = math.exp %786 : vector<8x32xf32>
    %cst_308 = arith.constant 1.000000e+00 : f32
    %788 = vector.broadcast %cst_308 : f32 to vector<8x32xf32>
    %789 = arith.addf %788, %787 : vector<8x32xf32>
    %790 = arith.divf %788, %789 : vector<8x32xf32>
    %791 = math.tanh %780 : vector<8x32xf32>
    %792 = arith.mulf %785, %741 : vector<8x32xf32>
    %793 = arith.mulf %24, %791 : vector<8x32xf32>
    %794 = arith.addf %792, %793 : vector<8x32xf32>
    %795 = math.tanh %794 : vector<8x32xf32>
    %796 = arith.mulf %790, %795 : vector<8x32xf32>
    %cst_309 = arith.constant 0.000000e+00 : f32
    %797 = vector.broadcast %cst_309 : f32 to vector<8x32xf32>
    %798 = arith.maximumf %796, %797 : vector<8x32xf32>
    %cst_310 = arith.constant 0.000000e+00 : f32
    %799 = vector.broadcast %cst_310 : f32 to vector<8x32xf32>
    %800 = arith.maximumf %584, %799 : vector<8x32xf32>
    %c0_311 = arith.constant 0 : index
    %c0_312 = arith.constant 0 : index
    %801 = vector.load %arg17[%c0_311, %c0_312] : memref<32x64xf32, #tpu.memory_space<vmem>>, vector<32x64xf32>
    %cst_313 = arith.constant dense<0.000000e+00> : vector<8x64xf32>
    %802 = tpu.matmul %798, %801, %cst_313 {dimension_numbers = #tpu.dot_dimension_numbers<[1], [0], [0], [1], [0, 0, 1, 1], [], []>} : vector<8x32xf32>, vector<32x64xf32>, vector<8x64xf32> -> vector<8x64xf32>
    %c0_314 = arith.constant 0 : index
    %c0_315 = arith.constant 0 : index
    %803 = vector.load %arg18[%c0_314, %c0_315] : memref<32x64xf32, #tpu.memory_space<vmem>>, vector<32x64xf32>
    %cst_316 = arith.constant dense<0.000000e+00> : vector<8x64xf32>
    %804 = tpu.matmul %800, %803, %cst_316 {dimension_numbers = #tpu.dot_dimension_numbers<[1], [0], [0], [1], [0, 0, 1, 1], [], []>} : vector<8x32xf32>, vector<32x64xf32>, vector<8x64xf32> -> vector<8x64xf32>
    %805 = arith.addf %802, %804 : vector<8x64xf32>
    %c0_317 = arith.constant 0 : index
    %c0_318 = arith.constant 0 : index
    %806 = vector.load %arg19[%c0_317, %c0_318] : memref<1x64xf32, #tpu.memory_space<vmem>>, vector<1x64xf32>
    %807 = vector.broadcast %806 : vector<1x64xf32> to vector<8x64xf32>
    %808 = arith.addf %805, %807 : vector<8x64xf32>
    %cst_319 = arith.constant 0.000000e+00 : f32
    %809 = vector.broadcast %cst_319 : f32 to vector<8x64xf32>
    %810 = arith.maximumf %808, %809 : vector<8x64xf32>
    %c0_320 = arith.constant 0 : index
    %c0_321 = arith.constant 0 : index
    %811 = vector.load %arg20[%c0_320, %c0_321] : memref<64x4xf32, #tpu.memory_space<vmem>>, vector<64x4xf32>
    %cst_322 = arith.constant dense<0.000000e+00> : vector<8x4xf32>
    %812 = tpu.matmul %810, %811, %cst_322 {dimension_numbers = #tpu.dot_dimension_numbers<[1], [0], [0], [1], [0, 0, 1, 1], [], []>} : vector<8x64xf32>, vector<64x4xf32>, vector<8x4xf32> -> vector<8x4xf32>
    %c0_323 = arith.constant 0 : index
    %c0_324 = arith.constant 0 : index
    %813 = vector.load %arg21[%c0_323, %c0_324] : memref<1x4xf32, #tpu.memory_space<vmem>>, vector<1x4xf32>
    %814 = vector.broadcast %813 : vector<1x4xf32> to vector<8x4xf32>
    %815 = arith.addf %812, %814 : vector<8x4xf32>
    %c0_325 = arith.constant 0 : index
    %c0_326 = arith.constant 0 : index
    %816 = vector.load %arg22[%c0_325, %c0_326] : memref<8x4xf32, #tpu.memory_space<vmem>>, vector<8x4xf32>
    tpu.vector_store %arg22[%c0_325, %c0_326], %815 {strides = array<i32>} : memref<8x4xf32, #tpu.memory_space<vmem>>, vector<8x4xf32>,
    return
  }
}

</mosaic_0001>

<bundles_post_ra>
// kernel: tpu_custom_call.1
= control target key start
LH: loop header
LB: loop body
LE: loop exit
PB: predicated region body
PF: predicated region fallthrough
CT: control target
= control target key end

     0   :  { %s15152_s0 = inlined_call_operand.hbm [shape: f32[8,6], index: 0, kind: input, shape index: {}]   ;;  %s15153_s1 = inlined_call_operand.vmem [shape: f32[64,5], index: 1, kind: input, shape index: {}]   ;;  %s15154_s2 = inlined_call_operand.vmem [shape: f32[2,6,32], index: 2, kind: input, shape index: {}]   ;;  %s15155_s3 = inlined_call_operand.hbm [shape: f32[2,1,32], index: 3, kind: input, shape index: {}]   ;;  %s15156_s4 = inlined_call_operand.vmem [shape: f32[3,5,32], index: 4, kind: input, shape index: {}]   ;;  %s15157_s5 = inlined_call_operand.hbm [shape: f32[3,1,32], index: 5, kind: input, shape index: {}]   ;;  %s15158_s6 = inlined_call_operand.vmem [shape: f32[6,32,32], index: 6, kind: input, shape index: {}]   ;;  %s15159_s7 = inlined_call_operand.vmem [shape: f32[3,32,32], index: 7, kind: input, shape index: {}]   ;;  %s15160_s8 = inlined_call_operand.hbm [shape: f32[3,1,32], index: 8, kind: input, shape index: {}]   ;;  %s15161_s9 = inlined_call_operand.vmem [shape: f32[32,3], index: 9, kind: input, shape index: {}]   ;;  %s15162_s10 = inlined_call_operand.vmem [shape: f32[2,6,32], index: 10, kind: input, shape index: {}]   ;;  %s15163_s11 = inlined_call_operand.hbm [shape: f32[2,1,32], index: 11, kind: input, shape index: {}]   ;;  %s15164_s12 = inlined_call_operand.hbm [shape: f32[3,3,32], index: 12, kind: input, shape index: {}]   ;;  %s15165_s13 = inlined_call_operand.hbm [shape: f32[3,1,32], index: 13, kind: input, shape index: {}]   ;;  %s15166_s14 = inlined_call_operand.hbm [shape: f32[6,32,32], index: 14, kind: input, shape index: {}]   ;;  %s15167_s15 = inlined_call_operand.hbm [shape: f32[3,32,32], index: 15, kind: input, shape index: {}]   ;;  %s15168_s16 = inlined_call_operand.vmem [shape: f32[3,1,32], index: 16, kind: input, shape index: {}]   ;;  %s15169_s17 = inlined_call_operand.vmem [shape: f32[32,64], index: 17, kind: input, shape index: {}]   ;;  %s15170_s18 = inlined_call_operand.hbm [shape: f32[32,64], index: 18, kind: input, shape index: {}]   ;;  %s15171_s19 = inlined_call_operand.vmem [shape: f32[1,64], index: 19, kind: input, shape index: {}]   ;;  %s15172_s20 = inlined_call_operand.vmem [shape: f32[64,4], index: 20, kind: input, shape index: {}]   ;;  %s15173_s21 = inlined_call_operand.vmem [shape: f32[1,4], index: 21, kind: input, shape index: {}]   ;;  %s15174_s22 = inlined_call_operand.vmem [shape: f32[8,4], index: 22, kind: output, shape index: {}]  }
   0x1   :  { %15206 = sst [smem:[#allocation58_spill]] %s15152_s0 }
   0x2   :  { %15207 = sst [smem:[#allocation59_spill]] %s15153_s1 }
   0x3   :  { %15208 = sst [smem:[#allocation60_spill]] %s15154_s2 }
   0x4   :  { %15209 = sst [smem:[#allocation61_spill]] %s15155_s3 }
   0x5   :  { %15210 = sst [smem:[#allocation62_spill]] %s15156_s4 }
   0x6   :  { %15211 = sst [smem:[#allocation63_spill]] %s15157_s5 }
   0x7   :  { %15212 = sst [smem:[#allocation64_spill]] %s15158_s6 }
   0x8   :  { %15213 = sst [smem:[#allocation65_spill]] %s15173_s21 }
   0x9   :  { %15214 = sst [smem:[#allocation66_spill]] %s15174_s22 }
   0xa   :  { %27 = vsyncpa [#allocation3], 0 }
   0xb   :  { %28 = vsyncpa [#allocation5], 0 }
   0xc   :  { %29 = vsyncpa [#allocation8], 0 }
   0xd   :  { %30 = vsyncpa [#allocation11], 0 }
   0xe   :  { %31 = vsyncpa [#allocation14], 0 }
   0xf   :  { %32 = vsyncpa [#allocation17], 0  ;;  %s13313_s3 = smov [#allocation4]   ;;  %s15215_s4 = sld [smem:[#allocation61_spill]] }
  0x10   :  { %s52_s28 = sshll.u32 %s13313_s3, 4  ;;  %s53_s28 = int_to_ptr.vmem [resolvable:$true] %s52_s28 }
  0x15   :  { %s13081_s0 = scalar_lea.hbm %s15215_s4, 32 }
  0x16   :  { %p13082_p0 = scmp.ne.s32.totalorder %s15215_s4, %s13081_s0  ;;  %p13085_p1 = scmp.lt.u32.totalorder %s13081_s0, %s15215_s4 }
  0x18   :  { %p13087_p2 = pnand %p13085_p1, %p13082_p0 }
  0x1a   :  { %13090 = shalt.err (!%p13087_p2)
}
  0x1b   :  { %s13091_s6 = scalar_lea.vmem %s53_s28, 32  ;;  %p13096_p4 = scmp.lt.s32.totalorder %s53_s28, %s53_s28 }
  0x1c   :  { %p13092_p3 = scmp.ne.s32.totalorder %s53_s28, %s13091_s6  ;;  %p13097_p5 = scmp.lt.s32.totalorder %s13091_s6, %s13091_s6 }
  0x1e   :  { %p13098_p6 = por %p13097_p5, %p13096_p4 }
  0x20   :  { %p13099_p7 = pnand %p13098_p6, %p13092_p3 }
  0x22   :  { %13102 = shalt.err (!%p13099_p7)
}
  0x23   :  { %s13314_s25 = smov 16   ;;  %s13315_s26 = smov 1  }
  0x24   :  { %58 = dma.hbm_to_vmem [thread:$0]  %s15215_s4, 32, %s53_s28, [#allocation5], %s13314_s25, %s13314_s25, %s13315_s26  }
  0x25   :  { %s13316_s3 = smov [#allocation7]   ;;  %s13317_s30 = smov [#allocation10]  }
  0x26   :  { %s82_s29 = sshll.u32 %s13316_s3, 4  ;;  %s110_s0 = sshll.u32 %s13317_s30, 4  ;;  %s83_s29 = int_to_ptr.vmem [resolvable:$true] %s82_s29  ;;  %s111_s0 = int_to_ptr.vmem [resolvable:$true] %s110_s0 }
  0x27   :  { %s13103_s5 = scalar_lea.hbm %s15160_s8, 48 }
  0x28   :  { %p13104_p8 = scmp.ne.s32.totalorder %s15160_s8, %s13103_s5  ;;  %p13107_p9 = scmp.lt.u32.totalorder %s13103_s5, %s15160_s8 }
  0x2a   :  { %p13109_p10 = pnand %p13107_p9, %p13104_p8 }
  0x2c   :  { %13112 = shalt.err (!%p13109_p10)
}
  0x2d   :  { %s13113_s28 = scalar_lea.vmem %s83_s29, 48  ;;  %s13117_s4 = scalar_lea.vmem %s83_s29, 64 }
  0x2e   :  { %p13114_p11 = scmp.ne.s32.totalorder %s83_s29, %s13113_s28  ;;  %p13118_p12 = scmp.lt.s32.totalorder %s83_s29, %s83_s29 }
  0x2f   :  { %p13119_p13 = scmp.lt.s32.totalorder %s13117_s4, %s13113_s28 }
  0x31   :  { %p13120_p0 = por %p13119_p13, %p13118_p12 }
  0x33   :  { %p13121_p1 = pnand %p13120_p0, %p13114_p11 }
  0x35   :  { %13124 = shalt.err (!%p13121_p1)
}
  0x36   :  { %88 = dma.hbm_to_vmem [thread:$0]  %s15160_s8, 48, %s83_s29, [#allocation8], %s13314_s25, %s13314_s25, %s13315_s26  }
  0x37   :  { %s13125_s3 = scalar_lea.hbm %s15164_s12, 192 }
  0x38   :  { %p13126_p2 = scmp.ne.s32.totalorder %s15164_s12, %s13125_s3  ;;  %p13129_p3 = scmp.lt.u32.totalorder %s13125_s3, %s15164_s12 }
  0x3a   :  { %p13131_p4 = pnand %p13129_p3, %p13126_p2 }
  0x3c   :  { %13134 = shalt.err (!%p13131_p4)
}
  0x3d   :  { %s13135_s24 = scalar_lea.vmem %s111_s0, 192  ;;  %p13140_p6 = scmp.lt.s32.totalorder %s111_s0, %s111_s0 }
  0x3e   :  { %p13136_p5 = scmp.ne.s32.totalorder %s111_s0, %s13135_s24  ;;  %p13141_p7 = scmp.lt.s32.totalorder %s13135_s24, %s13135_s24 }
  0x40   :  { %p13142_p8 = por %p13141_p7, %p13140_p6 }
  0x42   :  { %p13143_p9 = pnand %p13142_p8, %p13136_p5 }
  0x44   :  { %13146 = shalt.err (!%p13143_p9)
}
  0x45   :  { %s13318_s8 = smov 64   ;;  %s13319_s29 = smov 4  }
  0x46   :  { %116 = dma.hbm_to_vmem [thread:$0]  %s15164_s12, 192, %s111_s0, [#allocation11], %s13318_s8, %s13318_s8, %s13319_s29  }
  0x47   :  { %s13320_s4 = smov [#allocation13]   ;;  %s13147_s22 = scalar_lea.hbm %s15166_s14, 3072 }
  0x48   :  { %s134_s2 = sshll.u32 %s13320_s4, 4  ;;  %p13148_p10 = scmp.ne.s32.totalorder %s15166_s14, %s13147_s22  ;;  %s135_s2 = int_to_ptr.vmem [resolvable:$true] %s134_s2 }
  0x49   :  { %p13151_p11 = scmp.lt.u32.totalorder %s13147_s22, %s15166_s14 }
  0x4b   :  { %p13153_p12 = pnand %p13151_p11, %p13148_p10 }
  0x4d   :  { %13156 = shalt.err (!%p13153_p12)
}
  0x4e   :  { %s13157_s5 = scalar_lea.vmem %s135_s2, 3072  ;;  %p13162_p0 = scmp.lt.s32.totalorder %s135_s2, %s135_s2 }
  0x4f   :  { %p13158_p13 = scmp.ne.s32.totalorder %s135_s2, %s13157_s5  ;;  %p13163_p1 = scmp.lt.s32.totalorder %s13157_s5, %s13157_s5 }
  0x51   :  { %p13164_p2 = por %p13163_p1, %p13162_p0 }
  0x53   :  { %p13165_p3 = pnand %p13164_p2, %p13158_p13 }
  0x55   :  { %13168 = shalt.err (!%p13165_p3)
}
  0x56   :  { %s13321_s12 = smov 128   ;;  %s13322_s0 = smov 8  }
  0x57   :  { %140 = dma.hbm_to_vmem [thread:$0]  %s15166_s14, 3072, %s135_s2, [#allocation14], %s13321_s12, %s13321_s12, %s13322_s0  }
  0x58   :  { %s13323_s29 = smov [#allocation2]   ;;  %s13324_s28 = smov [#allocation6]  }
  0x59   :  { %s39_s6 = sshll.u32 %s13323_s29, 4  ;;  %s66_s4 = sshll.u32 %s13324_s28, 4  ;;  %s40_s6 = int_to_ptr.vmem [resolvable:$true] %s39_s6  ;;  %s13504_s4 = int_to_ptr.vmem [resolvable:$true] %s66_s4 }
  0x5a   :  { %s15216_s22 = sld [smem:[#allocation58_spill]] }
  0x60   :  { %s13169_s3 = scalar_lea.hbm %s15216_s22, 128 }
  0x61   :  { %p13170_p4 = scmp.ne.s32.totalorder %s15216_s22, %s13169_s3  ;;  %p13173_p5 = scmp.lt.u32.totalorder %s13169_s3, %s15216_s22 }
  0x63   :  { %p13175_p6 = pnand %p13173_p5, %p13170_p4 }
  0x65   :  { %13178 = shalt.err (!%p13175_p6)
}
  0x66   :  { %s13179_s14 = scalar_lea.vmem %s40_s6, 128  ;;  %p13184_p8 = scmp.lt.s32.totalorder %s40_s6, %s40_s6 }
  0x67   :  { %p13180_p7 = scmp.ne.s32.totalorder %s40_s6, %s13179_s14  ;;  %p13185_p9 = scmp.lt.s32.totalorder %s13179_s14, %s13179_s14 }
  0x69   :  { %p13186_p10 = por %p13185_p9, %p13184_p8 }
  0x6b   :  { %p13187_p11 = pnand %p13186_p10, %p13180_p7 }
  0x6d   :  { %13190 = shalt.err (!%p13187_p11)
}
  0x6e   :  { %42 = dma.hbm_to_vmem [thread:$0]  %s15216_s22, 128, %s40_s6, [#allocation3]  }
  0x6f   :  { %s15217_s28 = sld [smem:[#allocation63_spill]] }
  0x75   :  { %s13191_s27 = scalar_lea.hbm %s15217_s28, 48 }
  0x76   :  { %p13192_p12 = scmp.ne.s32.totalorder %s15217_s28, %s13191_s27  ;;  %p13195_p13 = scmp.lt.u32.totalorder %s13191_s27, %s15217_s28 }
  0x78   :  { %p13197_p0 = pnand %p13195_p13, %p13192_p12 }
  0x7a   :  { %13200 = shalt.err (!%p13197_p0)
}
  0x7b   :  { %s13201_s1 = scalar_lea.vmem %s13504_s4, 48  ;;  %s13205_s6 = scalar_lea.vmem %s13504_s4, 64 }
  0x7c   :  { %p13202_p1 = scmp.ne.s32.totalorder %s13504_s4, %s13201_s1  ;;  %p13206_p2 = scmp.lt.s32.totalorder %s13504_s4, %s13504_s4 }
  0x7d   :  { %p13207_p3 = scmp.lt.s32.totalorder %s13205_s6, %s13201_s1 }
  0x7f   :  { %p13208_p4 = por %p13207_p3, %p13206_p2 }
  0x81   :  { %p13209_p5 = pnand %p13208_p4, %p13202_p1 }
  0x83   :  { %13212 = shalt.err (!%p13209_p5)
}
  0x84   :  { %72 = dma.hbm_to_vmem [thread:$0]  %s15217_s28, 48, %s13504_s4, [#allocation5], %s13314_s25, %s13314_s25, %s13315_s26  }
  0x85   :  { %s13325_s14 = smov [#allocation9]   ;;  %s13326_s24 = smov [#allocation12]  }
  0x86   :  { %s98_s2 = sshll.u32 %s13325_s14, 4  ;;  %s122_s8 = sshll.u32 %s13326_s24, 4  ;;  %s99_s2 = int_to_ptr.vmem [resolvable:$true] %s98_s2  ;;  %s13539_s8 = int_to_ptr.vmem [resolvable:$true] %s122_s8 }
  0x87   :  { %s13213_s21 = scalar_lea.hbm %s15163_s11, 32 }
  0x88   :  { %p13214_p6 = scmp.ne.s32.totalorder %s15163_s11, %s13213_s21  ;;  %p13217_p7 = scmp.lt.u32.totalorder %s13213_s21, %s15163_s11 }
  0x8a   :  { %p13219_p8 = pnand %p13217_p7, %p13214_p6 }
  0x8c   :  { %13222 = shalt.err (!%p13219_p8)
}
  0x8d   :  { %s13223_s4 = scalar_lea.vmem %s99_s2, 32  ;;  %p13228_p10 = scmp.lt.s32.totalorder %s99_s2, %s99_s2 }
  0x8e   :  { %p13224_p9 = scmp.ne.s32.totalorder %s99_s2, %s13223_s4  ;;  %p13229_p11 = scmp.lt.s32.totalorder %s13223_s4, %s13223_s4 }
  0x90   :  { %p13230_p12 = por %p13229_p11, %p13228_p10 }
  0x92   :  { %p13231_p13 = pnand %p13230_p12, %p13224_p9 }
  0x94   :  { %13234 = shalt.err (!%p13231_p13)
}
  0x95   :  { %104 = dma.hbm_to_vmem [thread:$0]  %s15163_s11, 32, %s99_s2, [#allocation8], %s13314_s25, %s13314_s25, %s13315_s26  }
  0x96   :  { %s13235_s14 = scalar_lea.hbm %s15165_s13, 48 }
  0x97   :  { %p13236_p0 = scmp.ne.s32.totalorder %s15165_s13, %s13235_s14  ;;  %p13239_p1 = scmp.lt.u32.totalorder %s13235_s14, %s15165_s13 }
  0x99   :  { %p13241_p2 = pnand %p13239_p1, %p13236_p0 }
  0x9b   :  { %13244 = shalt.err (!%p13241_p2)
}
  0x9c   :  { %s13245_s30 = scalar_lea.vmem %s13539_s8, 48  ;;  %s13249_s11 = scalar_lea.vmem %s13539_s8, 64 }
  0x9d   :  { %p13246_p3 = scmp.ne.s32.totalorder %s13539_s8, %s13245_s30  ;;  %p13250_p4 = scmp.lt.s32.totalorder %s13539_s8, %s13539_s8 }
  0x9e   :  { %p13251_p5 = scmp.lt.s32.totalorder %s13249_s11, %s13245_s30 }
  0xa0   :  { %p13252_p6 = por %p13251_p5, %p13250_p4 }
  0xa2   :  { %p13253_p7 = pnand %p13252_p6, %p13246_p3 }
  0xa4   :  { %13256 = shalt.err (!%p13253_p7)
}
  0xa5   :  { %128 = dma.hbm_to_vmem [thread:$0]  %s15165_s13, 48, %s13539_s8, [#allocation11], %s13314_s25, %s13314_s25, %s13315_s26  }
  0xa6   :  { %s13327_s23 = smov [#allocation15]   ;;  %s13328_s4 = smov [#allocation16]  }
  0xa7   :  { %s146_s1 = sshll.u32 %s13327_s23, 4  ;;  %s162_s28 = sshll.u32 %s13328_s4, 4  ;;  %s147_s1 = int_to_ptr.vmem [resolvable:$true] %s146_s1  ;;  %s13577_s28 = int_to_ptr.vmem [resolvable:$true] %s162_s28 }
  0xa8   :  { %s13257_s5 = scalar_lea.hbm %s15167_s15, 1536 }
  0xa9   :  { %p13258_p8 = scmp.ne.s32.totalorder %s15167_s15, %s13257_s5  ;;  %p13261_p9 = scmp.lt.u32.totalorder %s13257_s5, %s15167_s15 }
  0xab   :  { %p13263_p10 = pnand %p13261_p9, %p13258_p8 }
  0xad   :  { %13266 = shalt.err (!%p13263_p10)
}
  0xae   :  { %s13267_s13 = scalar_lea.vmem %s147_s1, 1536  ;;  %p13272_p12 = scmp.lt.s32.totalorder %s147_s1, %s147_s1 }
  0xaf   :  { %p13268_p11 = scmp.ne.s32.totalorder %s147_s1, %s13267_s13  ;;  %p13273_p13 = scmp.lt.s32.totalorder %s13267_s13, %s13267_s13 }
  0xb1   :  { %p13274_p0 = por %p13273_p13, %p13272_p12 }
  0xb3   :  { %p13275_p1 = pnand %p13274_p0, %p13268_p11 }
  0xb5   :  { %13278 = shalt.err (!%p13275_p1)
}
  0xb6   :  { %152 = dma.hbm_to_vmem [thread:$0]  %s15167_s15, 1536, %s147_s1, [#allocation14], %s13321_s12, %s13321_s12, %s13322_s0  }
  0xb7   :  { %s13279_s30 = scalar_lea.hbm %s15170_s18, 512 }
  0xb8   :  { %p13280_p2 = scmp.ne.s32.totalorder %s15170_s18, %s13279_s30  ;;  %p13283_p3 = scmp.lt.u32.totalorder %s13279_s30, %s15170_s18 }
  0xba   :  { %p13285_p4 = pnand %p13283_p3, %p13280_p2 }
  0xbc   :  { %13288 = shalt.err (!%p13285_p4)
}
  0xbd   :  { %s13289_s4 = scalar_lea.vmem %s13577_s28, 512  ;;  %p13294_p6 = scmp.lt.s32.totalorder %s13577_s28, %s13577_s28 }
  0xbe   :  { %p13290_p5 = scmp.ne.s32.totalorder %s13577_s28, %s13289_s4  ;;  %p13295_p7 = scmp.lt.s32.totalorder %s13289_s4, %s13289_s4 }
  0xc0   :  { %p13296_p8 = por %p13295_p7, %p13294_p6 }
  0xc2   :  { %p13297_p9 = pnand %p13296_p8, %p13290_p5 }
  0xc4   :  { %13300 = shalt.err (!%p13297_p9)
}
  0xc5   :  { %168 = dma.hbm_to_vmem [thread:$0]  %s15170_s18, 512, %s13577_s28, [#allocation17], %s13321_s12, %s13321_s12, %s13322_s0  }
  0xc6   :  { %13301 = dma.done.wait [#allocation3], 128  }
  0xc7   :  { %13302 = vsyncadd [#allocation3], 4294967168 }
  0xc8   :  { %13303 = dma.done.wait [#allocation5], 80  }
  0xc9   :  { %13304 = vsyncadd [#allocation5], 4294967216 }
  0xca   :  { %13305 = dma.done.wait [#allocation8], 80  }
  0xcb   :  { %13306 = vsyncadd [#allocation8], 4294967216 }
  0xcc   :  { %13307 = dma.done.wait [#allocation11], 240  }
  0xcd   :  { %13308 = vsyncadd [#allocation11], 4294967056 }
  0xce   :  { %13309 = dma.done.wait [#allocation14], 4608  }
  0xcf   :  { %13310 = vsyncadd [#allocation14], 4294962688 }
  0xd0   :  { %13311 = dma.done.wait [#allocation17], 512  }
  0xd1   :  { %13312 = vsyncadd [#allocation17], 4294966784  ;;  %v15182_v0 = vmov 0.0   ;;  %vm13330_vm0 = vmmov 0   ;;  %vm218_vm1 = vcmask 1045504   ;;  %vm214_vm2 = vcmask 48128  }
  0xd2   :  { %10653 = vmatprep.subr.mxu0 %v15182_v0  ;;  %10658 = vmatprep.subr.mxu1 %v15182_v0  ;;  %s15218_s0 = sld [smem:[#allocation60_spill]]  ;;  %v13626_v3 = vld [vmem:[#allocation2] sm:$0xff]  ;;  %vm428_vm3 = vcmask 1044480   ;;  %s15219_s14 = sld [smem:[#allocation62_spill]]  ;;  %vm403_vm4 = vcmask 39936   ;;  %vm1040_vm5 = vcmask 1042432  }
  0xd3   :  { %10655 = vmatprep.mubr.msk.f32.mxu0 %vm13330_vm0, %v15182_v0  ;;  %10660 = vmatprep.mubr.msk.f32.mxu1 %vm13330_vm0, %v15182_v0  ;;  %s15220_s27 = sld [smem:[#allocation59_spill]]  ;;  %v1130_v15 = vld [vmem:[#allocation10 + $0x4] sm:$0x7]  ;;  %v839_v16 = vld [vmem:[%s15162_s10] sm:$0x3f]  ;;  %v15184_v17 = vmov 0.0|0.0  }
  0xd4   :  { %v1015_v18 = vld [vmem:[%s15161_s9] sm:$0xff]  ;;  %vm1027_vm6 = vcmask 23552   ;;  %s15221_s13 = sld [smem:[#allocation64_spill]]  ;;  %v1016_v21 = vld [vmem:[%s15161_s9 + $0x8] sm:$0xff]  ;;  %v1017_v26 = vld [vmem:[%s15161_s9 + $0x10] sm:$0xff]  ;;  %vm1391_vm7 = vcmask 261120  }
  0xd5   :  { %v9867_v23 = vld [vmem:[%s15162_s10 + $0x8] sm:$0x3f]  ;;  %v1019_v27 = vld [vmem:[#allocation10] sm:$0x7]  ;;  %v1018_v28 = vld [vmem:[%s15161_s9 + $0x18] sm:$0xff]  ;;  %vm9705_vm8 = vcmask 523264  }
  0xd6   :  { %v1228_v32 = vld [vmem:[#allocation10 + $0x8] sm:$0x7]  ;;  %v802_v43 = vld [vmem:[%s15159_s7] sm:$0xff]  ;;  %v803_v44 = vld [vmem:[%s15159_s7 + $0x8] sm:$0xff]  ;;  %s15305_s10 = sld [smem:[#allocation65_spill]]  ;;  %vm9779_vm9 = vcmask 31744  }
  0xd7   :  { %v9852_v45 = vld [vmem:[%s15159_s7 + $0x20] sm:$0xff]  ;;  %v13831_v46 = vpack.c.bf16 %v803_v44, %v802_v43  ;;  %v9853_v47 = vld [vmem:[%s15159_s7 + $0x28] sm:$0xff]  ;;  %v804_v49 = vld [vmem:[%s15159_s7 + $0x10] sm:$0xff]  ;;  %s15306_s18 = sld [smem:[#allocation66_spill]] }
  0xd8   :  { %v206_v1 = vld [vmem:[%s15218_s0] sm:$0x3f]  ;;  %v9795_v2 = vld [vmem:[%s15218_s0 + $0x8] sm:$0x3f]  ;;  %v9821_v10 = vld [vmem:[%s15219_s14 + $0x10] sm:$0x1f]  ;;  %v13836_v48 = vpack.c.bf16 %v9853_v47, %v9852_v45 }
  0xd9   :  { %10654 = vmatpush3.msk.msra.mxu0 %vm218_vm1, %v206_v1  ;;  %10659 = vmatpush3.msk.msra.mxu1 %vm218_vm1, %v9795_v2  ;;  %v395_v4 = vld [vmem:[%s15219_s14] sm:$0x1f]  ;;  %v388_v7 = vld [vmem:[%s15220_s27 + $0x8] sm:$0xff]  ;;  %v389_v11 = vld [vmem:[%s15220_s27 + $0x10] sm:$0xff]  ;;  %15225 = vst [vmem:[#allocation27_spill] sm:$0xff] %v13831_v46 }
  0xda   :  { %10656 = vmatmul.mubr.msk.f32.vlgmr.msra.gmra.mrb[0].mxu0 %vm214_vm2, %v13626_v3  ;;  %10661 = vmatmul.mubr.msk.f32.vlgmr.msra.gmra.mrb[0].mxu1 %vm214_vm2, %v13626_v3  ;;  %v387_v5 = vld [vmem:[%s15220_s27] sm:$0xff]  ;;  %v392_v8 = vld [vmem:[%s15220_s27 + $0x28] sm:$0xff]  ;;  %v393_v12 = vld [vmem:[%s15220_s27 + $0x30] sm:$0xff]  ;;  %15226 = vst [vmem:[#allocation28_spill] sm:$0xff] %v13836_v48 }
  0xdb   :  { %v391_v6 = vld [vmem:[%s15220_s27 + $0x20] sm:$0xff]  ;;  %12640 = vmatprep.subr.msk.mxu1 %vm428_vm3, %v395_v4  ;;  %10663 = vmatprep.subr.msk.mxu0 %vm428_vm3, %v395_v4  ;;  %v9810_v9 = vld [vmem:[%s15219_s14 + $0x8] sm:$0x1f]  ;;  %v390_v13 = vld [vmem:[%s15220_s27 + $0x18] sm:$0xff] }
  0xdc   :  { %12641 = vmatpush3.msk.msra.mxu1 %vm428_vm3, %v395_v4  ;;  %10664 = vmatpush3.msk.msra.mxu0 %vm428_vm3, %v395_v4  ;;  %v394_v14 = vld [vmem:[%s15220_s27 + $0x38] sm:$0xff]  ;;  %v773_v19 = vld [vmem:[%s15221_s13] sm:$0xff]  ;;  %v774_v20 = vld [vmem:[%s15221_s13 + $0x8] sm:$0xff] }
  0xdd   :  { %10665 = vmatprep.mubr.msk.f32.mxu0 %vm403_vm4, %v387_v5  ;;  %10671 = vmatprep.mubr.msk.f32.mxu1 %vm403_vm4, %v391_v6  ;;  %v13723_v22 = vpack.c.bf16 %v774_v20, %v773_v19  ;;  %v775_v24 = vld [vmem:[%s15221_s13 + $0x10] sm:$0xff]  ;;  %v776_v25 = vld [vmem:[%s15221_s13 + $0x18] sm:$0xff]  ;;  %v9836_v30 = vld [vmem:[%s15221_s13 + $0x40] sm:$0xff] }
  0xde   :  { %10666 = vmatmul.mubr.msk.f32.vlgmr.msra.gmra.mrb[2].mxu0 %vm403_vm4, %v388_v7  ;;  %10672 = vmatmul.mubr.msk.f32.vlgmr.msra.gmra.mrb[2].mxu1 %vm403_vm4, %v392_v8  ;;  %v13745_v29 = vpack.c.bf16 %v776_v25, %v775_v24  ;;  %v9837_v31 = vld [vmem:[%s15221_s13 + $0x48] sm:$0xff]  ;;  %v9838_v34 = vld [vmem:[%s15221_s13 + $0x50] sm:$0xff]  ;;  %v9839_v35 = vld [vmem:[%s15221_s13 + $0x58] sm:$0xff] }
  0xdf   :  { %10677 = vmatprep.subr.msk.mxu1 %vm428_vm3, %v9810_v9  ;;  %10691 = vmatprep.subr.msk.mxu0 %vm428_vm3, %v9821_v10  ;;  %v13763_v33 = vpack.c.bf16 %v9837_v31, %v9836_v30  ;;  %v13780_v36 = vpack.c.bf16 %v9839_v35, %v9838_v34  ;;  %v9832_v37 = vld [vmem:[%s15221_s13 + $0x20] sm:$0xff]  ;;  %v9833_v38 = vld [vmem:[%s15221_s13 + $0x28] sm:$0xff]  ;;  %v9834_v40 = vld [vmem:[%s15221_s13 + $0x30] sm:$0xff] }
  0xe0   :  { %10678 = vmatpush3.msk.msra.mxu1 %vm428_vm3, %v9810_v9  ;;  %10692 = vmatpush3.msk.msra.mxu0 %vm428_vm3, %v9821_v10  ;;  %v13796_v39 = vpack.c.bf16 %v9833_v38, %v9832_v37  ;;  %v9835_v41 = vld [vmem:[%s15221_s13 + $0x38] sm:$0xff]  ;;  %v9854_v51 = vld [vmem:[%s15159_s7 + $0x30] sm:$0xff]  ;;  %v13864_v59 = vld [vmem:[#allocation6] ss:$0 sm:$0xff] }
  0xe1   :  { %10668 = vmatprep.mubr.msk.f32.mxu0 %vm403_vm4, %v389_v11  ;;  %10674 = vmatprep.mubr.msk.f32.mxu1 %vm403_vm4, %v393_v12  ;;  %15222 = vst [vmem:[#allocation24_spill] sm:$0xff] %v13763_v33  ;;  %15223 = vst [vmem:[#allocation25_spill] sm:$0xff] %v13780_v36  ;;  %v13809_v42 = vpack.c.bf16 %v9835_v41, %v9834_v40  ;;  %v805_v50 = vld [vmem:[%s15159_s7 + $0x18] sm:$0xff]  ;;  %v9791_v45 = vld [vmem:[#allocation4] ss:$0 sm:$0xff] }
  0xe2   :  { %10669 = vmatmul.mubr.msk.f32.gmra.mrb[4].mxu0 %vm403_vm4, %v390_v13  ;;  %10675 = vmatmul.mubr.msk.f32.gmra.mrb[4].mxu1 %vm403_vm4, %v394_v14  ;;  %v13851_v52 = vpack.c.bf16 %v805_v50, %v804_v49  ;;  %v9855_v53 = vld [vmem:[%s15159_s7 + $0x38] sm:$0xff] }
  0xe3   :  { %10679 = vmatprep.mubr.msk.f32.mxu1 %vm403_vm4, %v387_v5  ;;  %10693 = vmatprep.mubr.msk.f32.mxu0 %vm403_vm4, %v387_v5  ;;  %15224 = vst [vmem:[#allocation26_spill] sm:$0xff] %v13809_v42  ;;  %v13856_v54 = vpack.c.bf16 %v9855_v53, %v9854_v51 }
  0xe4   :  { %10705 = vmatprep.subr.mxu1 %v15182_v0  ;;  %10723 = vmatprep.subr.msk.mxu0 %vm1040_vm5, %v1130_v15  ;;  %15227 = vst [vmem:[#allocation29_spill] sm:$0xff] %v13851_v52 }
  0xe5   :  { %15228 = vst [vmem:[#allocation30_spill] sm:$0xff] %v13856_v54 }
  0xe6   :  { %10680 = vmatmul.mubr.msk.f32.vlgmr.msra.gmra.mrb[6].mxu1 %vm403_vm4, %v388_v7  ;;  %10694 = vmatmul.mubr.msk.f32.vlgmr.msra.gmra.mrb[6].mxu0 %vm403_vm4, %v388_v7 }
  0xe7   :  { %10706 = vmatpush3.msk.msra.mxu1 %vm218_vm1, %v839_v16  ;;  %10724 = vmatpush3.msk.msra.mxu0 %vm1040_vm5, %v1130_v15 }
  0xe8   :  { %10682 = vmatprep.mubr.msk.f32.mxu1 %vm403_vm4, %v389_v11  ;;  %10696 = vmatprep.mubr.msk.f32.mxu0 %vm403_vm4, %v389_v11 }
  0xe9   :  { %11968 = vmatprep.subr.bf16.mxu0 %v15184_v17  ;;  %10710 = vmatprep.subr.mxu1 %v15182_v0 }
  0xea   :  { %10683 = vmatmul.mubr.msk.f32.gmra.mrb[8].mxu1 %vm403_vm4, %v390_v13  ;;  %10697 = vmatmul.mubr.msk.f32.gmra.mrb[8].mxu0 %vm403_vm4, %v390_v13  ;;  %v9822_v13 = vld [vmem:[#allocation6 + $0x2] ss:$0 sm:$0xff] }
  0xeb   :  { %10685 = vmatprep.mubr.msk.f32.mxu1 %vm403_vm4, %v391_v6  ;;  %10699 = vmatprep.mubr.msk.f32.mxu0 %vm403_vm4, %v391_v6 }
  0xee   :  { %10686 = vmatmul.mubr.msk.f32.gmra.mrb[10].mxu1 %vm403_vm4, %v392_v8  ;;  %10700 = vmatmul.mubr.msk.f32.gmra.mrb[10].mxu0 %vm403_vm4, %v392_v8 }
  0xef   :  { %10688 = vmatprep.mubr.msk.f32.mxu1 %vm403_vm4, %v393_v12  ;;  %10702 = vmatprep.mubr.msk.f32.mxu0 %vm403_vm4, %v393_v12  ;;  %v13887_v12 = vld [vmem:[#allocation6 + $0x1] ss:$0 sm:$0xff] }
  0xf2   :  { %10689 = vmatmul.mubr.msk.f32.gmra.mrb[12].mxu1 %vm403_vm4, %v394_v14  ;;  %10703 = vmatmul.mubr.msk.f32.gmra.mrb[12].mxu0 %vm403_vm4, %v394_v14 }
  0xf3   :  { %10707 = vmatprep.mubr.msk.f32.mxu1 %vm13330_vm0, %v15182_v0  ;;  %10725 = vmatprep.mubr.msk.f32.mxu0 %vm1027_vm6, %v1015_v18 }
  0xf6   :  { %10708 = vmatmul.mubr.msk.f32.vlgmr.msra.gmra.mrb[14].mxu1 %vm214_vm2, %v13626_v3  ;;  %10726 = vmatmul.mubr.msk.f32.vlgmr.msra.gmra.mrb[14].mxu0 %vm1027_vm6, %v1016_v21 }
  0xf7   :  { %11970 = vmatpush3.bf16.msra.mxu0 %v13723_v22  ;;  %10711 = vmatpush3.msk.msra.mxu1 %vm218_vm1, %v9867_v23 }
  0xf8   :  { %10712 = vmatprep.mubr.msk.f32.mxu1 %vm13330_vm0, %v15182_v0  ;;  %10728 = vmatprep.mubr.msk.f32.mxu0 %vm1027_vm6, %v1017_v26 }
  0xf9   :  { %11971 = vmatprep.subr.bf16.mxu0 %v15184_v17  ;;  %10715 = vmatprep.subr.msk.mxu1 %vm1040_vm5, %v1019_v27 }
  0xfa   :  { %10713 = vmatmul.mubr.msk.f32.vlgmr.msra.gmra.mrb[16].mxu1 %vm214_vm2, %v13626_v3  ;;  %10729 = vmatmul.mubr.msk.f32.gmra.mrb[16].mxu0 %vm1027_vm6, %v1018_v28 }
  0xfb   :  { %11973 = vmatpush3.bf16.msra.mxu0 %v13745_v29  ;;  %10716 = vmatpush3.msk.msra.mxu1 %vm1040_vm5, %v1019_v27 }
  0xfc   :  { %10717 = vmatprep.mubr.msk.f32.mxu1 %vm1027_vm6, %v1015_v18  ;;  %10747 = vmatprep.mubr.msk.f32.mxu0 %vm13330_vm0, %v15182_v0 }
  0xfd   :  { %11980 = vmatprep.subr.bf16.mxu0 %v15184_v17  ;;  %10731 = vmatprep.subr.msk.mxu1 %vm1040_vm5, %v1228_v32 }
  0xfe   :  { %10718 = vmatmul.mubr.msk.f32.vlgmr.msra.gmra.mrb[18].mxu1 %vm1027_vm6, %v1016_v21  ;;  %10748 = vmatmul.mubr.f32.vlgmr.msra.gmra.mrb[18].mxu0 %v15182_v0 }
  0xff   :  { %11982 = vmatpush3.bf16.msra.mxu0 %v13763_v33  ;;  %10732 = vmatpush3.msk.msra.mxu1 %vm1040_vm5, %v1228_v32 }
 0x100   :  { %10720 = vmatprep.mubr.msk.f32.mxu1 %vm1027_vm6, %v1017_v26  ;;  %11983 = vmatprep.subr.bf16.mxu0 %v15184_v17 }
 0x101   :  { %10769 = vmatprep.mubr.msk.f32.mxu0 %vm13330_vm0, %v15182_v0  ;;  %11974 = vmatprep.subr.bf16.mxu1 %v15184_v17 }
 0x102   :  { %10721 = vmatmul.mubr.msk.f32.gmra.mrb[20].mxu1 %vm1027_vm6, %v1018_v28 }
 0x103   :  { %11985 = vmatpush3.bf16.msra.mxu0 %v13780_v36  ;;  %10733 = vmatprep.mubr.msk.f32.mxu1 %vm1027_vm6, %v1015_v18 }
 0x104   :  { %11998 = vmatprep.subr.bf16.mxu0 %v15184_v17 }
 0x106   :  { %10770 = vmatmul.mubr.f32.vlgmr.msra.gmra.mrb[20].mxu0 %v15182_v0  ;;  %10734 = vmatmul.mubr.msk.f32.vlgmr.msra.gmra.mrb[22].mxu1 %vm1027_vm6, %v1016_v21 }
 0x107   :  { %11976 = vmatpush3.bf16.msra.mxu1 %v13796_v39  ;;  %10736 = vmatprep.mubr.msk.f32.mxu1 %vm1027_vm6, %v1017_v26 }
 0x108   :  { %11977 = vmatprep.subr.bf16.mxu1 %v15184_v17  ;;  %10802 = vmatprep.mubr.msk.f32.mxu0 %vm13330_vm0, %v15182_v0 }
 0x109   :  { %12000 = vmatpush3.bf16.msra.mxu0 %v13836_v48 }
 0x10a   :  { %10737 = vmatmul.mubr.msk.f32.gmra.mrb[24].mxu1 %vm1027_vm6, %v1018_v28  ;;  %12001 = vmatprep.subr.bf16.mxu0 %v15184_v17 }
 0x10b   :  { %11979 = vmatpush3.bf16.msra.mxu1 %v13809_v42  ;;  %10758 = vmatprep.mubr.msk.f32.mxu1 %vm13330_vm0, %v15182_v0 }
 0x10c   :  { %11986 = vmatprep.subr.bf16.mxu1 %v15184_v17 }
 0x10d   :  { %12003 = vmatpush3.bf16.msra.mxu0 %v13856_v54 }
 0x10e   :  { %10759 = vmatmul.mubr.f32.vlgmr.msra.gmra.mrb[26].mxu1 %v15182_v0  ;;  %12004 = vmatprep.subr.bf16.mxu0 %v15184_v17 }
 0x10f   :  { %10780 = vmatprep.mubr.msk.f32.mxu1 %vm13330_vm0, %v15182_v0  ;;  %11988 = vmatpush3.bf16.msra.mxu1 %v13831_v46 }
 0x110   :  { %11989 = vmatprep.subr.bf16.mxu1 %v15184_v17 }
 0x113   :  { %11991 = vmatpush3.bf16.msra.mxu1 %v13851_v52 }
 0x114   :  { %11992 = vmatprep.subr.bf16.mxu1 %v15184_v17 }
 0x1ad   :  { %v288_v55 = vpop.f32.mrb[0].mxu0  ;;  %v13862_v56 = vpop.f32.mrb[0].mxu1 }
 0x1ae   :  { %v10657_v57 = vpop.f32.mrb[1].mxu0  ;;  %v10662_v58 = vpop.f32.mrb[1].mxu1 }
 0x1af   :  { %v13926_v58 = vld [vmem:[#allocation12 + $0x1] ss:$0 sm:$0xff] }
 0x1b1   :  { %v10667_v60 = vpop.f32.mrb[2].mxu0  ;;  %v10673_v61 = vpop.f32.mrb[2].mxu1 }
 0x1b2   :  { %v13867_v62 = vadd.f32 %v10667_v60, %v13864_v59  ;;  %v13870_v63 = vadd.f32 %v10673_v61, %v13864_v59  ;;  %v498_v1 = vpop.f32.mrb[3].mxu0  ;;  %v518_v2 = vpop.f32.mrb[3].mxu1  ;;  %v289_v60 = vadd.f32 %v9791_v45, %v288_v55 }
 0x1b3   :  { %v13873_v3 = vadd.f32 %v13864_v59, %v518_v2 }
 0x1b4   :  { %15229 = vst [vmem:[#allocation31_spill] sm:$0xff] %v13870_v63  ;;  %v1360_v63 = vld [vmem:[#allocation15 + $0x28] sm:$0xff] }
 0x1b5   :  { %15230 = vst [vmem:[#allocation32_spill] sm:$0xff] %v13873_v3  ;;  %v10670_v4 = vpop.f32.mrb[4].mxu0  ;;  %v10676_v5 = vpop.f32.mrb[4].mxu1 }
 0x1b6   :  { %v13876_v6 = vadd.f32 %v10670_v4, %v13864_v59  ;;  %v13879_v7 = vadd.f32 %v10676_v5, %v13864_v59  ;;  %v508_v8 = vpop.f32.mrb[5].mxu0  ;;  %v528_v9 = vpop.f32.mrb[5].mxu1 }
 0x1b7   :  { %v13882_v10 = vadd.f32 %v13864_v59, %v508_v8  ;;  %v13885_v11 = vadd.f32 %v13864_v59, %v528_v9  ;;  %v9794_v9 = vmul.f32 -1.442695, %v289_v60 }
 0x1b8   :  { %15231 = vst [vmem:[#allocation33_spill] sm:$0xff] %v13876_v6  ;;  %15232 = vst [vmem:[#allocation34_spill] sm:$0xff] %v13879_v7 }
 0x1b9   :  { %15233 = vst [vmem:[#allocation35_spill] sm:$0xff] %v13882_v10  ;;  %15234 = vst [vmem:[#allocation36_spill] sm:$0xff] %v13885_v11  ;;  %v10681_v14 = vpop.f32.mrb[6].mxu1  ;;  %v10695_v15 = vpop.f32.mrb[6].mxu0  ;;  %12769 = vpow2.f32 %v9794_v9  ;;  %v1331_v11 = vld [vmem:[#allocation13 + $0x28] sm:$0xff] }
 0x1ba   :  { %v13890_v16 = vadd.f32 %v10681_v14, %v13887_v12  ;;  %v13892_v18 = vadd.f32 %v10695_v15, %v9822_v13  ;;  %v13894_v19 = vpop.f32.mrb[7].mxu1  ;;  %v734_v20 = vpop.f32.mrb[7].mxu0 }
 0x1bd   :  { %v10684_v21 = vpop.f32.mrb[8].mxu1  ;;  %v10698_v23 = vpop.f32.mrb[8].mxu0 }
 0x1be   :  { %v13897_v24 = vadd.f32 %v10684_v21, %v13887_v12  ;;  %v13899_v25 = vadd.f32 %v10698_v23, %v9822_v13  ;;  %v626_v26 = vpop.f32.mrb[9].mxu1  ;;  %v744_v27 = vpop.f32.mrb[9].mxu0 }
 0x1bf   :  { %v13902_v28 = vadd.f32 %v13887_v12, %v626_v26  ;;  %v13904_v30 = vadd.f32 %v9822_v13, %v744_v27  ;;  %v13943_v27 = vld [vmem:[#allocation12] ss:$0 sm:$0xff] }
 0x1c0   :  { %15235 = vst [vmem:[#allocation37_spill] sm:$0xff] %v13897_v24  ;;  %15236 = vst [vmem:[#allocation38_spill] sm:$0xff] %v13899_v25 }
 0x1c1   :  { %15237 = vst [vmem:[#allocation39_spill] sm:$0xff] %v13902_v28  ;;  %15238 = vst [vmem:[#allocation40_spill] sm:$0xff] %v13904_v30  ;;  %v10687_v31 = vpop.f32.mrb[10].mxu1  ;;  %v10701_v32 = vpop.f32.mrb[10].mxu0 }
 0x1c2   :  { %v13907_v34 = vadd.f32 %v10687_v31, %v13887_v12  ;;  %v13909_v35 = vadd.f32 %v10701_v32, %v9822_v13  ;;  %v636_v37 = vpop.f32.mrb[11].mxu1  ;;  %v754_v38 = vpop.f32.mrb[11].mxu0  ;;  %v499_v31 = vadd.f32 %v13864_v59, %v498_v1  ;;  %v13957_v59 = vld [vmem:[#allocation12 + $0x2] ss:$0 sm:$0xff]  ;;  %v735_v1 = vadd.f32 %v9822_v13, %v734_v20 }
 0x1c3   :  { %v13912_v40 = vadd.f32 %v13887_v12, %v636_v37  ;;  %v13914_v41 = vadd.f32 %v9822_v13, %v754_v38  ;;  %v617_v20 = vadd.f32 %v13887_v12, %v13894_v19  ;;  %v9840_v19 = vld [vmem:[%s15221_s13 + $0x60] sm:$0xff] }
 0x1c4   :  { %15239 = vst [vmem:[#allocation41_spill] sm:$0xff] %v13907_v34  ;;  %15240 = vst [vmem:[#allocation42_spill] sm:$0xff] %v13909_v35  ;;  %v1332_v35 = vld [vmem:[#allocation13 + $0x30] sm:$0xff]  ;;  %v1333_v34 = vld [vmem:[#allocation13 + $0x38] sm:$0xff] }
 0x1c5   :  { %15241 = vst [vmem:[#allocation43_spill] sm:$0xff] %v13912_v40  ;;  %15242 = vst [vmem:[#allocation44_spill] sm:$0xff] %v13914_v41  ;;  %v10690_v43 = vpop.f32.mrb[12].mxu1  ;;  %v10704_v44 = vpop.f32.mrb[12].mxu0  ;;  %v1356_v41 = vld [vmem:[#allocation15 + $0x10] sm:$0xff]  ;;  %v1357_v40 = vld [vmem:[#allocation15 + $0x18] sm:$0xff] }
 0x1c6   :  { %v13917_v47 = vadd.f32 %v10690_v43, %v13887_v12  ;;  %v13919_v49 = vadd.f32 %v10704_v44, %v9822_v13  ;;  %v646_v50 = vpop.f32.mrb[13].mxu1  ;;  %v764_v51 = vpop.f32.mrb[13].mxu0 }
 0x1c7   :  { %v13922_v53 = vadd.f32 %v13887_v12, %v646_v50  ;;  %v13924_v57 = vadd.f32 %v9822_v13, %v764_v51 }
 0x1c8   :  { %15243 = vst [vmem:[#allocation45_spill] sm:$0xff] %v13917_v47  ;;  %15244 = vst [vmem:[#allocation46_spill] sm:$0xff] %v13919_v49 }
 0x1c9   :  { %15245 = vst [vmem:[#allocation47_spill] sm:$0xff] %v13922_v53  ;;  %15246 = vst [vmem:[#allocation48_spill] sm:$0xff] %v13924_v57  ;;  %v13928_v61 = vpop.f32.mrb[14].mxu1  ;;  %v10727_v2 = vpop.f32.mrb[14].mxu0  ;;  %v1328_v57 = vld [vmem:[#allocation13 + $0x18] sm:$0xff]  ;;  %v1330_v53 = vld [vmem:[#allocation13 + $0x20] sm:$0xff] }
 0x1ca   :  { %v13931_v4 = vadd.f32 %v10727_v2, %v13926_v58  ;;  %v10709_v5 = vpop.f32.mrb[15].mxu1  ;;  %v13933_v8 = vpop.f32.mrb[15].mxu0 }
 0x1cd   :  { %v13935_v14 = vpop.f32.mrb[16].mxu1  ;;  %v10730_v15 = vpop.f32.mrb[16].mxu0 }
 0x1ce   :  { %v13938_v21 = vadd.f32 %v10730_v15, %v13926_v58  ;;  %v10714_v23 = vpop.f32.mrb[17].mxu1  ;;  %v1218_v26 = vpop.f32.mrb[17].mxu0 }
 0x1cf   :  { %v13941_v55 = vadd.f32 %v13926_v58, %v1218_v26 }
 0x1d0   :  { %15247 = vst [vmem:[#allocation49_spill] sm:$0xff] %v13938_v21  ;;  %v1362_v21 = vld [vmem:[#allocation15 + $0x38] sm:$0xff] }
 0x1d1   :  { %15248 = vst [vmem:[#allocation50_spill] sm:$0xff] %v13941_v55  ;;  %v10719_v32 = vpop.f32.mrb[18].mxu1  ;;  %v1461_v37 = vpop.f32.mrb[18].mxu0 }
 0x1d2   :  { %v13947_v38 = vadd.f32 %v10719_v32, %v13943_v27  ;;  %v1465_v43 = vadd.f32 %v1461_v37, %v499_v31  ;;  %v13949_v44 = vpop.f32.mrb[19].mxu1  ;;  %v10749_v45 = vpop.f32.mrb[19].mxu0 }
 0x1d3   :  { %v12770_v37 = vpop.eup %12769 }
 0x1d4   :  { %v9895_v50 = vmul.f32 -1.442695, %v1465_v43  ;;  %v295_v45 = vadd.f32 1.0, %v12770_v37 }
 0x1d5   :  { %v10722_v51 = vpop.f32.mrb[20].mxu1 }
 0x1d6   :  { %12771 = vpow2.f32 %v9895_v50  ;;  %v13952_v60 = vadd.f32 %v10722_v51, %v13943_v27  ;;  %v1120_v2 = vpop.f32.mrb[21].mxu1 }
 0x1d7   :  { %v13955_v5 = vadd.f32 %v13943_v27, %v1120_v2 }
 0x1d8   :  { %15249 = vst [vmem:[#allocation51_spill] sm:$0xff] %v13952_v60  ;;  %v14119_v60 = vpack.c.bf16 %v1357_v40, %v1356_v41  ;;  %v9863_v41 = vld [vmem:[#allocation9] ss:$0 sm:$0xff] }
 0x1d9   :  { %15250 = vst [vmem:[#allocation52_spill] sm:$0xff] %v13955_v5  ;;  %v1603_v9 = vpop.f32.mrb[20].mxu0  ;;  %v10735_v15 = vpop.f32.mrb[22].mxu1 }
 0x1da   :  { %v1607_v23 = vadd.f32 %v1603_v9, %v735_v1  ;;  %v13960_v26 = vadd.f32 %v10735_v15, %v13957_v59  ;;  %v13962_v31 = vpop.f32.mrb[23].mxu1  ;;  %v10771_v32 = vpop.f32.mrb[21].mxu0 }
 0x1dc   :  { %12773 = vtanh.f32 %v1607_v23 }
 0x1dd   :  { %v10738_v43 = vpop.f32.mrb[24].mxu1  ;;  %12775 = vrcp.f32 %v295_v45 }
 0x1de   :  { %v13965_v50 = vadd.f32 %v10738_v43, %v13957_v59  ;;  %v1316_v51 = vpop.f32.mrb[25].mxu1 }
 0x1df   :  { %v13968_v2 = vadd.f32 %v13957_v59, %v1316_v51 }
 0x1e0   :  { %15251 = vst [vmem:[#allocation53_spill] sm:$0xff] %v13965_v50  ;;  %v12772_v13 = vpop.eup %12771  ;;  %v1361_v50 = vld [vmem:[#allocation15 + $0x30] sm:$0xff] }
 0x1e1   :  { %15252 = vst [vmem:[#allocation54_spill] sm:$0xff] %v13968_v2  ;;  %v1611_v1 = vadd.f32 1.0, %v12772_v13  ;;  %v1532_v9 = vpop.f32.mrb[26].mxu1  ;;  %v14123_v25 = vpack.c.bf16 %v1362_v21, %v1361_v50  ;;  %v917_v21 = vadd.f32 %v9863_v41, %v13928_v61  ;;  %v14139_v41 = vld [vmem:[#allocation7 + $0x2] ss:$0 sm:$0xff] }
 0x1e2   :  { %v1536_v15 = vadd.f32 %v1532_v9, %v617_v20  ;;  %v10760_v32 = vpop.f32.mrb[27].mxu1  ;;  %v9842_v20 = vld [vmem:[%s15221_s13 + $0x70] sm:$0xff]  ;;  %v9843_v9 = vld [vmem:[%s15221_s13 + $0x78] sm:$0xff] }
 0x1e3   :  { %12777 = vrcp.f32 %v1611_v1  ;;  %v9847_v32 = vld [vmem:[%s15221_s13 + $0x98] sm:$0xff]  ;;  %15256 = vst [vmem:[#allocation56_spill] sm:$0xff] %v14123_v25  ;;  %v9866_v5 = vmul.f32 -1.442695, %v917_v21 }
 0x1e4   :  { %v9896_v0 = vmul.f32 -1.442695, %v1536_v15  ;;  %v9846_v15 = vld [vmem:[%s15221_s13 + $0x90] sm:$0xff] }
 0x1e6   :  { %12779 = vpow2.f32 %v9896_v0  ;;  %v12774_v37 = vpop.eup %12773  ;;  %v9841_v0 = vld [vmem:[%s15221_s13 + $0x68] sm:$0xff] }
 0x1e7   :  { %v13972_v43 = vpop.eup %12775  ;;  %v13990_v45 = vpack.c.bf16 %v9841_v0, %v9840_v19  ;;  %v15253_v19 = vmov 0.0|0.0   ;;  %v9857_v0 = vld [vmem:[%s15159_s7 + $0x48] sm:$0xff] }
 0x1e8   :  { %v1622_v51 = vmul.f32 %v13972_v43, %v12774_v37  ;;  %v14014_v37 = vpack.c.bf16 %v9843_v9, %v9842_v20  ;;  %v9858_v9 = vld [vmem:[%s15159_s7 + $0x50] sm:$0xff] }
 0x1ed   :  { %v12778_v17 = vpop.eup %12777 }
 0x1ee   :  { %v1621_v49 = vmul.f32 0.0, %v12778_v17  ;;  %v9844_v17 = vld [vmem:[%s15221_s13 + $0x80] sm:$0xff] }
 0x1f0   :  { %v12780_v47 = vpop.eup %12779  ;;  %v13975_v7 = vadd.f32 %v1622_v51, %v1621_v49  ;;  %v9845_v49 = vld [vmem:[%s15221_s13 + $0x88] sm:$0xff]  ;;  %v14016_v51 = vpack.c.bf16 %v9847_v32, %v9846_v15  ;;  %v9859_v15 = vld [vmem:[%s15159_s7 + $0x58] sm:$0xff] }
 0x1f1   :  { %v1617_v12 = vadd.f32 1.0, %v12780_v47  ;;  %v13992_v13 = vpack.c.bf16 %v9845_v49, %v9844_v17  ;;  %v1325_v17 = vld [vmem:[#allocation13] sm:$0xff]  ;;  %v1326_v49 = vld [vmem:[#allocation13 + $0x8] sm:$0xff]  ;;  %v1327_v32 = vld [vmem:[#allocation13 + $0x10] sm:$0xff] }
 0x1f2   :  { %12781 = vtanh.f32 %v13975_v7  ;;  %v14034_v20 = vpack.c.bf16 %v1326_v49, %v1325_v17  ;;  %v9848_v17 = vld [vmem:[%s15221_s13 + $0xa0] sm:$0xff]  ;;  %v9849_v49 = vld [vmem:[%s15221_s13 + $0xa8] sm:$0xff] }
 0x1f3   :  { %12783 = vrcp.f32 %v1617_v12  ;;  %v9856_v12 = vld [vmem:[%s15159_s7 + $0x40] sm:$0xff] }
 0x1fc   :  { %v12782_v47 = vpop.eup %12781 }
 0x1fd   :  { %v12784_v23 = vpop.eup %12783 }
 0x1fe   :  { %v13997_v1 = vmul.f32 %v12784_v23, %v12782_v47  ;;  %v15254_v47 = vmov 0.0   ;;  %v14032_v23 = vpack.c.bf16 %v9857_v0, %v9856_v12  ;;  %v14048_v12 = vpack.c.bf16 %v9859_v15, %v9858_v9  ;;  %v9850_v15 = vld [vmem:[%s15221_s13 + $0xb0] sm:$0xff] }
 0x1ff   :  { %v14050_v0 = vpack.c.bf16 %v1328_v57, %v1327_v32  ;;  %v14066_v57 = vpack.c.bf16 %v9849_v49, %v9848_v17  ;;  %v14068_v9 = vpack.c.bf16 %v1331_v11, %v1330_v53  ;;  %v9851_v32 = vld [vmem:[%s15221_s13 + $0xb8] sm:$0xff]  ;;  %v14085_v53 = vpack.c.bf16 %v1333_v34, %v1332_v35  ;;  %v1335_v17 = vld [vmem:[#allocation13 + $0x40] sm:$0xff]  ;;  %v1336_v49 = vld [vmem:[#allocation13 + $0x48] sm:$0xff] }
 0x200   :  { %10781 = vmatmul.mubr.msk.f32.vlgmr.msra.gmra.mrb[28].mxu1 %vm1391_vm7, %v13997_v1  ;;  %10803 = vmatmul.mubr.msk.f32.vlgmr.msra.gmra.mrb[22].mxu0 %vm1391_vm7, %v13997_v1  ;;  %v14083_v11 = vpack.c.bf16 %v9851_v32, %v9850_v15  ;;  %v14095_v15 = vpack.c.bf16 %v1336_v49, %v1335_v17  ;;  %v1337_v34 = vld [vmem:[#allocation13 + $0x50] sm:$0xff]  ;;  %v1338_v35 = vld [vmem:[#allocation13 + $0x58] sm:$0xff]  ;;  %v1354_v17 = vld [vmem:[#allocation15] sm:$0xff] }
 0x201   :  { %11994 = vmatpush3.bf16.msra.mxu1 %v13990_v45  ;;  %12006 = vmatpush3.bf16.msra.mxu0 %v13992_v13  ;;  %v14102_v32 = vpack.c.bf16 %v1338_v35, %v1337_v34  ;;  %v1355_v49 = vld [vmem:[#allocation15 + $0x8] sm:$0xff]  ;;  %v1359_v34 = vld [vmem:[#allocation15 + $0x20] sm:$0xff] }
 0x202   :  { %11995 = vmatprep.subr.bf16.mxu1 %v15253_v19  ;;  %12007 = vmatprep.subr.bf16.mxu0 %v15253_v19  ;;  %v14114_v35 = vpack.c.bf16 %v1355_v49, %v1354_v17  ;;  %v14116_v3 = vpack.c.bf16 %v1360_v63, %v1359_v34  ;;  %v9796_v63 = vld [vmem:[#allocation4 + $0x1] ss:$0 sm:$0xff]  ;;  %v14131_v49 = vld [vmem:[#allocation7] ss:$0 sm:$0xff] }
 0x203   :  { %10791 = vmatprep.mubr.msk.f32.mxu1 %vm13330_vm0, %v15254_v47  ;;  %10813 = vmatprep.mubr.msk.f32.mxu0 %vm13330_vm0, %v15254_v47  ;;  %v378_v40 = vadd.f32 %v9796_v63, %v13862_v56  ;;  %v1111_v56 = vadd.f32 %v13943_v27, %v13949_v44 }
 0x204   :  { %15255 = vst [vmem:[#allocation55_spill] sm:$0xff] %v14116_v3 }
 0x205   :  { %11997 = vmatpush3.bf16.msra.mxu1 %v14014_v37  ;;  %12009 = vmatpush3.bf16.msra.mxu0 %v14016_v51  ;;  %v9799_v17 = vmul.f32 -1.442695, %v378_v40 }
 0x206   :  { %12010 = vmatprep.subr.bf16.mxu1 %v15253_v19  ;;  %12022 = vmatprep.subr.bf16.mxu0 %v15253_v19 }
 0x207   :  { %12785 = vpow2.f32 %v9799_v17 }
 0x208   :  { %10792 = vmatmul.mubr.f32.vlgmr.msra.gmra.mrb[28].mxu1 %v15254_v47  ;;  %10814 = vmatmul.mubr.f32.vlgmr.msra.gmra.mrb[22].mxu0 %v15254_v47 }
 0x209   :  { %12012 = vmatpush3.bf16.msra.mxu1 %v14032_v23  ;;  %12024 = vmatpush3.bf16.msra.mxu0 %v14034_v20 }
 0x20a   :  { %12013 = vmatprep.subr.bf16.mxu1 %v15253_v19  ;;  %12025 = vmatprep.subr.bf16.mxu0 %v15253_v19 }
 0x20b   :  { %10824 = vmatprep.mubr.msk.f32.mxu1 %vm13330_vm0, %v15254_v47  ;;  %10846 = vmatprep.mubr.msk.f32.mxu0 %vm13330_vm0, %v15254_v47 }
 0x20d   :  { %12015 = vmatpush3.bf16.msra.mxu1 %v14048_v12  ;;  %12027 = vmatpush3.bf16.msra.mxu0 %v14050_v0 }
 0x20e   :  { %12016 = vmatprep.subr.bf16.mxu1 %v15253_v19  ;;  %12028 = vmatprep.subr.bf16.mxu0 %v15253_v19 }
 0x210   :  { %10825 = vmatmul.mubr.msk.f32.vlgmr.msra.gmra.mrb[30].mxu1 %vm1391_vm7, %v13997_v1  ;;  %10847 = vmatmul.mubr.f32.vlgmr.msra.gmra.mrb[24].mxu0 %v15254_v47 }
 0x211   :  { %12018 = vmatpush3.bf16.msra.mxu1 %v14066_v57  ;;  %12030 = vmatpush3.bf16.msra.mxu0 %v14068_v9  ;;  %v12786_v61 = vpop.eup %12785 }
 0x212   :  { %12019 = vmatprep.subr.bf16.mxu1 %v15253_v19  ;;  %12031 = vmatprep.subr.bf16.mxu0 %v15253_v19 }
 0x213   :  { %10835 = vmatprep.mubr.msk.f32.mxu1 %vm13330_vm0, %v15254_v47  ;;  %10857 = vmatprep.mubr.msk.f32.mxu0 %vm13330_vm0, %v15254_v47 }
 0x215   :  { %12021 = vmatpush3.bf16.msra.mxu1 %v14083_v11  ;;  %12033 = vmatpush3.bf16.msra.mxu0 %v14085_v53 }
 0x216   :  { %12034 = vmatprep.subr.bf16.mxu1 %v15253_v19  ;;  %12040 = vmatprep.subr.bf16.mxu0 %v15253_v19 }
 0x218   :  { %10836 = vmatmul.mubr.f32.vlgmr.msra.gmra.mrb[30].mxu1 %v15254_v47  ;;  %10858 = vmatmul.mubr.f32.vlgmr.msra.gmra.mrb[26].mxu0 %v15254_v47 }
 0x219   :  { %12036 = vmatpush3.bf16.msra.mxu1 %v14095_v15  ;;  %10868 = vmatprep.mubr.msk.f32.mxu1 %vm13330_vm0, %v15254_v47 }
 0x21a   :  { %12037 = vmatprep.subr.bf16.mxu1 %v15253_v19  ;;  %10879 = vmatprep.mubr.msk.f32.mxu0 %vm13330_vm0, %v15254_v47 }
 0x21b   :  { %12042 = vmatpush3.bf16.msra.mxu0 %v14114_v35 }
 0x21c   :  { %12043 = vmatprep.subr.bf16.mxu0 %v15253_v19 }
 0x21d   :  { %12039 = vmatpush3.bf16.msra.mxu1 %v14102_v32 }
 0x21e   :  { %12052 = vmatprep.subr.bf16.mxu1 %v15253_v19 }
 0x21f   :  { %12045 = vmatpush3.bf16.msra.mxu0 %v14119_v60 }
 0x220   :  { %10869 = vmatmul.mubr.f32.vlgmr.msra.gmra.mrb[32].mxu1 %v15254_v47  ;;  %12046 = vmatprep.subr.bf16.mxu0 %v15253_v19 }
 0x221   :  { %10901 = vmatprep.mubr.msk.f32.mxu1 %vm13330_vm0, %v15254_v47  ;;  %12054 = vmatpush3.bf16.msra.mxu1 %v14116_v3 }
 0x222   :  { %12055 = vmatprep.subr.bf16.mxu1 %v15253_v19 }
 0x225   :  { %12057 = vmatpush3.bf16.msra.mxu1 %v14123_v25 }
 0x226   :  { %12058 = vmatprep.subr.bf16.mxu1 %v15253_v19 }
 0x2db   :  { %v1765_v50 = vpop.f32.mrb[28].mxu1  ;;  %v14134_v34 = vpop.f32.mrb[22].mxu0 }
 0x2dc   :  { %v12642_v24 = vadd.f32 %v14131_v49, %v1765_v50  ;;  %v10793_v6 = vpop.f32.mrb[29].mxu1  ;;  %v10815_v2 = vpop.f32.mrb[23].mxu0  ;;  %v384_v50 = vadd.f32 1.0, %v12786_v61 }
 0x2dd   :  { %v1209_v6 = vadd.f32 %v13926_v58, %v13933_v8 }
 0x2de   :  { %v9900_v55 = vmul.f32 -1.442695, %v12642_v24 }
 0x2e0   :  { %12787 = vpow2.f32 %v9900_v55 }
 0x2e1   :  { %12789 = vpow2.f32 %v9866_v5 }
 0x2e3   :  { %v2136_v63 = vpop.f32.mrb[24].mxu0 }
 0x2e4   :  { %v2140_v40 = vadd.f32 %v2136_v63, %v1111_v56  ;;  %v10848_v30 = vpop.f32.mrb[25].mxu0  ;;  %v1307_v63 = vadd.f32 %v13957_v59, %v13962_v31 }
 0x2e6   :  { %v9902_v28 = vmul.f32 -1.442695, %v2140_v40 }
 0x2e8   :  { %12791 = vpow2.f32 %v9902_v28 }
 0x2ea   :  { %v12788_v10 = vpop.eup %12787 }
 0x2eb   :  { %v2055_v24 = vadd.f32 1.0, %v12788_v10  ;;  %v2047_v2 = vpop.f32.mrb[30].mxu1  ;;  %v2207_v55 = vpop.f32.mrb[26].mxu0 }
 0x2ec   :  { %v12644_v17 = vadd.f32 %v14139_v41, %v2047_v2  ;;  %v2211_v27 = vadd.f32 %v2207_v55, %v1209_v6  ;;  %v10837_v44 = vpop.f32.mrb[31].mxu1  ;;  %v10859_v5 = vpop.f32.mrb[27].mxu0 }
 0x2ed   :  { %v12790_v21 = vpop.eup %12789  ;;  %12793 = vrcp.f32 %v2055_v24 }
 0x2ee   :  { %12795 = vrcp.f32 %v384_v50  ;;  %v9903_v28 = vmul.f32 -1.442695, %v2211_v27  ;;  %v923_v30 = vadd.f32 1.0, %v12790_v21 }
 0x2ef   :  { %12797 = vtanh.f32 %v12644_v17 }
 0x2f0   :  { %12799 = vpow2.f32 %v9903_v28 }
 0x2f1   :  { %12801 = vrcp.f32 %v923_v30  ;;  %v1340_v30 = vld [vmem:[#allocation13 + $0x60] sm:$0xff] }
 0x2f2   :  { %v12792_v56 = vpop.eup %12791 }
 0x2f3   :  { %v2286_v40 = vadd.f32 1.0, %v12792_v56  ;;  %v2278_v10 = vpop.f32.mrb[32].mxu1  ;;  %v1341_v56 = vld [vmem:[#allocation13 + $0x68] sm:$0xff] }
 0x2f4   :  { %v2282_v58 = vadd.f32 %v2278_v10, %v1307_v63  ;;  %v10870_v8 = vpop.f32.mrb[33].mxu1  ;;  %v1345_v63 = vld [vmem:[#allocation13 + $0x80] sm:$0xff] }
 0x2f5   :  { %12803 = vrcp.f32 %v2286_v40  ;;  %v1346_v40 = vld [vmem:[#allocation13 + $0x88] sm:$0xff]  ;;  %v14157_v8 = vpack.c.bf16 %v1341_v56, %v1340_v30  ;;  %v1366_v56 = vld [vmem:[#allocation15 + $0x50] sm:$0xff] }
 0x2f6   :  { %12805 = vtanh.f32 %v2282_v58 }
 0x2f7   :  { %v12794_v61 = vpop.eup %12793 }
 0x2f8   :  { %v14146_v6 = vpop.eup %12795  ;;  %v2065_v24 = vmul.f32 0.0, %v12794_v61  ;;  %v14159_v61 = vpack.c.bf16 %v1346_v40, %v1345_v63  ;;  %v1367_v63 = vld [vmem:[#allocation15 + $0x58] sm:$0xff] }
 0x2f9   :  { %v12798_v50 = vpop.eup %12797  ;;  %v14189_v40 = vpack.c.bf16 %v1367_v63, %v1366_v56  ;;  %v14248_v63 = vld [vmem:[%s15168_s16] ss:$0 sm:$0xff] }
 0x2fa   :  { %v2066_v2 = vmul.f32 %v12798_v50, %v14146_v6  ;;  %v12800_v17 = vpop.eup %12799  ;;  %15257 = vst [vmem:[#allocation57_spill] sm:$0xff] %v14248_v63 }
 0x2fb   :  { %v14151_v27 = vpop.eup %12801  ;;  %v2292_v5 = vadd.f32 1.0, %v12800_v17  ;;  %v1347_v17 = vld [vmem:[#allocation13 + $0x90] sm:$0xff] }
 0x2fc   :  { %v14149_v55 = vadd.f32 %v2066_v2, %v2065_v24  ;;  %v1342_v24 = vld [vmem:[#allocation13 + $0x70] sm:$0xff]  ;;  %v1343_v2 = vld [vmem:[#allocation13 + $0x78] sm:$0xff] }
 0x2fd   :  { %12807 = vrcp.f32 %v2292_v5  ;;  %v1364_v5 = vld [vmem:[#allocation15 + $0x40] sm:$0xff] }
 0x2ff   :  { %v12804_v59 = vpop.eup %12803 }
 0x300   :  { %v12806_v31 = vpop.eup %12805  ;;  %v2296_v44 = vmul.f32 0.0, %v12804_v59  ;;  %v1348_v59 = vld [vmem:[#allocation13 + $0x98] sm:$0xff] }
 0x301   :  { %v2297_v21 = vmul.f32 %v12806_v31, %v14151_v27  ;;  %v14169_v31 = vpack.c.bf16 %v1343_v2, %v1342_v24  ;;  %v1352_v2 = vld [vmem:[#allocation13 + $0xb0] sm:$0xff] }
 0x303   :  { %v14154_v28 = vadd.f32 %v2297_v21, %v2296_v44  ;;  %v14171_v44 = vpack.c.bf16 %v1348_v59, %v1347_v17  ;;  %v1365_v21 = vld [vmem:[#allocation15 + $0x48] sm:$0xff]  ;;  %v1353_v17 = vld [vmem:[#allocation13 + $0xb8] sm:$0xff] }
 0x304   :  { %v14181_v30 = vpack.c.bf16 %v1365_v21, %v1364_v5  ;;  %v14209_v59 = vpack.c.bf16 %v1353_v17, %v1352_v2  ;;  %v9868_v5 = vld [vmem:[#allocation9 + $0x1] ss:$0 sm:$0xff] }
 0x305   :  { %12809 = vtanh.f32 %v14154_v28  ;;  %v1006_v21 = vadd.f32 %v9868_v5, %v13935_v14 }
 0x307   :  { %v12808_v10 = vpop.eup %12807  ;;  %v9871_v56 = vmul.f32 -1.442695, %v1006_v21 }
 0x309   :  { %12811 = vpow2.f32 %v9871_v56 }
 0x30f   :  { %v12810_v58 = vpop.eup %12809 }
 0x310   :  { %v14161_v50 = vmul.f32 %v12810_v58, %v12808_v10  ;;  %v1350_v10 = vld [vmem:[#allocation13 + $0xa0] sm:$0xff]  ;;  %v1351_v58 = vld [vmem:[#allocation13 + $0xa8] sm:$0xff] }
 0x311   :  { %v14199_v24 = vpack.c.bf16 %v1351_v58, %v1350_v10 }
 0x312   :  { %10880 = vmatmul.mubr.msk.f32.vlgmr.msra.gmra.mrb[28].mxu0 %vm1391_vm7, %v14161_v50  ;;  %10902 = vmatmul.mubr.msk.f32.vlgmr.msra.gmra.mrb[34].mxu1 %vm1391_vm7, %v14161_v50 }
 0x313   :  { %12048 = vmatpush3.bf16.msra.mxu0 %v14157_v8  ;;  %12060 = vmatpush3.bf16.msra.mxu1 %v14159_v61  ;;  %v12812_v21 = vpop.eup %12811 }
 0x314   :  { %12049 = vmatprep.subr.bf16.mxu0 %v15253_v19  ;;  %12061 = vmatprep.subr.bf16.mxu1 %v15253_v19 }
 0x315   :  { %10890 = vmatprep.mubr.msk.f32.mxu0 %vm13330_vm0, %v15254_v47  ;;  %10912 = vmatprep.mubr.msk.f32.mxu1 %vm13330_vm0, %v15254_v47 }
 0x317   :  { %12051 = vmatpush3.bf16.msra.mxu0 %v14169_v31  ;;  %12063 = vmatpush3.bf16.msra.mxu1 %v14171_v44 }
 0x318   :  { %12064 = vmatprep.subr.bf16.mxu0 %v15253_v19  ;;  %12076 = vmatprep.subr.bf16.mxu1 %v15253_v19 }
 0x31a   :  { %10891 = vmatmul.mubr.f32.vlgmr.msra.gmra.mrb[28].mxu0 %v15254_v47  ;;  %10913 = vmatmul.mubr.f32.vlgmr.msra.gmra.mrb[34].mxu1 %v15254_v47 }
 0x31b   :  { %12066 = vmatpush3.bf16.msra.mxu0 %v14181_v30  ;;  %12078 = vmatpush3.bf16.msra.mxu1 %v13723_v22 }
 0x31c   :  { %12067 = vmatprep.subr.bf16.mxu0 %v15253_v19  ;;  %12079 = vmatprep.subr.bf16.mxu1 %v15253_v19 }
 0x31d   :  { %10923 = vmatprep.mubr.msk.f32.mxu0 %vm13330_vm0, %v15254_v47  ;;  %10945 = vmatprep.mubr.msk.f32.mxu1 %vm13330_vm0, %v15254_v47 }
 0x31f   :  { %12069 = vmatpush3.bf16.msra.mxu0 %v14189_v40  ;;  %12081 = vmatpush3.bf16.msra.mxu1 %v13745_v29 }
 0x320   :  { %12070 = vmatprep.subr.bf16.mxu0 %v15253_v19  ;;  %12082 = vmatprep.subr.bf16.mxu1 %v15253_v19 }
 0x322   :  { %10924 = vmatmul.mubr.msk.f32.vlgmr.msra.gmra.mrb[30].mxu0 %vm1391_vm7, %v14161_v50  ;;  %10946 = vmatmul.mubr.msk.f32.vlgmr.msra.gmra.mrb[36].mxu1 %vm1391_vm7, %v13997_v1 }
 0x323   :  { %12072 = vmatpush3.bf16.msra.mxu0 %v14199_v24  ;;  %12084 = vmatpush3.bf16.msra.mxu1 %v13796_v39 }
 0x324   :  { %12073 = vmatprep.subr.bf16.mxu0 %v15253_v19  ;;  %12085 = vmatprep.subr.bf16.mxu1 %v15253_v19 }
 0x325   :  { %10934 = vmatprep.mubr.msk.f32.mxu0 %vm13330_vm0, %v15254_v47  ;;  %10956 = vmatprep.mubr.msk.f32.mxu1 %vm13330_vm0, %v15254_v47 }
 0x327   :  { %12075 = vmatpush3.bf16.msra.mxu0 %v14209_v59  ;;  %12087 = vmatpush3.bf16.msra.mxu1 %v13809_v42 }
 0x328   :  { %12088 = vmatprep.subr.bf16.mxu0 %v15253_v19  ;;  %12094 = vmatprep.subr.bf16.mxu1 %v15253_v19 }
 0x32a   :  { %10935 = vmatmul.mubr.f32.vlgmr.msra.gmra.mrb[30].mxu0 %v15254_v47  ;;  %10957 = vmatmul.mubr.msk.f32.vlgmr.msra.gmra.mrb[38].mxu1 %vm1391_vm7, %v13997_v1 }
 0x32b   :  { %12090 = vmatpush3.bf16.msra.mxu0 %v13763_v33  ;;  %10967 = vmatprep.mubr.msk.f32.mxu0 %vm13330_vm0, %v15254_v47  ;;  %v1012_v33 = vadd.f32 1.0, %v12812_v21 }
 0x32c   :  { %12091 = vmatprep.subr.bf16.mxu0 %v15253_v19  ;;  %12096 = vmatpush3.bf16.msra.mxu1 %v13831_v46 }
 0x32d   :  { %12097 = vmatprep.subr.bf16.mxu1 %v15253_v19  ;;  %10978 = vmatprep.mubr.msk.f32.mxu1 %vm13330_vm0, %v15254_v47 }
 0x32f   :  { %12093 = vmatpush3.bf16.msra.mxu0 %v13780_v36  ;;  %v14257_v36 = vld [vmem:[%s15168_s16 + $0x2] ss:$0 sm:$0xff] }
 0x330   :  { %12106 = vmatprep.subr.bf16.mxu0 %v15253_v19  ;;  %12099 = vmatpush3.bf16.msra.mxu1 %v13851_v52 }
 0x331   :  { %12100 = vmatprep.subr.bf16.mxu1 %v15253_v19 }
 0x332   :  { %10968 = vmatmul.mubr.msk.f32.vlgmr.msra.gmra.mrb[32].mxu0 %vm1391_vm7, %v13997_v1 }
 0x333   :  { %12108 = vmatpush3.bf16.msra.mxu0 %v13836_v48  ;;  %11000 = vmatprep.mubr.msk.f32.mxu0 %vm13330_vm0, %v15254_v47 }
 0x334   :  { %12109 = vmatprep.subr.bf16.mxu0 %v15253_v19 }
 0x337   :  { %12111 = vmatpush3.bf16.msra.mxu0 %v13856_v54 }
 0x338   :  { %12112 = vmatprep.subr.bf16.mxu0 %v15253_v19 }
 0x3ed   :  { %v2440_v1 = vpop.f32.mrb[28].mxu0  ;;  %v14250_v10 = vpop.f32.mrb[34].mxu1 }
 0x3ee   :  { %v12645_v58 = vadd.f32 %v14248_v63, %v2440_v1  ;;  %v10892_v2 = vpop.f32.mrb[29].mxu0  ;;  %v10914_v17 = vpop.f32.mrb[35].mxu1 }
 0x3f0   :  { %v9907_v54 = vmul.f32 -1.442695, %v12645_v58 }
 0x3f2   :  { %12813 = vpow2.f32 %v9907_v54 }
 0x3f5   :  { %v2811_v48 = vpop.f32.mrb[36].mxu1 }
 0x3f6   :  { %v2815_v52 = vadd.f32 %v2811_v48, %v13867_v62  ;;  %v10947_v14 = vpop.f32.mrb[37].mxu1  ;;  %v14261_v62 = vld [vmem:[#allocation7 + $0x1] ss:$0 sm:$0xff] }
 0x3f8   :  { %v9912_v5 = vmul.f32 -1.442695, %v2815_v52 }
 0x3fa   :  { %12815 = vpow2.f32 %v9912_v5 }
 0x3fc   :  { %v12814_v46 = vpop.eup %12813 }
 0x3fd   :  { %v2730_v1 = vadd.f32 1.0, %v12814_v46  ;;  %v2722_v2 = vpop.f32.mrb[30].mxu0  ;;  %v2882_v17 = vpop.f32.mrb[38].mxu1  ;;  %v12643_v46 = vadd.f32 %v14261_v62, %v14134_v34 }
 0x3fe   :  { %v12647_v56 = vadd.f32 %v14257_v36, %v2722_v2  ;;  %v2886_v54 = vadd.f32 %v2882_v17, %v13890_v16  ;;  %v10936_v58 = vpop.f32.mrb[31].mxu0  ;;  %v10958_v48 = vpop.f32.mrb[39].mxu1 }
 0x3ff   :  { %12817 = vrcp.f32 %v2730_v1 }
 0x400   :  { %12819 = vrcp.f32 %v1012_v33  ;;  %v9913_v52 = vmul.f32 -1.442695, %v2886_v54  ;;  %v9901_v33 = vmul.f32 -1.442695, %v12643_v46 }
 0x401   :  { %12821 = vtanh.f32 %v12647_v56 }
 0x402   :  { %12823 = vpow2.f32 %v9913_v52 }
 0x404   :  { %v12816_v14 = vpop.eup %12815 }
 0x405   :  { %v2961_v5 = vadd.f32 1.0, %v12816_v14  ;;  %v2953_v63 = vpop.f32.mrb[32].mxu0 }
 0x406   :  { %v2957_v21 = vadd.f32 %v2953_v63, %v13892_v18  ;;  %v10969_v2 = vpop.f32.mrb[33].mxu0 }
 0x407   :  { %12825 = vrcp.f32 %v2961_v5 }
 0x408   :  { %12827 = vtanh.f32 %v2957_v21 }
 0x409   :  { %v12818_v16 = vpop.eup %12817  ;;  %12829 = vpow2.f32 %v9901_v33 }
 0x40a   :  { %v14266_v17 = vpop.eup %12819  ;;  %v2740_v1 = vmul.f32 0.0, %v12818_v16 }
 0x40b   :  { %v12822_v56 = vpop.eup %12821 }
 0x40c   :  { %v2741_v54 = vmul.f32 %v12822_v56, %v14266_v17  ;;  %v12824_v48 = vpop.eup %12823 }
 0x40d   :  { %v2967_v18 = vadd.f32 1.0, %v12824_v48 }
 0x40e   :  { %v14269_v58 = vadd.f32 %v2741_v54, %v2740_v1 }
 0x40f   :  { %12831 = vrcp.f32 %v2967_v18 }
 0x411   :  { %v12826_v52 = vpop.eup %12825 }
 0x412   :  { %v12828_v14 = vpop.eup %12827  ;;  %v2971_v34 = vmul.f32 %v12826_v52, %v13975_v7 }
 0x413   :  { %v2972_v63 = vmul.f32 %v12828_v14, %v13972_v43  ;;  %v12830_v46 = vpop.eup %12829 }
 0x414   :  { %v2061_v21 = vadd.f32 1.0, %v12830_v46 }
 0x415   :  { %v14273_v5 = vadd.f32 %v2972_v63, %v2971_v34 }
 0x417   :  { %12833 = vtanh.f32 %v14273_v5 }
 0x418   :  { %12835 = vtanh.f32 %v14149_v55 }
 0x419   :  { %12837 = vrcp.f32 %v2061_v21  ;;  %v12832_v2 = vpop.eup %12831 }
 0x421   :  { %v12834_v16 = vpop.eup %12833 }
 0x422   :  { %v14277_v33 = vmul.f32 %v12834_v16, %v12832_v2  ;;  %v12836_v7 = vpop.eup %12835 }
 0x423   :  { %v12838_v1 = vpop.eup %12837 }
 0x424   :  { %10979 = vmatmul.mubr.msk.f32.vlgmr.msra.gmra.mrb[40].mxu1 %vm1391_vm7, %v14277_v33  ;;  %11001 = vmatmul.mubr.msk.f32.vlgmr.msra.gmra.mrb[34].mxu0 %vm1391_vm7, %v14277_v33  ;;  %v2069_v56 = vmul.f32 %v12838_v1, %v12836_v7 }
 0x425   :  { %12102 = vmatpush3.bf16.msra.mxu1 %v13990_v45  ;;  %12114 = vmatpush3.bf16.msra.mxu0 %v13992_v13 }
 0x426   :  { %12103 = vmatprep.subr.bf16.mxu1 %v15253_v19  ;;  %12115 = vmatprep.subr.bf16.mxu0 %v15253_v19 }
 0x427   :  { %10989 = vmatprep.mubr.msk.f32.mxu1 %vm13330_vm0, %v15254_v47  ;;  %11011 = vmatprep.mubr.msk.f32.mxu0 %vm13330_vm0, %v15254_v47 }
 0x429   :  { %12105 = vmatpush3.bf16.msra.mxu1 %v14014_v37  ;;  %12117 = vmatpush3.bf16.msra.mxu0 %v14016_v51 }
 0x42a   :  { %12118 = vmatprep.subr.bf16.mxu1 %v15253_v19  ;;  %12130 = vmatprep.subr.bf16.mxu0 %v15253_v19 }
 0x42c   :  { %10990 = vmatmul.mubr.msk.f32.vlgmr.msra.gmra.mrb[40].mxu1 %vm1391_vm7, %v2069_v56  ;;  %11012 = vmatmul.mubr.msk.f32.vlgmr.msra.gmra.mrb[34].mxu0 %vm1391_vm7, %v2069_v56 }
 0x42d   :  { %12120 = vmatpush3.bf16.msra.mxu1 %v14032_v23  ;;  %12132 = vmatpush3.bf16.msra.mxu0 %v14034_v20 }
 0x42e   :  { %12121 = vmatprep.subr.bf16.mxu1 %v15253_v19  ;;  %12133 = vmatprep.subr.bf16.mxu0 %v15253_v19 }
 0x42f   :  { %11022 = vmatprep.mubr.msk.f32.mxu1 %vm13330_vm0, %v15254_v47  ;;  %11044 = vmatprep.mubr.msk.f32.mxu0 %vm13330_vm0, %v15254_v47 }
 0x431   :  { %12123 = vmatpush3.bf16.msra.mxu1 %v14048_v12  ;;  %12135 = vmatpush3.bf16.msra.mxu0 %v14050_v0 }
 0x432   :  { %12124 = vmatprep.subr.bf16.mxu1 %v15253_v19  ;;  %12136 = vmatprep.subr.bf16.mxu0 %v15253_v19 }
 0x434   :  { %11023 = vmatmul.mubr.msk.f32.vlgmr.msra.gmra.mrb[42].mxu1 %vm1391_vm7, %v14277_v33  ;;  %11045 = vmatmul.mubr.msk.f32.vlgmr.msra.gmra.mrb[36].mxu0 %vm1391_vm7, %v14161_v50 }
 0x435   :  { %12126 = vmatpush3.bf16.msra.mxu1 %v14066_v57  ;;  %12138 = vmatpush3.bf16.msra.mxu0 %v14068_v9 }
 0x436   :  { %12127 = vmatprep.subr.bf16.mxu1 %v15253_v19  ;;  %12139 = vmatprep.subr.bf16.mxu0 %v15253_v19 }
 0x437   :  { %11033 = vmatprep.mubr.msk.f32.mxu1 %vm13330_vm0, %v15254_v47  ;;  %11055 = vmatprep.mubr.msk.f32.mxu0 %vm13330_vm0, %v15254_v47 }
 0x439   :  { %12129 = vmatpush3.bf16.msra.mxu1 %v14083_v11  ;;  %12141 = vmatpush3.bf16.msra.mxu0 %v14085_v53 }
 0x43a   :  { %12142 = vmatprep.subr.bf16.mxu1 %v15253_v19  ;;  %12148 = vmatprep.subr.bf16.mxu0 %v15253_v19 }
 0x43c   :  { %11034 = vmatmul.mubr.msk.f32.vlgmr.msra.gmra.mrb[42].mxu1 %vm1391_vm7, %v2069_v56  ;;  %11056 = vmatmul.mubr.msk.f32.vlgmr.msra.gmra.mrb[38].mxu0 %vm1391_vm7, %v14161_v50 }
 0x43d   :  { %12144 = vmatpush3.bf16.msra.mxu1 %v14095_v15  ;;  %11066 = vmatprep.mubr.msk.f32.mxu1 %vm13330_vm0, %v15254_v47 }
 0x43e   :  { %12145 = vmatprep.subr.bf16.mxu1 %v15253_v19  ;;  %12150 = vmatpush3.bf16.msra.mxu0 %v14114_v35 }
 0x43f   :  { %12151 = vmatprep.subr.bf16.mxu0 %v15253_v19  ;;  %11077 = vmatprep.mubr.msk.f32.mxu0 %vm13330_vm0, %v15254_v47 }
 0x441   :  { %12147 = vmatpush3.bf16.msra.mxu1 %v14102_v32 }
 0x442   :  { %12160 = vmatprep.subr.bf16.mxu1 %v15253_v19  ;;  %12153 = vmatpush3.bf16.msra.mxu0 %v14119_v60 }
 0x443   :  { %12154 = vmatprep.subr.bf16.mxu0 %v15253_v19 }
 0x444   :  { %11067 = vmatmul.mubr.msk.f32.vlgmr.msra.gmra.mrb[44].mxu1 %vm1391_vm7, %v14161_v50 }
 0x445   :  { %12162 = vmatpush3.bf16.msra.mxu1 %v14116_v3  ;;  %11099 = vmatprep.mubr.msk.f32.mxu1 %vm13330_vm0, %v15254_v47 }
 0x446   :  { %12163 = vmatprep.subr.bf16.mxu1 %v15253_v19 }
 0x449   :  { %12165 = vmatpush3.bf16.msra.mxu1 %v14123_v25 }
 0x44a   :  { %12166 = vmatprep.subr.bf16.mxu1 %v15253_v19 }
 0x4ff   :  { %v3118_v54 = vpop.f32.mrb[40].mxu1  ;;  %v14348_v48 = vpop.f32.mrb[34].mxu0 }
 0x500   :  { %v12648_v52 = vadd.f32 %v14131_v49, %v3118_v54  ;;  %v10991_v14 = vpop.f32.mrb[41].mxu1  ;;  %v11013_v34 = vpop.f32.mrb[35].mxu0 }
 0x502   :  { %v9920_v18 = vmul.f32 -1.442695, %v12648_v52 }
 0x504   :  { %12839 = vpow2.f32 %v9920_v18 }
 0x507   :  { %v3489_v50 = vpop.f32.mrb[36].mxu0 }
 0x508   :  { %v3493_v63 = vadd.f32 %v3489_v50, %v13947_v38  ;;  %v11046_v46 = vpop.f32.mrb[37].mxu0  ;;  %v14357_v38 = vld [vmem:[%s15168_s16 + $0x1] ss:$0 sm:$0xff] }
 0x509   :  { %v12646_v50 = vadd.f32 %v14357_v38, %v14250_v10 }
 0x50a   :  { %v9925_v21 = vmul.f32 -1.442695, %v3493_v63 }
 0x50b   :  { %v9908_v46 = vmul.f32 -1.442695, %v12646_v50 }
 0x50c   :  { %12841 = vpow2.f32 %v9925_v21 }
 0x50e   :  { %v12840_v2 = vpop.eup %12839 }
 0x50f   :  { %v3408_v16 = vadd.f32 1.0, %v12840_v2  ;;  %v3400_v7 = vpop.f32.mrb[42].mxu1  ;;  %v3560_v1 = vpop.f32.mrb[38].mxu0 }
 0x510   :  { %v12650_v56 = vadd.f32 %v14139_v41, %v3400_v7  ;;  %v3564_v25 = vadd.f32 %v3560_v1, %v13931_v4  ;;  %v11035_v3 = vpop.f32.mrb[43].mxu1  ;;  %v11057_v54 = vpop.f32.mrb[39].mxu0 }
 0x511   :  { %12843 = vrcp.f32 %v3408_v16 }
 0x512   :  { %12845 = vtanh.f32 %v12650_v56  ;;  %v9926_v52 = vmul.f32 -1.442695, %v3564_v25 }
 0x514   :  { %12847 = vpow2.f32 %v9926_v52 }
 0x516   :  { %v12842_v14 = vpop.eup %12841 }
 0x517   :  { %v3639_v34 = vadd.f32 1.0, %v12842_v14  ;;  %v3631_v18 = vpop.f32.mrb[44].mxu1 }
 0x518   :  { %v3635_v63 = vadd.f32 %v3631_v18, %v13960_v26  ;;  %v11068_v4 = vpop.f32.mrb[45].mxu1 }
 0x519   :  { %12849 = vrcp.f32 %v3639_v34 }
 0x51a   :  { %12851 = vtanh.f32 %v3635_v63 }
 0x51b   :  { %v12844_v3 = vpop.eup %12843  ;;  %12853 = vpow2.f32 %v9908_v46  ;;  %v15259_v46 = vld [vmem:[#allocation27_spill] sm:$0xff] }
 0x51c   :  { %v3418_v25 = vmul.f32 %v12844_v3, %v14149_v55  ;;  %v12846_v21 = vpop.eup %12845  ;;  %v15258_v3 = vld [vmem:[#allocation24_spill] sm:$0xff] }
 0x51d   :  { %v3419_v2 = vmul.f32 %v12846_v21, %v14146_v6  ;;  %v15261_v21 = vld [vmem:[#allocation29_spill] sm:$0xff] }
 0x51e   :  { %v12848_v7 = vpop.eup %12847 }
 0x51f   :  { %v14364_v16 = vadd.f32 %v3419_v2, %v3418_v25  ;;  %v3645_v54 = vadd.f32 1.0, %v12848_v7  ;;  %v15260_v25 = vld [vmem:[#allocation25_spill] sm:$0xff]  ;;  %v15262_v2 = vld [vmem:[#allocation28_spill] sm:$0xff]  ;;  %v15263_v7 = vld [vmem:[#allocation30_spill] sm:$0xff] }
 0x521   :  { %12855 = vrcp.f32 %v3645_v54 }
 0x523   :  { %v12850_v1 = vpop.eup %12849 }
 0x524   :  { %v12852_v56 = vpop.eup %12851  ;;  %v3649_v10 = vmul.f32 %v12850_v1, %v14154_v28 }
 0x525   :  { %v3650_v26 = vmul.f32 %v12852_v56, %v14151_v27  ;;  %v12854_v55 = vpop.eup %12853 }
 0x526   :  { %v2736_v14 = vadd.f32 1.0, %v12854_v55 }
 0x527   :  { %v14368_v52 = vadd.f32 %v3650_v26, %v3649_v10  ;;  %v15264_v10 = vld [vmem:[#allocation57_spill] sm:$0xff] }
 0x529   :  { %12857 = vtanh.f32 %v14368_v52 }
 0x52a   :  { %12859 = vtanh.f32 %v14269_v58 }
 0x52b   :  { %12861 = vrcp.f32 %v2736_v14  ;;  %v12856_v34 = vpop.eup %12855 }
 0x533   :  { %v12858_v18 = vpop.eup %12857 }
 0x534   :  { %v14372_v50 = vmul.f32 %v12858_v18, %v12856_v34  ;;  %v12860_v28 = vpop.eup %12859  ;;  %v15265_v34 = vld [vmem:[#allocation35_spill] sm:$0xff] }
 0x535   :  { %v12862_v63 = vpop.eup %12861 }
 0x536   :  { %11078 = vmatmul.mubr.msk.f32.vlgmr.msra.gmra.mrb[40].mxu0 %vm1391_vm7, %v14372_v50  ;;  %11100 = vmatmul.mubr.msk.f32.vlgmr.msra.gmra.mrb[46].mxu1 %vm1391_vm7, %v14372_v50  ;;  %v2744_v4 = vmul.f32 %v12862_v63, %v12860_v28 }
 0x537   :  { %12156 = vmatpush3.bf16.msra.mxu0 %v14157_v8  ;;  %12168 = vmatpush3.bf16.msra.mxu1 %v14159_v61 }
 0x538   :  { %12157 = vmatprep.subr.bf16.mxu0 %v15253_v19  ;;  %12169 = vmatprep.subr.bf16.mxu1 %v15253_v19 }
 0x539   :  { %11088 = vmatprep.mubr.msk.f32.mxu0 %vm13330_vm0, %v15254_v47  ;;  %11110 = vmatprep.mubr.msk.f32.mxu1 %vm13330_vm0, %v15254_v47 }
 0x53b   :  { %12159 = vmatpush3.bf16.msra.mxu0 %v14169_v31  ;;  %12171 = vmatpush3.bf16.msra.mxu1 %v14171_v44 }
 0x53c   :  { %12172 = vmatprep.subr.bf16.mxu0 %v15253_v19  ;;  %12184 = vmatprep.subr.bf16.mxu1 %v15253_v19 }
 0x53e   :  { %11089 = vmatmul.mubr.msk.f32.vlgmr.msra.gmra.mrb[40].mxu0 %vm1391_vm7, %v2744_v4  ;;  %11111 = vmatmul.mubr.msk.f32.vlgmr.msra.gmra.mrb[46].mxu1 %vm1391_vm7, %v2744_v4 }
 0x53f   :  { %12174 = vmatpush3.bf16.msra.mxu0 %v14181_v30  ;;  %12186 = vmatpush3.bf16.msra.mxu1 %v13723_v22 }
 0x540   :  { %12175 = vmatprep.subr.bf16.mxu0 %v15253_v19  ;;  %12187 = vmatprep.subr.bf16.mxu1 %v15253_v19 }
 0x541   :  { %11121 = vmatprep.mubr.msk.f32.mxu0 %vm13330_vm0, %v15254_v47  ;;  %11143 = vmatprep.mubr.msk.f32.mxu1 %vm13330_vm0, %v15254_v47 }
 0x543   :  { %12177 = vmatpush3.bf16.msra.mxu0 %v14189_v40  ;;  %12189 = vmatpush3.bf16.msra.mxu1 %v13745_v29 }
 0x544   :  { %12178 = vmatprep.subr.bf16.mxu0 %v15253_v19  ;;  %12190 = vmatprep.subr.bf16.mxu1 %v15253_v19 }
 0x546   :  { %11122 = vmatmul.mubr.msk.f32.vlgmr.msra.gmra.mrb[42].mxu0 %vm1391_vm7, %v14372_v50  ;;  %11144 = vmatmul.mubr.msk.f32.vlgmr.msra.gmra.mrb[48].mxu1 %vm1391_vm7, %v14277_v33 }
 0x547   :  { %12180 = vmatpush3.bf16.msra.mxu0 %v14199_v24  ;;  %12192 = vmatpush3.bf16.msra.mxu1 %v13796_v39 }
 0x548   :  { %12181 = vmatprep.subr.bf16.mxu0 %v15253_v19  ;;  %12193 = vmatprep.subr.bf16.mxu1 %v15253_v19 }
 0x549   :  { %11132 = vmatprep.mubr.msk.f32.mxu0 %vm13330_vm0, %v15254_v47  ;;  %11154 = vmatprep.mubr.msk.f32.mxu1 %vm13330_vm0, %v15254_v47 }
 0x54b   :  { %12183 = vmatpush3.bf16.msra.mxu0 %v14209_v59  ;;  %12195 = vmatpush3.bf16.msra.mxu1 %v13809_v42 }
 0x54c   :  { %12196 = vmatprep.subr.bf16.mxu0 %v15253_v19  ;;  %12202 = vmatprep.subr.bf16.mxu1 %v15253_v19 }
 0x54e   :  { %11133 = vmatmul.mubr.msk.f32.vlgmr.msra.gmra.mrb[42].mxu0 %vm1391_vm7, %v2744_v4  ;;  %11155 = vmatmul.mubr.msk.f32.vlgmr.msra.gmra.mrb[50].mxu1 %vm1391_vm7, %v14277_v33 }
 0x54f   :  { %12198 = vmatpush3.bf16.msra.mxu0 %v15258_v3  ;;  %11165 = vmatprep.mubr.msk.f32.mxu0 %vm13330_vm0, %v15254_v47 }
 0x550   :  { %12199 = vmatprep.subr.bf16.mxu0 %v15253_v19  ;;  %12204 = vmatpush3.bf16.msra.mxu1 %v15259_v46  ;;  %v15266_v46 = vld [vmem:[#allocation39_spill] sm:$0xff] }
 0x551   :  { %12205 = vmatprep.subr.bf16.mxu1 %v15253_v19  ;;  %11176 = vmatprep.mubr.msk.f32.mxu1 %vm13330_vm0, %v15254_v47 }
 0x553   :  { %12201 = vmatpush3.bf16.msra.mxu0 %v15260_v25 }
 0x554   :  { %12214 = vmatprep.subr.bf16.mxu0 %v15253_v19  ;;  %12207 = vmatpush3.bf16.msra.mxu1 %v15261_v21 }
 0x555   :  { %12208 = vmatprep.subr.bf16.mxu1 %v15253_v19 }
 0x556   :  { %11166 = vmatmul.mubr.msk.f32.vlgmr.msra.gmra.mrb[44].mxu0 %vm1391_vm7, %v14277_v33 }
 0x557   :  { %12216 = vmatpush3.bf16.msra.mxu0 %v15262_v2  ;;  %11198 = vmatprep.mubr.msk.f32.mxu0 %vm13330_vm0, %v15254_v47 }
 0x558   :  { %12217 = vmatprep.subr.bf16.mxu0 %v15253_v19 }
 0x55b   :  { %12219 = vmatpush3.bf16.msra.mxu0 %v15263_v7 }
 0x55c   :  { %12220 = vmatprep.subr.bf16.mxu0 %v15253_v19 }
 0x611   :  { %v3796_v1 = vpop.f32.mrb[40].mxu0  ;;  %v14443_v56 = vpop.f32.mrb[46].mxu1 }
 0x612   :  { %v12651_v54 = vadd.f32 %v15264_v10, %v3796_v1  ;;  %v11090_v26 = vpop.f32.mrb[41].mxu0  ;;  %v11112_v55 = vpop.f32.mrb[47].mxu1 }
 0x614   :  { %v9933_v14 = vmul.f32 -1.442695, %v12651_v54 }
 0x616   :  { %12863 = vpow2.f32 %v9933_v14 }
 0x619   :  { %v4167_v33 = vpop.f32.mrb[48].mxu1 }
 0x61a   :  { %v4171_v18 = vadd.f32 %v4167_v33, %v15265_v34  ;;  %v11145_v28 = vpop.f32.mrb[49].mxu1  ;;  %v12649_v33 = vadd.f32 %v14261_v62, %v14348_v48  ;;  %v15267_v34 = vld [vmem:[#allocation40_spill] sm:$0xff] }
 0x61c   :  { %v9938_v63 = vmul.f32 -1.442695, %v4171_v18 }
 0x61e   :  { %12865 = vpow2.f32 %v9938_v63  ;;  %v9921_v63 = vmul.f32 -1.442695, %v12649_v33 }
 0x620   :  { %v12864_v4 = vpop.eup %12863 }
 0x621   :  { %v4086_v2 = vadd.f32 1.0, %v12864_v4  ;;  %v4078_v7 = vpop.f32.mrb[42].mxu0  ;;  %v4238_v21 = vpop.f32.mrb[50].mxu1 }
 0x622   :  { %v12653_v25 = vadd.f32 %v14257_v36, %v4078_v7  ;;  %v4242_v3 = vadd.f32 %v4238_v21, %v15266_v46  ;;  %v11134_v42 = vpop.f32.mrb[43].mxu0  ;;  %v11156_v1 = vpop.f32.mrb[51].mxu1 }
 0x623   :  { %12867 = vrcp.f32 %v4086_v2 }
 0x624   :  { %12869 = vtanh.f32 %v12653_v25  ;;  %v9939_v54 = vmul.f32 -1.442695, %v4242_v3 }
 0x626   :  { %12871 = vpow2.f32 %v9939_v54 }
 0x628   :  { %v12866_v26 = vpop.eup %12865 }
 0x629   :  { %v4317_v55 = vadd.f32 1.0, %v12866_v26  ;;  %v4309_v14 = vpop.f32.mrb[44].mxu0 }
 0x62a   :  { %v4313_v18 = vadd.f32 %v4309_v14, %v15267_v34  ;;  %v11167_v28 = vpop.f32.mrb[45].mxu0 }
 0x62b   :  { %12873 = vrcp.f32 %v4317_v55 }
 0x62c   :  { %12875 = vtanh.f32 %v4313_v18 }
 0x62d   :  { %v12868_v7 = vpop.eup %12867  ;;  %12877 = vpow2.f32 %v9921_v63  ;;  %v15269_v63 = vld [vmem:[#allocation56_spill] sm:$0xff] }
 0x62e   :  { %v4096_v42 = vmul.f32 %v12868_v7, %v14269_v58  ;;  %v12870_v46 = vpop.eup %12869  ;;  %v15268_v7 = vld [vmem:[#allocation55_spill] sm:$0xff] }
 0x62f   :  { %v4097_v25 = vmul.f32 %v12870_v46, %v14266_v17 }
 0x630   :  { %v12872_v21 = vpop.eup %12871 }
 0x631   :  { %v14454_v3 = vadd.f32 %v4097_v25, %v4096_v42  ;;  %v4323_v1 = vadd.f32 1.0, %v12872_v21 }
 0x633   :  { %12879 = vrcp.f32 %v4323_v1 }
 0x635   :  { %v12874_v2 = vpop.eup %12873 }
 0x636   :  { %v12876_v4 = vpop.eup %12875  ;;  %v4327_v48 = vmul.f32 %v12874_v2, %v14273_v5 }
 0x637   :  { %v4328_v54 = vmul.f32 %v12876_v4, %v13972_v43  ;;  %v12878_v58 = vpop.eup %12877 }
 0x638   :  { %v3414_v55 = vadd.f32 1.0, %v12878_v58 }
 0x639   :  { %v14458_v26 = vadd.f32 %v4328_v54, %v4327_v48  ;;  %v15270_v48 = vld [vmem:[#allocation52_spill] sm:$0xff] }
 0x63b   :  { %12881 = vtanh.f32 %v14458_v26 }
 0x63c   :  { %12883 = vtanh.f32 %v14364_v16 }
 0x63d   :  { %12885 = vrcp.f32 %v3414_v55  ;;  %v12880_v14 = vpop.eup %12879 }
 0x645   :  { %v12882_v33 = vpop.eup %12881 }
 0x646   :  { %v14462_v34 = vmul.f32 %v12882_v33, %v12880_v14  ;;  %v12884_v5 = vpop.eup %12883 }
 0x647   :  { %v12886_v18 = vpop.eup %12885 }
 0x648   :  { %11177 = vmatmul.mubr.msk.f32.vlgmr.msra.gmra.mrb[52].mxu1 %vm1391_vm7, %v14462_v34  ;;  %11199 = vmatmul.mubr.msk.f32.vlgmr.msra.gmra.mrb[46].mxu0 %vm1391_vm7, %v14462_v34  ;;  %v3422_v28 = vmul.f32 %v12886_v18, %v12884_v5 }
 0x649   :  { %12210 = vmatpush3.bf16.msra.mxu1 %v13990_v45  ;;  %12222 = vmatpush3.bf16.msra.mxu0 %v13992_v13 }
 0x64a   :  { %12211 = vmatprep.subr.bf16.mxu1 %v15253_v19  ;;  %12223 = vmatprep.subr.bf16.mxu0 %v15253_v19 }
 0x64b   :  { %11187 = vmatprep.mubr.msk.f32.mxu1 %vm13330_vm0, %v15254_v47  ;;  %11209 = vmatprep.mubr.msk.f32.mxu0 %vm13330_vm0, %v15254_v47 }
 0x64d   :  { %12213 = vmatpush3.bf16.msra.mxu1 %v14014_v37  ;;  %12225 = vmatpush3.bf16.msra.mxu0 %v14016_v51 }
 0x64e   :  { %12226 = vmatprep.subr.bf16.mxu1 %v15253_v19  ;;  %12238 = vmatprep.subr.bf16.mxu0 %v15253_v19 }
 0x650   :  { %11188 = vmatmul.mubr.msk.f32.vlgmr.msra.gmra.mrb[52].mxu1 %vm1391_vm7, %v3422_v28  ;;  %11210 = vmatmul.mubr.msk.f32.vlgmr.msra.gmra.mrb[46].mxu0 %vm1391_vm7, %v3422_v28 }
 0x651   :  { %12228 = vmatpush3.bf16.msra.mxu1 %v14032_v23  ;;  %12240 = vmatpush3.bf16.msra.mxu0 %v14034_v20 }
 0x652   :  { %12229 = vmatprep.subr.bf16.mxu1 %v15253_v19  ;;  %12241 = vmatprep.subr.bf16.mxu0 %v15253_v19 }
 0x653   :  { %11220 = vmatprep.mubr.msk.f32.mxu1 %vm13330_vm0, %v15254_v47  ;;  %11242 = vmatprep.mubr.msk.f32.mxu0 %vm13330_vm0, %v15254_v47 }
 0x655   :  { %12231 = vmatpush3.bf16.msra.mxu1 %v14048_v12  ;;  %12243 = vmatpush3.bf16.msra.mxu0 %v14050_v0 }
 0x656   :  { %12232 = vmatprep.subr.bf16.mxu1 %v15253_v19  ;;  %12244 = vmatprep.subr.bf16.mxu0 %v15253_v19 }
 0x658   :  { %11221 = vmatmul.mubr.msk.f32.vlgmr.msra.gmra.mrb[54].mxu1 %vm1391_vm7, %v14462_v34  ;;  %11243 = vmatmul.mubr.msk.f32.vlgmr.msra.gmra.mrb[48].mxu0 %vm1391_vm7, %v14372_v50 }
 0x659   :  { %12234 = vmatpush3.bf16.msra.mxu1 %v14066_v57  ;;  %12246 = vmatpush3.bf16.msra.mxu0 %v14068_v9 }
 0x65a   :  { %12235 = vmatprep.subr.bf16.mxu1 %v15253_v19  ;;  %12247 = vmatprep.subr.bf16.mxu0 %v15253_v19 }
 0x65b   :  { %11231 = vmatprep.mubr.msk.f32.mxu1 %vm13330_vm0, %v15254_v47  ;;  %11253 = vmatprep.mubr.msk.f32.mxu0 %vm13330_vm0, %v15254_v47 }
 0x65d   :  { %12237 = vmatpush3.bf16.msra.mxu1 %v14083_v11  ;;  %12249 = vmatpush3.bf16.msra.mxu0 %v14085_v53 }
 0x65e   :  { %12250 = vmatprep.subr.bf16.mxu1 %v15253_v19  ;;  %12256 = vmatprep.subr.bf16.mxu0 %v15253_v19 }
 0x660   :  { %11232 = vmatmul.mubr.msk.f32.vlgmr.msra.gmra.mrb[54].mxu1 %vm1391_vm7, %v3422_v28  ;;  %11254 = vmatmul.mubr.msk.f32.vlgmr.msra.gmra.mrb[50].mxu0 %vm1391_vm7, %v14372_v50  ;;  %v15271_v28 = vld [vmem:[#allocation50_spill] sm:$0xff] }
 0x661   :  { %12252 = vmatpush3.bf16.msra.mxu1 %v14095_v15  ;;  %11264 = vmatprep.mubr.msk.f32.mxu1 %vm13330_vm0, %v15254_v47 }
 0x662   :  { %12253 = vmatprep.subr.bf16.mxu1 %v15253_v19  ;;  %12258 = vmatpush3.bf16.msra.mxu0 %v14114_v35 }
 0x663   :  { %12259 = vmatprep.subr.bf16.mxu0 %v15253_v19  ;;  %11275 = vmatprep.mubr.msk.f32.mxu0 %vm13330_vm0, %v15254_v47 }
 0x665   :  { %12255 = vmatpush3.bf16.msra.mxu1 %v14102_v32 }
 0x666   :  { %12268 = vmatprep.subr.bf16.mxu1 %v15253_v19  ;;  %12261 = vmatpush3.bf16.msra.mxu0 %v14119_v60 }
 0x667   :  { %12262 = vmatprep.subr.bf16.mxu0 %v15253_v19 }
 0x668   :  { %11265 = vmatmul.mubr.msk.f32.vlgmr.msra.gmra.mrb[56].mxu1 %vm1391_vm7, %v14372_v50 }
 0x669   :  { %12270 = vmatpush3.bf16.msra.mxu1 %v15268_v7  ;;  %11297 = vmatprep.mubr.msk.f32.mxu1 %vm13330_vm0, %v15254_v47 }
 0x66a   :  { %12271 = vmatprep.subr.bf16.mxu1 %v15253_v19 }
 0x66d   :  { %12273 = vmatpush3.bf16.msra.mxu1 %v15269_v63 }
 0x66e   :  { %12274 = vmatprep.subr.bf16.mxu1 %v15253_v19 }
 0x723   :  { %v4474_v42 = vpop.f32.mrb[52].mxu1  ;;  %v14533_v46 = vpop.f32.mrb[46].mxu0 }
 0x724   :  { %v12654_v25 = vadd.f32 %v14131_v49, %v4474_v42  ;;  %v11189_v21 = vpop.f32.mrb[53].mxu1  ;;  %v11211_v2 = vpop.f32.mrb[47].mxu0 }
 0x726   :  { %v9946_v4 = vmul.f32 -1.442695, %v12654_v25 }
 0x728   :  { %12887 = vpow2.f32 %v9946_v4  ;;  %v12652_v4 = vadd.f32 %v14357_v38, %v14443_v56 }
 0x72b   :  { %v4845_v50 = vpop.f32.mrb[48].mxu0 }
 0x72c   :  { %v4849_v1 = vadd.f32 %v4845_v50, %v15270_v48  ;;  %v11244_v54 = vpop.f32.mrb[49].mxu0  ;;  %v15272_v50 = vld [vmem:[#allocation54_spill] sm:$0xff] }
 0x72d   :  { %v9934_v54 = vmul.f32 -1.442695, %v12652_v4 }
 0x72e   :  { %v9951_v58 = vmul.f32 -1.442695, %v4849_v1 }
 0x730   :  { %12889 = vpow2.f32 %v9951_v58 }
 0x732   :  { %v12888_v55 = vpop.eup %12887 }
 0x733   :  { %v4764_v14 = vadd.f32 1.0, %v12888_v55  ;;  %v4756_v33 = vpop.f32.mrb[54].mxu1  ;;  %v4916_v5 = vpop.f32.mrb[50].mxu0 }
 0x734   :  { %v12656_v18 = vadd.f32 %v14139_v41, %v4756_v33  ;;  %v4920_v63 = vadd.f32 %v4916_v5, %v15271_v28  ;;  %v11233_v7 = vpop.f32.mrb[55].mxu1  ;;  %v11255_v49 = vpop.f32.mrb[51].mxu0 }
 0x735   :  { %12891 = vrcp.f32 %v4764_v14 }
 0x736   :  { %12893 = vtanh.f32 %v12656_v18  ;;  %v9952_v42 = vmul.f32 -1.442695, %v4920_v63 }
 0x738   :  { %12895 = vpow2.f32 %v9952_v42 }
 0x73a   :  { %v12890_v25 = vpop.eup %12889 }
 0x73b   :  { %v4995_v21 = vadd.f32 1.0, %v12890_v25  ;;  %v4987_v2 = vpop.f32.mrb[56].mxu1 }
 0x73c   :  { %v4991_v48 = vadd.f32 %v4987_v2, %v15272_v50  ;;  %v11266_v1 = vpop.f32.mrb[57].mxu1 }
 0x73d   :  { %12897 = vrcp.f32 %v4995_v21  ;;  %v15274_v1 = vld [vmem:[#allocation24_spill] sm:$0xff] }
 0x73e   :  { %12899 = vtanh.f32 %v4991_v48  ;;  %v15273_v48 = vld [vmem:[#allocation26_spill] sm:$0xff] }
 0x73f   :  { %v12892_v41 = vpop.eup %12891  ;;  %12901 = vpow2.f32 %v9934_v54  ;;  %v15276_v54 = vld [vmem:[#allocation25_spill] sm:$0xff] }
 0x740   :  { %v4774_v7 = vmul.f32 %v12892_v41, %v14364_v16  ;;  %v12894_v58 = vpop.eup %12893  ;;  %v15275_v41 = vld [vmem:[#allocation27_spill] sm:$0xff] }
 0x741   :  { %v4775_v55 = vmul.f32 %v12894_v58, %v14146_v6  ;;  %v15278_v58 = vld [vmem:[#allocation28_spill] sm:$0xff] }
 0x742   :  { %v12896_v14 = vpop.eup %12895 }
 0x743   :  { %v14544_v63 = vadd.f32 %v4775_v55, %v4774_v7  ;;  %v5001_v18 = vadd.f32 1.0, %v12896_v14  ;;  %v15277_v7 = vld [vmem:[#allocation29_spill] sm:$0xff]  ;;  %v15279_v55 = vld [vmem:[#allocation30_spill] sm:$0xff] }
 0x745   :  { %12903 = vrcp.f32 %v5001_v18 }
 0x747   :  { %v12898_v33 = vpop.eup %12897 }
 0x748   :  { %v12900_v5 = vpop.eup %12899  ;;  %v5005_v56 = vmul.f32 %v12898_v33, %v14368_v52 }
 0x749   :  { %v5006_v28 = vmul.f32 %v12900_v5, %v14151_v27  ;;  %v12902_v16 = vpop.eup %12901 }
 0x74a   :  { %v4092_v42 = vadd.f32 1.0, %v12902_v16  ;;  %v15280_v16 = vld [vmem:[#allocation33_spill] sm:$0xff] }
 0x74b   :  { %v14548_v49 = vadd.f32 %v5006_v28, %v5005_v56 }
 0x74d   :  { %12905 = vtanh.f32 %v14548_v49 }
 0x74e   :  { %12907 = vtanh.f32 %v14454_v3 }
 0x74f   :  { %12909 = vrcp.f32 %v4092_v42  ;;  %v12904_v25 = vpop.eup %12903 }
 0x757   :  { %v12906_v21 = vpop.eup %12905 }
 0x758   :  { %v14552_v2 = vmul.f32 %v12906_v21, %v12904_v25  ;;  %v12908_v52 = vpop.eup %12907 }
 0x759   :  { %v12910_v4 = vpop.eup %12909 }
 0x75a   :  { %11276 = vmatmul.mubr.msk.f32.vlgmr.msra.gmra.mrb[52].mxu0 %vm1391_vm7, %v14552_v2  ;;  %11298 = vmatmul.mubr.msk.f32.vlgmr.msra.gmra.mrb[58].mxu1 %vm1391_vm7, %v14552_v2  ;;  %v4100_v50 = vmul.f32 %v12910_v4, %v12908_v52 }
 0x75b   :  { %12264 = vmatpush3.bf16.msra.mxu0 %v14157_v8  ;;  %12276 = vmatpush3.bf16.msra.mxu1 %v14159_v61 }
 0x75c   :  { %12265 = vmatprep.subr.bf16.mxu0 %v15253_v19  ;;  %12277 = vmatprep.subr.bf16.mxu1 %v15253_v19 }
 0x75d   :  { %11286 = vmatprep.mubr.msk.f32.mxu0 %vm13330_vm0, %v15254_v47  ;;  %11308 = vmatprep.mubr.msk.f32.mxu1 %vm13330_vm0, %v15254_v47 }
 0x75f   :  { %12267 = vmatpush3.bf16.msra.mxu0 %v14169_v31  ;;  %12279 = vmatpush3.bf16.msra.mxu1 %v14171_v44 }
 0x760   :  { %12280 = vmatprep.subr.bf16.mxu0 %v15253_v19  ;;  %12292 = vmatprep.subr.bf16.mxu1 %v15253_v19 }
 0x762   :  { %11287 = vmatmul.mubr.msk.f32.vlgmr.msra.gmra.mrb[52].mxu0 %vm1391_vm7, %v4100_v50  ;;  %11309 = vmatmul.mubr.msk.f32.vlgmr.msra.gmra.mrb[58].mxu1 %vm1391_vm7, %v4100_v50 }
 0x763   :  { %12282 = vmatpush3.bf16.msra.mxu0 %v14181_v30  ;;  %12294 = vmatpush3.bf16.msra.mxu1 %v13723_v22 }
 0x764   :  { %12283 = vmatprep.subr.bf16.mxu0 %v15253_v19  ;;  %12295 = vmatprep.subr.bf16.mxu1 %v15253_v19 }
 0x765   :  { %11319 = vmatprep.mubr.msk.f32.mxu0 %vm13330_vm0, %v15254_v47  ;;  %11341 = vmatprep.mubr.msk.f32.mxu1 %vm13330_vm0, %v15254_v47 }
 0x767   :  { %12285 = vmatpush3.bf16.msra.mxu0 %v14189_v40  ;;  %12297 = vmatpush3.bf16.msra.mxu1 %v13745_v29 }
 0x768   :  { %12286 = vmatprep.subr.bf16.mxu0 %v15253_v19  ;;  %12298 = vmatprep.subr.bf16.mxu1 %v15253_v19 }
 0x76a   :  { %11320 = vmatmul.mubr.msk.f32.vlgmr.msra.gmra.mrb[54].mxu0 %vm1391_vm7, %v14552_v2  ;;  %11342 = vmatmul.mubr.msk.f32.vlgmr.msra.gmra.mrb[60].mxu1 %vm1391_vm7, %v14462_v34 }
 0x76b   :  { %12288 = vmatpush3.bf16.msra.mxu0 %v14199_v24  ;;  %12300 = vmatpush3.bf16.msra.mxu1 %v13796_v39 }
 0x76c   :  { %12289 = vmatprep.subr.bf16.mxu0 %v15253_v19  ;;  %12301 = vmatprep.subr.bf16.mxu1 %v15253_v19 }
 0x76d   :  { %11330 = vmatprep.mubr.msk.f32.mxu0 %vm13330_vm0, %v15254_v47  ;;  %11352 = vmatprep.mubr.msk.f32.mxu1 %vm13330_vm0, %v15254_v47 }
 0x76f   :  { %12291 = vmatpush3.bf16.msra.mxu0 %v14209_v59  ;;  %12303 = vmatpush3.bf16.msra.mxu1 %v15273_v48 }
 0x770   :  { %12304 = vmatprep.subr.bf16.mxu0 %v15253_v19  ;;  %12310 = vmatprep.subr.bf16.mxu1 %v15253_v19 }
 0x772   :  { %11331 = vmatmul.mubr.msk.f32.vlgmr.msra.gmra.mrb[54].mxu0 %vm1391_vm7, %v4100_v50  ;;  %11353 = vmatmul.mubr.msk.f32.vlgmr.msra.gmra.mrb[62].mxu1 %vm1391_vm7, %v14462_v34 }
 0x773   :  { %12306 = vmatpush3.bf16.msra.mxu0 %v15274_v1  ;;  %11363 = vmatprep.mubr.msk.f32.mxu0 %vm13330_vm0, %v15254_v47 }
 0x774   :  { %12307 = vmatprep.subr.bf16.mxu0 %v15253_v19  ;;  %12312 = vmatpush3.bf16.msra.mxu1 %v15275_v41 }
 0x775   :  { %12313 = vmatprep.subr.bf16.mxu1 %v15253_v19  ;;  %11374 = vmatprep.mubr.msk.f32.mxu1 %vm13330_vm0, %v15254_v47 }
 0x777   :  { %12309 = vmatpush3.bf16.msra.mxu0 %v15276_v54 }
 0x778   :  { %12322 = vmatprep.subr.bf16.mxu0 %v15253_v19  ;;  %12315 = vmatpush3.bf16.msra.mxu1 %v15277_v7  ;;  %v15281_v7 = vld [vmem:[#allocation37_spill] sm:$0xff] }
 0x779   :  { %12316 = vmatprep.subr.bf16.mxu1 %v15253_v19 }
 0x77a   :  { %11364 = vmatmul.mubr.msk.f32.vlgmr.msra.gmra.mrb[56].mxu0 %vm1391_vm7, %v14462_v34 }
 0x77b   :  { %12324 = vmatpush3.bf16.msra.mxu0 %v15278_v58  ;;  %11396 = vmatprep.mubr.msk.f32.mxu0 %vm13330_vm0, %v15254_v47 }
 0x77c   :  { %12325 = vmatprep.subr.bf16.mxu0 %v15253_v19 }
 0x77f   :  { %12327 = vmatpush3.bf16.msra.mxu0 %v15279_v55 }
 0x780   :  { %12328 = vmatprep.subr.bf16.mxu0 %v15253_v19 }
 0x835   :  { %v5152_v14 = vpop.f32.mrb[52].mxu0  ;;  %v14623_v33 = vpop.f32.mrb[58].mxu1 }
 0x836   :  { %v12657_v5 = vadd.f32 %v15264_v10, %v5152_v14  ;;  %v11288_v56 = vpop.f32.mrb[53].mxu0  ;;  %v11310_v18 = vpop.f32.mrb[59].mxu1 }
 0x838   :  { %v9959_v28 = vmul.f32 -1.442695, %v12657_v5 }
 0x83a   :  { %12911 = vpow2.f32 %v9959_v28  ;;  %v12655_v28 = vadd.f32 %v14261_v62, %v14533_v46 }
 0x83d   :  { %v5523_v34 = vpop.f32.mrb[60].mxu1 }
 0x83e   :  { %v5527_v42 = vadd.f32 %v5523_v34, %v15280_v16  ;;  %v11343_v25 = vpop.f32.mrb[61].mxu1  ;;  %v15282_v34 = vld [vmem:[#allocation38_spill] sm:$0xff] }
 0x83f   :  { %v9947_v25 = vmul.f32 -1.442695, %v12655_v28 }
 0x840   :  { %v9964_v21 = vmul.f32 -1.442695, %v5527_v42 }
 0x842   :  { %12913 = vpow2.f32 %v9964_v21 }
 0x844   :  { %v12912_v52 = vpop.eup %12911 }
 0x845   :  { %v5442_v4 = vadd.f32 1.0, %v12912_v52  ;;  %v5434_v50 = vpop.f32.mrb[54].mxu0  ;;  %v5594_v55 = vpop.f32.mrb[62].mxu1 }
 0x846   :  { %v12659_v58 = vadd.f32 %v14257_v36, %v5434_v50  ;;  %v5598_v54 = vadd.f32 %v5594_v55, %v15281_v7  ;;  %v11332_v41 = vpop.f32.mrb[55].mxu0  ;;  %v11354_v10 = vpop.f32.mrb[63].mxu1 }
 0x847   :  { %12915 = vrcp.f32 %v5442_v4 }
 0x848   :  { %12917 = vtanh.f32 %v12659_v58  ;;  %v9965_v14 = vmul.f32 -1.442695, %v5598_v54 }
 0x84a   :  { %12919 = vpow2.f32 %v9965_v14 }
 0x84c   :  { %v12914_v5 = vpop.eup %12913 }
 0x84d   :  { %v5673_v56 = vadd.f32 1.0, %v12914_v5  ;;  %v5665_v18 = vpop.f32.mrb[56].mxu0 }
 0x84e   :  { %v5669_v16 = vadd.f32 %v5665_v18, %v15282_v34  ;;  %v11365_v42 = vpop.f32.mrb[57].mxu0 }
 0x84f   :  { %12921 = vrcp.f32 %v5673_v56 }
 0x850   :  { %12923 = vtanh.f32 %v5669_v16  ;;  %v15285_v16 = vld [vmem:[#allocation51_spill] sm:$0xff] }
 0x851   :  { %v12916_v36 = vpop.eup %12915  ;;  %12925 = vpow2.f32 %v9947_v25 }
 0x852   :  { %v5452_v41 = vmul.f32 %v12916_v36, %v14454_v3  ;;  %v12918_v7 = vpop.eup %12917 }
 0x853   :  { %v5453_v58 = vmul.f32 %v12918_v7, %v14266_v17 }
 0x854   :  { %v12920_v55 = vpop.eup %12919 }
 0x855   :  { %v14634_v54 = vadd.f32 %v5453_v58, %v5452_v41  ;;  %v5679_v46 = vadd.f32 1.0, %v12920_v55 }
 0x857   :  { %12927 = vrcp.f32 %v5679_v46 }
 0x859   :  { %v12922_v21 = vpop.eup %12921 }
 0x85a   :  { %v12924_v52 = vpop.eup %12923  ;;  %v5683_v62 = vmul.f32 %v12922_v21, %v14458_v26  ;;  %v14719_v21 = vld [vmem:[#allocation7 + $0x2] ss:$0 sm:$0xff] }
 0x85b   :  { %v5684_v4 = vmul.f32 %v12924_v52, %v13972_v43  ;;  %v12926_v3 = vpop.eup %12925 }
 0x85c   :  { %v4770_v10 = vadd.f32 1.0, %v12926_v3 }
 0x85d   :  { %v14638_v50 = vadd.f32 %v5684_v4, %v5683_v62  ;;  %v15286_v62 = vld [vmem:[#allocation49_spill] sm:$0xff] }
 0x85f   :  { %12929 = vtanh.f32 %v14638_v50 }
 0x860   :  { %12931 = vtanh.f32 %v14544_v63 }
 0x861   :  { %12933 = vrcp.f32 %v4770_v10  ;;  %v12928_v14 = vpop.eup %12927 }
 0x869   :  { %v12930_v5 = vpop.eup %12929 }
 0x86a   :  { %v14642_v56 = vmul.f32 %v12930_v5, %v12928_v14  ;;  %v12932_v26 = vpop.eup %12931 }
 0x86b   :  { %v12934_v18 = vpop.eup %12933 }
 0x86c   :  { %11375 = vmatmul.mubr.msk.f32.vlgmr.msra.gmra.mrb[64].mxu1 %vm1391_vm7, %v14642_v56  ;;  %11397 = vmatmul.mubr.msk.f32.vlgmr.msra.gmra.mrb[58].mxu0 %vm1391_vm7, %v14642_v56  ;;  %v4778_v28 = vmul.f32 %v12934_v18, %v12932_v26  ;;  %v12658_v18 = vadd.f32 %v14357_v38, %v14623_v33 }
 0x86d   :  { %12318 = vmatpush3.bf16.msra.mxu1 %v13990_v45  ;;  %12330 = vmatpush3.bf16.msra.mxu0 %v13992_v13 }
 0x86e   :  { %12319 = vmatprep.subr.bf16.mxu1 %v15253_v19  ;;  %12331 = vmatprep.subr.bf16.mxu0 %v15253_v19 }
 0x86f   :  { %11385 = vmatprep.mubr.msk.f32.mxu1 %vm13330_vm0, %v15254_v47  ;;  %11407 = vmatprep.mubr.msk.f32.mxu0 %vm13330_vm0, %v15254_v47 }
 0x871   :  { %12321 = vmatpush3.bf16.msra.mxu1 %v14014_v37  ;;  %12333 = vmatpush3.bf16.msra.mxu0 %v14016_v51 }
 0x872   :  { %12334 = vmatprep.subr.bf16.mxu1 %v15253_v19  ;;  %12346 = vmatprep.subr.bf16.mxu0 %v15253_v19 }
 0x874   :  { %11386 = vmatmul.mubr.msk.f32.vlgmr.msra.gmra.mrb[64].mxu1 %vm1391_vm7, %v4778_v28  ;;  %11408 = vmatmul.mubr.msk.f32.vlgmr.msra.gmra.mrb[58].mxu0 %vm1391_vm7, %v4778_v28 }
 0x875   :  { %12336 = vmatpush3.bf16.msra.mxu1 %v14032_v23  ;;  %12348 = vmatpush3.bf16.msra.mxu0 %v14034_v20  ;;  %v15283_v20 = vld [vmem:[#allocation55_spill] sm:$0xff] }
 0x876   :  { %12337 = vmatprep.subr.bf16.mxu1 %v15253_v19  ;;  %12349 = vmatprep.subr.bf16.mxu0 %v15253_v19 }
 0x877   :  { %11418 = vmatprep.mubr.msk.f32.mxu1 %vm13330_vm0, %v15254_v47  ;;  %11440 = vmatprep.mubr.msk.f32.mxu0 %vm13330_vm0, %v15254_v47 }
 0x879   :  { %12339 = vmatpush3.bf16.msra.mxu1 %v14048_v12  ;;  %12351 = vmatpush3.bf16.msra.mxu0 %v14050_v0  ;;  %v15284_v0 = vld [vmem:[#allocation56_spill] sm:$0xff] }
 0x87a   :  { %12340 = vmatprep.subr.bf16.mxu1 %v15253_v19  ;;  %12352 = vmatprep.subr.bf16.mxu0 %v15253_v19 }
 0x87c   :  { %11419 = vmatmul.mubr.msk.f32.vlgmr.msra.gmra.mrb[66].mxu1 %vm1391_vm7, %v14642_v56  ;;  %11441 = vmatmul.mubr.msk.f32.vlgmr.msra.gmra.mrb[60].mxu0 %vm1391_vm7, %v14552_v2 }
 0x87d   :  { %12342 = vmatpush3.bf16.msra.mxu1 %v14066_v57  ;;  %12354 = vmatpush3.bf16.msra.mxu0 %v14068_v9 }
 0x87e   :  { %12343 = vmatprep.subr.bf16.mxu1 %v15253_v19  ;;  %12355 = vmatprep.subr.bf16.mxu0 %v15253_v19 }
 0x87f   :  { %11429 = vmatprep.mubr.msk.f32.mxu1 %vm13330_vm0, %v15254_v47  ;;  %11451 = vmatprep.mubr.msk.f32.mxu0 %vm13330_vm0, %v15254_v47 }
 0x881   :  { %12345 = vmatpush3.bf16.msra.mxu1 %v14083_v11  ;;  %12357 = vmatpush3.bf16.msra.mxu0 %v14085_v53 }
 0x882   :  { %12358 = vmatprep.subr.bf16.mxu1 %v15253_v19  ;;  %12364 = vmatprep.subr.bf16.mxu0 %v15253_v19 }
 0x884   :  { %11430 = vmatmul.mubr.msk.f32.vlgmr.msra.gmra.mrb[66].mxu1 %vm1391_vm7, %v4778_v28  ;;  %11452 = vmatmul.mubr.msk.f32.vlgmr.msra.gmra.mrb[62].mxu0 %vm1391_vm7, %v14552_v2  ;;  %v15287_v28 = vld [vmem:[#allocation53_spill] sm:$0xff] }
 0x885   :  { %12360 = vmatpush3.bf16.msra.mxu1 %v14095_v15  ;;  %11462 = vmatprep.mubr.msk.f32.mxu1 %vm13330_vm0, %v15254_v47 }
 0x886   :  { %12361 = vmatprep.subr.bf16.mxu1 %v15253_v19  ;;  %12366 = vmatpush3.bf16.msra.mxu0 %v14114_v35 }
 0x887   :  { %12367 = vmatprep.subr.bf16.mxu0 %v15253_v19  ;;  %11473 = vmatprep.mubr.msk.f32.mxu0 %vm13330_vm0, %v15254_v47 }
 0x889   :  { %12363 = vmatpush3.bf16.msra.mxu1 %v14102_v32 }
 0x88a   :  { %12376 = vmatprep.subr.bf16.mxu1 %v15253_v19  ;;  %12369 = vmatpush3.bf16.msra.mxu0 %v14119_v60  ;;  %v14715_v60 = vld [vmem:[#allocation7] ss:$0 sm:$0xff] }
 0x88b   :  { %12370 = vmatprep.subr.bf16.mxu0 %v15253_v19 }
 0x88c   :  { %11463 = vmatmul.mubr.msk.f32.vlgmr.msra.gmra.mrb[68].mxu1 %vm1391_vm7, %v14552_v2 }
 0x88d   :  { %12378 = vmatpush3.bf16.msra.mxu1 %v15283_v20  ;;  %11495 = vmatprep.mubr.msk.f32.mxu1 %vm13330_vm0, %v15254_v47 }
 0x88e   :  { %12379 = vmatprep.subr.bf16.mxu1 %v15253_v19 }
 0x891   :  { %12381 = vmatpush3.bf16.msra.mxu1 %v15284_v0 }
 0x892   :  { %12382 = vmatprep.subr.bf16.mxu1 %v15253_v19 }
 0x947   :  { %v5830_v9 = vpop.f32.mrb[64].mxu1  ;;  %v14713_v53 = vpop.f32.mrb[58].mxu0 }
 0x948   :  { %v12660_v15 = vadd.f32 %v14715_v60, %v5830_v9  ;;  %v11387_v32 = vpop.f32.mrb[65].mxu1  ;;  %v11409_v35 = vpop.f32.mrb[59].mxu0 }
 0x94a   :  { %v9972_v2 = vmul.f32 -1.442695, %v12660_v15  ;;  %v9960_v15 = vmul.f32 -1.442695, %v12658_v18 }
 0x94c   :  { %12935 = vpow2.f32 %v9972_v2 }
 0x94f   :  { %v6201_v34 = vpop.f32.mrb[60].mxu0 }
 0x950   :  { %v6205_v42 = vadd.f32 %v6201_v34, %v15285_v16  ;;  %v11442_v36 = vpop.f32.mrb[61].mxu0 }
 0x952   :  { %v9977_v25 = vmul.f32 -1.442695, %v6205_v42 }
 0x954   :  { %12937 = vpow2.f32 %v9977_v25 }
 0x956   :  { %v12936_v41 = vpop.eup %12935 }
 0x957   :  { %v6120_v7 = vadd.f32 1.0, %v12936_v41  ;;  %v6112_v58 = vpop.f32.mrb[66].mxu1  ;;  %v6272_v55 = vpop.f32.mrb[62].mxu0 }
 0x958   :  { %v12662_v52 = vadd.f32 %v14719_v21, %v6112_v58  ;;  %v6276_v46 = vadd.f32 %v6272_v55, %v15286_v62  ;;  %v11431_v4 = vpop.f32.mrb[67].mxu1  ;;  %v11453_v3 = vpop.f32.mrb[63].mxu0  ;;  %v13075_v62 = vld [vmem:[%s15168_s16] ss:$0 sm:$0xff] }
 0x959   :  { %12939 = vrcp.f32 %v6120_v7 }
 0x95a   :  { %12941 = vtanh.f32 %v12662_v52  ;;  %v9978_v10 = vmul.f32 -1.442695, %v6276_v46 }
 0x95c   :  { %12943 = vpow2.f32 %v9978_v10 }
 0x95e   :  { %v12938_v14 = vpop.eup %12937 }
 0x95f   :  { %v6351_v5 = vadd.f32 1.0, %v12938_v14  ;;  %v6343_v26 = vpop.f32.mrb[68].mxu1  ;;  %v13076_v14 = vld [vmem:[%s15168_s16 + $0x1] ss:$0 sm:$0xff] }
 0x960   :  { %v6347_v20 = vadd.f32 %v6343_v26, %v15287_v28  ;;  %v11464_v0 = vpop.f32.mrb[69].mxu1  ;;  %v15293_v26 = vld [vmem:[#allocation32_spill] sm:$0xff] }
 0x961   :  { %12945 = vrcp.f32 %v6351_v5 }
 0x962   :  { %12947 = vtanh.f32 %v6347_v20 }
 0x963   :  { %v12940_v9 = vpop.eup %12939  ;;  %12949 = vpow2.f32 %v9960_v15 }
 0x964   :  { %v6130_v32 = vmul.f32 %v12940_v9, %v14544_v63  ;;  %v12942_v35 = vpop.eup %12941 }
 0x965   :  { %v6131_v2 = vmul.f32 %v12942_v35, %v14146_v6 }
 0x966   :  { %v12944_v16 = vpop.eup %12943 }
 0x967   :  { %v14728_v34 = vadd.f32 %v6131_v2, %v6130_v32  ;;  %v6357_v33 = vadd.f32 1.0, %v12944_v16  ;;  %v13077_v2 = vld [vmem:[%s15168_s16 + $0x2] ss:$0 sm:$0xff] }
 0x969   :  { %12951 = vrcp.f32 %v6357_v33 }
 0x96b   :  { %v12946_v42 = vpop.eup %12945 }
 0x96c   :  { %v12948_v36 = vpop.eup %12947  ;;  %v6361_v38 = vmul.f32 %v12946_v42, %v14548_v49  ;;  %v15294_v42 = vld [vmem:[#allocation43_spill] sm:$0xff] }
 0x96d   :  { %v6362_v25 = vmul.f32 %v12948_v36, %v14151_v27  ;;  %v12950_v7 = vpop.eup %12949 }
 0x96e   :  { %v5448_v58 = vadd.f32 1.0, %v12950_v7 }
 0x96f   :  { %v6363_v41 = vadd.f32 %v6362_v25, %v6361_v38 }
 0x971   :  { %12953 = vtanh.f32 %v6363_v41 }
 0x972   :  { %12955 = vtanh.f32 %v14634_v54 }
 0x973   :  { %12957 = vrcp.f32 %v5448_v58  ;;  %v12952_v63 = vpop.eup %12951 }
 0x97b   :  { %v12954_v55 = vpop.eup %12953 }
 0x97c   :  { %v6365_v52 = vmul.f32 %v12954_v55, %v12952_v63  ;;  %v12956_v27 = vpop.eup %12955  ;;  %v14810_v63 = vld [vmem:[#allocation7 + $0x1] ss:$0 sm:$0xff] }
 0x97d   :  { %v12958_v49 = vpop.eup %12957  ;;  %v12661_v55 = vadd.f32 %v14810_v63, %v14713_v53 }
 0x97e   :  { %11474 = vmatmul.mubr.msk.f32.vlgmr.msra.gmra.mrb[64].mxu0 %vm1391_vm7, %v6365_v52  ;;  %11496 = vmatmul.mubr.msk.f32.vlgmr.msra.gmra.mrb[70].mxu1 %vm1391_vm7, %v6365_v52 }
 0x97f   :  { %12372 = vmatpush3.bf16.msra.mxu0 %v14157_v8  ;;  %12384 = vmatpush3.bf16.msra.mxu1 %v14159_v61  ;;  %v5456_v8 = vmul.f32 %v12958_v49, %v12956_v27  ;;  %v15288_v61 = vld [vmem:[#allocation27_spill] sm:$0xff] }
 0x980   :  { %12373 = vmatprep.subr.bf16.mxu0 %v15253_v19  ;;  %12385 = vmatprep.subr.bf16.mxu1 %v15253_v19 }
 0x981   :  { %11484 = vmatprep.mubr.msk.f32.mxu0 %vm13330_vm0, %v15254_v47  ;;  %11506 = vmatprep.mubr.msk.f32.mxu1 %vm13330_vm0, %v15254_v47 }
 0x983   :  { %12375 = vmatpush3.bf16.msra.mxu0 %v14169_v31  ;;  %12387 = vmatpush3.bf16.msra.mxu1 %v14171_v44  ;;  %v15289_v31 = vld [vmem:[#allocation25_spill] sm:$0xff] }
 0x984   :  { %12388 = vmatprep.subr.bf16.mxu0 %v15253_v19  ;;  %12400 = vmatprep.subr.bf16.mxu1 %v15253_v19  ;;  %v15290_v44 = vld [vmem:[#allocation29_spill] sm:$0xff] }
 0x986   :  { %11485 = vmatmul.mubr.msk.f32.vlgmr.msra.gmra.mrb[64].mxu0 %vm1391_vm7, %v5456_v8  ;;  %11507 = vmatmul.mubr.msk.f32.vlgmr.msra.gmra.mrb[70].mxu1 %vm1391_vm7, %v5456_v8 }
 0x987   :  { %12390 = vmatpush3.bf16.msra.mxu0 %v14181_v30  ;;  %12402 = vmatpush3.bf16.msra.mxu1 %v13723_v22  ;;  %v15291_v30 = vld [vmem:[#allocation28_spill] sm:$0xff] }
 0x988   :  { %12391 = vmatprep.subr.bf16.mxu0 %v15253_v19  ;;  %12403 = vmatprep.subr.bf16.mxu1 %v15253_v19 }
 0x989   :  { %11517 = vmatprep.mubr.msk.f32.mxu0 %vm13330_vm0, %v15254_v47  ;;  %11539 = vmatprep.mubr.msk.f32.mxu1 %vm13330_vm0, %v15254_v47 }
 0x98b   :  { %12393 = vmatpush3.bf16.msra.mxu0 %v14189_v40  ;;  %12405 = vmatpush3.bf16.msra.mxu1 %v13745_v29  ;;  %v15292_v40 = vld [vmem:[#allocation30_spill] sm:$0xff] }
 0x98c   :  { %12394 = vmatprep.subr.bf16.mxu0 %v15253_v19  ;;  %12406 = vmatprep.subr.bf16.mxu1 %v15253_v19 }
 0x98e   :  { %11518 = vmatmul.mubr.msk.f32.vlgmr.msra.gmra.mrb[66].mxu0 %vm1391_vm7, %v6365_v52  ;;  %11540 = vmatmul.mubr.msk.f32.vlgmr.msra.gmra.mrb[72].mxu1 %vm1391_vm7, %v14642_v56  ;;  %v15295_v52 = vld [vmem:[#allocation44_spill] sm:$0xff] }
 0x98f   :  { %12396 = vmatpush3.bf16.msra.mxu0 %v14199_v24  ;;  %12408 = vmatpush3.bf16.msra.mxu1 %v13796_v39 }
 0x990   :  { %12397 = vmatprep.subr.bf16.mxu0 %v15253_v19  ;;  %12409 = vmatprep.subr.bf16.mxu1 %v15253_v19 }
 0x991   :  { %11528 = vmatprep.mubr.msk.f32.mxu0 %vm13330_vm0, %v15254_v47  ;;  %11550 = vmatprep.mubr.msk.f32.mxu1 %vm13330_vm0, %v15254_v47 }
 0x993   :  { %12399 = vmatpush3.bf16.msra.mxu0 %v14209_v59  ;;  %12411 = vmatpush3.bf16.msra.mxu1 %v15273_v48 }
 0x994   :  { %12412 = vmatprep.subr.bf16.mxu0 %v15253_v19  ;;  %12418 = vmatprep.subr.bf16.mxu1 %v15253_v19 }
 0x996   :  { %11529 = vmatmul.mubr.msk.f32.vlgmr.msra.gmra.mrb[66].mxu0 %vm1391_vm7, %v5456_v8  ;;  %11551 = vmatmul.mubr.msk.f32.vlgmr.msra.gmra.mrb[74].mxu1 %vm1391_vm7, %v14642_v56 }
 0x997   :  { %12414 = vmatpush3.bf16.msra.mxu0 %v15274_v1  ;;  %11561 = vmatprep.mubr.msk.f32.mxu0 %vm13330_vm0, %v15254_v47 }
 0x998   :  { %12415 = vmatprep.subr.bf16.mxu0 %v15253_v19  ;;  %12420 = vmatpush3.bf16.msra.mxu1 %v15288_v61 }
 0x999   :  { %12421 = vmatprep.subr.bf16.mxu1 %v15253_v19  ;;  %11572 = vmatprep.mubr.msk.f32.mxu1 %vm13330_vm0, %v15254_v47 }
 0x99b   :  { %12417 = vmatpush3.bf16.msra.mxu0 %v15289_v31 }
 0x99c   :  { %12430 = vmatprep.subr.bf16.mxu0 %v15253_v19  ;;  %12423 = vmatpush3.bf16.msra.mxu1 %v15290_v44 }
 0x99d   :  { %12424 = vmatprep.subr.bf16.mxu1 %v15253_v19 }
 0x99e   :  { %11562 = vmatmul.mubr.msk.f32.vlgmr.msra.gmra.mrb[68].mxu0 %vm1391_vm7, %v14642_v56 }
 0x99f   :  { %12432 = vmatpush3.bf16.msra.mxu0 %v15291_v30  ;;  %11594 = vmatprep.mubr.msk.f32.mxu0 %vm13330_vm0, %v15254_v47 }
 0x9a0   :  { %12433 = vmatprep.subr.bf16.mxu0 %v15253_v19 }
 0x9a3   :  { %12435 = vmatpush3.bf16.msra.mxu0 %v15292_v40 }
 0x9a4   :  { %12436 = vmatprep.subr.bf16.mxu0 %v15253_v19 }
 0xa59   :  { %v6508_v24 = vpop.f32.mrb[64].mxu0  ;;  %v6649_v59 = vpop.f32.mrb[70].mxu1 }
 0xa5a   :  { %v12663_v46 = vadd.f32 %v13075_v62, %v6508_v24  ;;  %v11486_v4 = vpop.f32.mrb[65].mxu0  ;;  %v11508_v56 = vpop.f32.mrb[71].mxu1  ;;  %v12664_v5 = vadd.f32 %v13076_v14, %v6649_v59  ;;  %v9973_v59 = vmul.f32 -1.442695, %v12661_v55 }
 0xa5c   :  { %v9985_v3 = vmul.f32 -1.442695, %v12663_v46  ;;  %v9986_v0 = vmul.f32 -1.442695, %v12664_v5 }
 0xa5e   :  { %12959 = vpow2.f32 %v9985_v3 }
 0xa61   :  { %v6879_v10 = vpop.f32.mrb[72].mxu1 }
 0xa62   :  { %v6883_v18 = vadd.f32 %v6879_v10, %v15293_v26  ;;  %v11541_v28 = vpop.f32.mrb[73].mxu1 }
 0xa64   :  { %v9990_v20 = vmul.f32 -1.442695, %v6883_v18 }
 0xa66   :  { %12961 = vpow2.f32 %v9990_v20 }
 0xa67   :  { %12963 = vpow2.f32 %v9986_v0 }
 0xa68   :  { %v12960_v9 = vpop.eup %12959 }
 0xa69   :  { %v6798_v15 = vadd.f32 1.0, %v12960_v9  ;;  %v6790_v32 = vpop.f32.mrb[66].mxu0  ;;  %v6950_v35 = vpop.f32.mrb[74].mxu1 }
 0xa6a   :  { %v12665_v16 = vadd.f32 %v13077_v2, %v6790_v32  ;;  %v6954_v36 = vadd.f32 %v6950_v35, %v15294_v42  ;;  %v11530_v38 = vpop.f32.mrb[67].mxu0  ;;  %v11552_v33 = vpop.f32.mrb[75].mxu1 }
 0xa6b   :  { %12965 = vrcp.f32 %v6798_v15 }
 0xa6c   :  { %12967 = vtanh.f32 %v12665_v16  ;;  %v9991_v25 = vmul.f32 -1.442695, %v6954_v36 }
 0xa6e   :  { %12969 = vpow2.f32 %v9991_v25 }
 0xa70   :  { %v12962_v41 = vpop.eup %12961 }
 0xa71   :  { %v7029_v7 = vadd.f32 1.0, %v12962_v41  ;;  %v7021_v58 = vpop.f32.mrb[68].mxu0  ;;  %v12964_v8 = vpop.eup %12963 }
 0xa72   :  { %v7025_v27 = vadd.f32 %v7021_v58, %v15295_v52  ;;  %v11563_v49 = vpop.f32.mrb[69].mxu0  ;;  %v6804_v4 = vadd.f32 1.0, %v12964_v8  ;;  %v15296_v58 = vld [vmem:[#allocation31_spill] sm:$0xff] }
 0xa73   :  { %12971 = vrcp.f32 %v7029_v7 }
 0xa74   :  { %12973 = vtanh.f32 %v7025_v27 }
 0xa75   :  { %v12966_v24 = vpop.eup %12965  ;;  %12975 = vpow2.f32 %v9973_v59 }
 0xa76   :  { %v6808_v62 = vmul.f32 %v12966_v24, %v14634_v54  ;;  %v12968_v46 = vpop.eup %12967  ;;  %12977 = vrcp.f32 %v6804_v4 }
 0xa77   :  { %v6809_v56 = vmul.f32 %v12968_v46, %v14266_v17  ;;  %v15297_v46 = vld [vmem:[#allocation41_spill] sm:$0xff] }
 0xa78   :  { %v12970_v10 = vpop.eup %12969 }
 0xa79   :  { %v6810_v3 = vadd.f32 %v6809_v56, %v6808_v62  ;;  %v7035_v26 = vadd.f32 1.0, %v12970_v10 }
 0xa7b   :  { %12979 = vtanh.f32 %v6810_v3 }
 0xa7c   :  { %12981 = vrcp.f32 %v7035_v26 }
 0xa7d   :  { %v12972_v53 = vpop.eup %12971 }
 0xa7e   :  { %v12974_v14 = vpop.eup %12973  ;;  %v7039_v5 = vmul.f32 %v12972_v53, %v14638_v50 }
 0xa7f   :  { %v7040_v18 = vmul.f32 %v12974_v14, %v13972_v43  ;;  %v12976_v54 = vpop.eup %12975 }
 0xa80   :  { %v12978_v20 = vpop.eup %12977  ;;  %v6126_v0 = vadd.f32 1.0, %v12976_v54 }
 0xa81   :  { %v14819_v28 = vadd.f32 %v7040_v18, %v7039_v5  ;;  %v15298_v18 = vld [vmem:[#allocation42_spill] sm:$0xff] }
 0xa83   :  { %12983 = vtanh.f32 %v14819_v28 }
 0xa84   :  { %12985 = vtanh.f32 %v14728_v34 }
 0xa85   :  { %v12980_v17 = vpop.eup %12979  ;;  %12987 = vrcp.f32 %v6126_v0 }
 0xa86   :  { %v14822_v9 = vmul.f32 %v12980_v17, %v12978_v20  ;;  %v12982_v15 = vpop.eup %12981 }
 0xa8d   :  { %v12984_v32 = vpop.eup %12983 }
 0xa8e   :  { %v7043_v50 = vmul.f32 %v12984_v32, %v12982_v15  ;;  %v12986_v35 = vpop.eup %12985 }
 0xa8f   :  { %v12988_v2 = vpop.eup %12987 }
 0xa90   :  { %11573 = vmatmul.mubr.msk.f32.vlgmr.msra.gmra.mrb[76].mxu1 %vm1391_vm7, %v7043_v50  ;;  %11595 = vmatmul.mubr.msk.f32.vlgmr.msra.gmra.mrb[70].mxu0 %vm1391_vm7, %v7043_v50  ;;  %v6134_v16 = vmul.f32 %v12988_v2, %v12986_v35 }
 0xa91   :  { %12426 = vmatpush3.bf16.msra.mxu1 %v13990_v45  ;;  %12438 = vmatpush3.bf16.msra.mxu0 %v13992_v13 }
 0xa92   :  { %12427 = vmatprep.subr.bf16.mxu1 %v15253_v19  ;;  %12439 = vmatprep.subr.bf16.mxu0 %v15253_v19 }
 0xa93   :  { %11583 = vmatprep.mubr.msk.f32.mxu1 %vm13330_vm0, %v15254_v47  ;;  %11605 = vmatprep.mubr.msk.f32.mxu0 %vm13330_vm0, %v15254_v47 }
 0xa95   :  { %12429 = vmatpush3.bf16.msra.mxu1 %v14014_v37  ;;  %12441 = vmatpush3.bf16.msra.mxu0 %v14016_v51 }
 0xa96   :  { %12442 = vmatprep.subr.bf16.mxu1 %v15253_v19  ;;  %12454 = vmatprep.subr.bf16.mxu0 %v15253_v19 }
 0xa98   :  { %11584 = vmatmul.mubr.msk.f32.vlgmr.msra.gmra.mrb[76].mxu1 %vm1391_vm7, %v6134_v16  ;;  %11606 = vmatmul.mubr.msk.f32.vlgmr.msra.gmra.mrb[70].mxu0 %vm1391_vm7, %v6134_v16 }
 0xa99   :  { %12444 = vmatpush3.bf16.msra.mxu1 %v14032_v23  ;;  %12456 = vmatpush3.bf16.msra.mxu0 %v13723_v22 }
 0xa9a   :  { %12445 = vmatprep.subr.bf16.mxu1 %v15253_v19  ;;  %12457 = vmatprep.subr.bf16.mxu0 %v15253_v19 }
 0xa9b   :  { %11616 = vmatprep.mubr.msk.f32.mxu1 %vm13330_vm0, %v15254_v47  ;;  %11638 = vmatprep.mubr.msk.f32.mxu0 %vm13330_vm0, %v15254_v47 }
 0xa9d   :  { %12447 = vmatpush3.bf16.msra.mxu1 %v14048_v12  ;;  %12459 = vmatpush3.bf16.msra.mxu0 %v13745_v29 }
 0xa9e   :  { %12448 = vmatprep.subr.bf16.mxu1 %v15253_v19  ;;  %12460 = vmatprep.subr.bf16.mxu0 %v15253_v19 }
 0xaa0   :  { %11617 = vmatmul.mubr.msk.f32.vlgmr.msra.gmra.mrb[78].mxu1 %vm1391_vm7, %v7043_v50  ;;  %11639 = vmatmul.mubr.msk.f32.vlgmr.msra.gmra.mrb[72].mxu0 %vm1391_vm7, %v7043_v50 }
 0xaa1   :  { %12450 = vmatpush3.bf16.msra.mxu1 %v14066_v57  ;;  %12462 = vmatpush3.bf16.msra.mxu0 %v13796_v39 }
 0xaa2   :  { %12451 = vmatprep.subr.bf16.mxu1 %v15253_v19  ;;  %12463 = vmatprep.subr.bf16.mxu0 %v15253_v19 }
 0xaa3   :  { %11627 = vmatprep.mubr.msk.f32.mxu1 %vm13330_vm0, %v15254_v47  ;;  %11649 = vmatprep.mubr.msk.f32.mxu0 %vm13330_vm0, %v15254_v47 }
 0xaa5   :  { %12453 = vmatpush3.bf16.msra.mxu1 %v14083_v11  ;;  %12465 = vmatpush3.bf16.msra.mxu0 %v15273_v48 }
 0xaa6   :  { %12466 = vmatprep.subr.bf16.mxu1 %v15253_v19  ;;  %12472 = vmatprep.subr.bf16.mxu0 %v15253_v19 }
 0xaa8   :  { %11628 = vmatmul.mubr.msk.f32.vlgmr.msra.gmra.mrb[78].mxu1 %vm1391_vm7, %v6134_v16  ;;  %11650 = vmatmul.mubr.msk.f32.vlgmr.msra.gmra.mrb[74].mxu0 %vm1391_vm7, %v7043_v50 }
 0xaa9   :  { %12468 = vmatpush3.bf16.msra.mxu1 %v15274_v1  ;;  %11660 = vmatprep.mubr.msk.f32.mxu1 %vm13330_vm0, %v15254_v47 }
 0xaaa   :  { %12469 = vmatprep.subr.bf16.mxu1 %v15253_v19  ;;  %12474 = vmatpush3.bf16.msra.mxu0 %v15288_v61 }
 0xaab   :  { %12475 = vmatprep.subr.bf16.mxu0 %v15253_v19  ;;  %11671 = vmatprep.mubr.msk.f32.mxu0 %vm13330_vm0, %v15254_v47 }
 0xaad   :  { %12471 = vmatpush3.bf16.msra.mxu1 %v15289_v31 }
 0xaae   :  { %12484 = vmatprep.subr.bf16.mxu1 %v15253_v19  ;;  %12477 = vmatpush3.bf16.msra.mxu0 %v15290_v44 }
 0xaaf   :  { %12478 = vmatprep.subr.bf16.mxu0 %v15253_v19 }
 0xab0   :  { %11661 = vmatmul.mubr.msk.f32.vlgmr.msra.gmra.mrb[80].mxu1 %vm1391_vm7, %v7043_v50 }
 0xab1   :  { %12486 = vmatpush3.bf16.msra.mxu1 %v15291_v30  ;;  %11693 = vmatprep.mubr.msk.f32.mxu1 %vm13330_vm0, %v15254_v47 }
 0xab2   :  { %12487 = vmatprep.subr.bf16.mxu1 %v15253_v19 }
 0xab5   :  { %12489 = vmatpush3.bf16.msra.mxu1 %v15292_v40 }
 0xab6   :  { %12490 = vmatprep.subr.bf16.mxu1 %v15253_v19 }
 0xb6b   :  { %v7186_v42 = vpop.f32.mrb[76].mxu1  ;;  %v7327_v36 = vpop.f32.mrb[70].mxu0 }
 0xb6c   :  { %v12666_v38 = vadd.f32 %v14715_v60, %v7186_v42  ;;  %v11585_v33 = vpop.f32.mrb[77].mxu1  ;;  %v11607_v25 = vpop.f32.mrb[71].mxu0  ;;  %v12667_v26 = vadd.f32 %v14810_v63, %v7327_v36 }
 0xb6e   :  { %v9998_v41 = vmul.f32 -1.442695, %v12666_v38  ;;  %v9999_v15 = vmul.f32 -1.442695, %v12667_v26 }
 0xb70   :  { %12989 = vpow2.f32 %v9998_v41 }
 0xb73   :  { %v7557_v7 = vpop.f32.mrb[72].mxu0 }
 0xb74   :  { %v7561_v55 = vadd.f32 %v7557_v7, %v15296_v58  ;;  %v11640_v52 = vpop.f32.mrb[73].mxu0 }
 0xb76   :  { %v10003_v27 = vmul.f32 -1.442695, %v7561_v55 }
 0xb78   :  { %12991 = vpow2.f32 %v10003_v27 }
 0xb7a   :  { %v12990_v49 = vpop.eup %12989 }
 0xb7b   :  { %v7476_v8 = vadd.f32 1.0, %v12990_v49  ;;  %v7468_v24 = vpop.f32.mrb[78].mxu1  ;;  %v7628_v59 = vpop.f32.mrb[74].mxu0 }
 0xb7c   :  { %v12668_v62 = vadd.f32 %v14719_v21, %v7468_v24  ;;  %v7632_v4 = vadd.f32 %v7628_v59, %v15297_v46  ;;  %v11629_v56 = vpop.f32.mrb[79].mxu1  ;;  %v11651_v3 = vpop.f32.mrb[75].mxu0 }
 0xb7d   :  { %12993 = vrcp.f32 %v7476_v8  ;;  %v15299_v56 = vld [vmem:[#allocation36_spill] sm:$0xff] }
 0xb7e   :  { %12995 = vtanh.f32 %v12668_v62  ;;  %v10004_v10 = vmul.f32 -1.442695, %v7632_v4 }
 0xb80   :  { %12997 = vpow2.f32 %v10004_v10 }
 0xb82   :  { %v12992_v53 = vpop.eup %12991 }
 0xb83   :  { %v7707_v14 = vadd.f32 1.0, %v12992_v53  ;;  %v7699_v5 = vpop.f32.mrb[80].mxu1 }
 0xb84   :  { %v7703_v54 = vadd.f32 %v7699_v5, %v15298_v18  ;;  %v11662_v20 = vpop.f32.mrb[81].mxu1 }
 0xb85   :  { %12999 = vrcp.f32 %v7707_v14  ;;  %v15300_v20 = vld [vmem:[#allocation47_spill] sm:$0xff] }
 0xb86   :  { %13001 = vtanh.f32 %v7703_v54 }
 0xb87   :  { %v12994_v17 = vpop.eup %12993  ;;  %13003 = vpow2.f32 %v9999_v15 }
 0xb88   :  { %v7486_v0 = vmul.f32 %v12994_v17, %v14728_v34  ;;  %v12996_v32 = vpop.eup %12995 }
 0xb89   :  { %v7487_v50 = vmul.f32 %v12996_v32, %v14146_v6 }
 0xb8a   :  { %v12998_v2 = vpop.eup %12997 }
 0xb8b   :  { %v14896_v35 = vadd.f32 %v7487_v50, %v7486_v0  ;;  %v7713_v38 = vadd.f32 1.0, %v12998_v2 }
 0xb8d   :  { %13005 = vrcp.f32 %v7713_v38 }
 0xb8f   :  { %v13000_v16 = vpop.eup %12999 }
 0xb90   :  { %v13002_v42 = vpop.eup %13001  ;;  %v7717_v36 = vmul.f32 %v13000_v16, %v14819_v28 }
 0xb91   :  { %v7718_v33 = vmul.f32 %v13002_v42, %v13972_v43  ;;  %v13004_v34 = vpop.eup %13003 }
 0xb92   :  { %v7482_v41 = vadd.f32 1.0, %v13004_v34 }
 0xb93   :  { %v14900_v25 = vadd.f32 %v7718_v33, %v7717_v36  ;;  %v15301_v36 = vld [vmem:[#allocation48_spill] sm:$0xff] }
 0xb95   :  { %13007 = vtanh.f32 %v14900_v25 }
 0xb96   :  { %13009 = vtanh.f32 %v14896_v35 }
 0xb97   :  { %13011 = vrcp.f32 %v7482_v41  ;;  %v13006_v7 = vpop.eup %13005 }
 0xb9f   :  { %v13008_v58 = vpop.eup %13007 }
 0xba0   :  { %v7721_v55 = vmul.f32 %v13008_v58, %v13006_v7  ;;  %v13010_v28 = vpop.eup %13009 }
 0xba1   :  { %v13012_v52 = vpop.eup %13011 }
 0xba2   :  { %11672 = vmatmul.mubr.msk.f32.vlgmr.msra.gmra.mrb[76].mxu0 %vm1391_vm7, %v7721_v55  ;;  %11694 = vmatmul.mubr.msk.f32.vlgmr.msra.gmra.mrb[82].mxu1 %vm1391_vm7, %v7721_v55  ;;  %v7490_v27 = vmul.f32 %v13012_v52, %v13010_v28 }
 0xba3   :  { %12480 = vmatpush3.bf16.msra.mxu0 %v13990_v45  ;;  %12492 = vmatpush3.bf16.msra.mxu1 %v13992_v13 }
 0xba4   :  { %12481 = vmatprep.subr.bf16.mxu0 %v15253_v19  ;;  %12493 = vmatprep.subr.bf16.mxu1 %v15253_v19 }
 0xba5   :  { %11682 = vmatprep.mubr.msk.f32.mxu0 %vm13330_vm0, %v15254_v47  ;;  %11704 = vmatprep.mubr.msk.f32.mxu1 %vm13330_vm0, %v15254_v47 }
 0xba7   :  { %12483 = vmatpush3.bf16.msra.mxu0 %v14014_v37  ;;  %12495 = vmatpush3.bf16.msra.mxu1 %v14016_v51 }
 0xba8   :  { %12496 = vmatprep.subr.bf16.mxu0 %v15253_v19  ;;  %12508 = vmatprep.subr.bf16.mxu1 %v15253_v19 }
 0xbaa   :  { %11683 = vmatmul.mubr.msk.f32.vlgmr.msra.gmra.mrb[76].mxu0 %vm1391_vm7, %v7490_v27  ;;  %11705 = vmatmul.mubr.msk.f32.vlgmr.msra.gmra.mrb[82].mxu1 %vm1391_vm7, %v7490_v27 }
 0xbab   :  { %12498 = vmatpush3.bf16.msra.mxu0 %v14032_v23  ;;  %12510 = vmatpush3.bf16.msra.mxu1 %v13723_v22 }
 0xbac   :  { %12499 = vmatprep.subr.bf16.mxu0 %v15253_v19  ;;  %12511 = vmatprep.subr.bf16.mxu1 %v15253_v19 }
 0xbad   :  { %11715 = vmatprep.mubr.msk.f32.mxu0 %vm13330_vm0, %v15254_v47  ;;  %11737 = vmatprep.mubr.msk.f32.mxu1 %vm13330_vm0, %v15254_v47 }
 0xbaf   :  { %12501 = vmatpush3.bf16.msra.mxu0 %v14048_v12  ;;  %12513 = vmatpush3.bf16.msra.mxu1 %v13745_v29 }
 0xbb0   :  { %12502 = vmatprep.subr.bf16.mxu0 %v15253_v19  ;;  %12514 = vmatprep.subr.bf16.mxu1 %v15253_v19 }
 0xbb2   :  { %11716 = vmatmul.mubr.msk.f32.vlgmr.msra.gmra.mrb[78].mxu0 %vm1391_vm7, %v7721_v55  ;;  %11738 = vmatmul.mubr.msk.f32.vlgmr.msra.gmra.mrb[84].mxu1 %vm1391_vm7, %v7721_v55 }
 0xbb3   :  { %12504 = vmatpush3.bf16.msra.mxu0 %v14066_v57  ;;  %12516 = vmatpush3.bf16.msra.mxu1 %v13796_v39 }
 0xbb4   :  { %12505 = vmatprep.subr.bf16.mxu0 %v15253_v19  ;;  %12517 = vmatprep.subr.bf16.mxu1 %v15253_v19 }
 0xbb5   :  { %11726 = vmatprep.mubr.msk.f32.mxu0 %vm13330_vm0, %v15254_v47  ;;  %11748 = vmatprep.mubr.msk.f32.mxu1 %vm13330_vm0, %v15254_v47 }
 0xbb7   :  { %12507 = vmatpush3.bf16.msra.mxu0 %v14083_v11  ;;  %12519 = vmatpush3.bf16.msra.mxu1 %v15273_v48 }
 0xbb8   :  { %12520 = vmatprep.subr.bf16.mxu0 %v15253_v19  ;;  %12526 = vmatprep.subr.bf16.mxu1 %v15253_v19 }
 0xbba   :  { %11727 = vmatmul.mubr.msk.f32.vlgmr.msra.gmra.mrb[78].mxu0 %vm1391_vm7, %v7490_v27  ;;  %11749 = vmatmul.mubr.msk.f32.vlgmr.msra.gmra.mrb[86].mxu1 %vm1391_vm7, %v7721_v55 }
 0xbbb   :  { %12522 = vmatpush3.bf16.msra.mxu0 %v15274_v1  ;;  %11759 = vmatprep.mubr.msk.f32.mxu0 %vm13330_vm0, %v15254_v47 }
 0xbbc   :  { %12523 = vmatprep.subr.bf16.mxu0 %v15253_v19  ;;  %12528 = vmatpush3.bf16.msra.mxu1 %v15288_v61 }
 0xbbd   :  { %12529 = vmatprep.subr.bf16.mxu1 %v15253_v19  ;;  %11770 = vmatprep.mubr.msk.f32.mxu1 %vm13330_vm0, %v15254_v47 }
 0xbbf   :  { %12525 = vmatpush3.bf16.msra.mxu0 %v15289_v31 }
 0xbc0   :  { %12538 = vmatprep.subr.bf16.mxu0 %v15253_v19  ;;  %12531 = vmatpush3.bf16.msra.mxu1 %v15290_v44 }
 0xbc1   :  { %12532 = vmatprep.subr.bf16.mxu1 %v15253_v19 }
 0xbc2   :  { %11760 = vmatmul.mubr.msk.f32.vlgmr.msra.gmra.mrb[80].mxu0 %vm1391_vm7, %v7721_v55 }
 0xbc3   :  { %12540 = vmatpush3.bf16.msra.mxu0 %v15291_v30  ;;  %11792 = vmatprep.mubr.msk.f32.mxu0 %vm13330_vm0, %v15254_v47 }
 0xbc4   :  { %12541 = vmatprep.subr.bf16.mxu0 %v15253_v19 }
 0xbc7   :  { %12543 = vmatpush3.bf16.msra.mxu0 %v15292_v40 }
 0xbc8   :  { %12544 = vmatprep.subr.bf16.mxu0 %v15253_v19 }
 0xc7d   :  { %v7864_v49 = vpop.f32.mrb[76].mxu0  ;;  %v8005_v8 = vpop.f32.mrb[82].mxu1 }
 0xc7e   :  { %v12669_v24 = vadd.f32 %v14715_v60, %v7864_v49  ;;  %v11684_v59 = vpop.f32.mrb[77].mxu0  ;;  %v11706_v62 = vpop.f32.mrb[83].mxu1  ;;  %v12670_v42 = vadd.f32 %v14810_v63, %v8005_v8 }
 0xc80   :  { %v10011_v46 = vmul.f32 -1.442695, %v12669_v24  ;;  %v10012_v7 = vmul.f32 -1.442695, %v12670_v42 }
 0xc82   :  { %13013 = vpow2.f32 %v10011_v46 }
 0xc85   :  { %v8235_v4 = vpop.f32.mrb[84].mxu1 }
 0xc86   :  { %v8239_v3 = vadd.f32 %v8235_v4, %v15299_v56  ;;  %v11739_v10 = vpop.f32.mrb[85].mxu1 }
 0xc88   :  { %v10016_v53 = vmul.f32 -1.442695, %v8239_v3 }
 0xc8a   :  { %13015 = vpow2.f32 %v10016_v53 }
 0xc8c   :  { %v13014_v14 = vpop.eup %13013 }
 0xc8d   :  { %v8154_v5 = vadd.f32 1.0, %v13014_v14  ;;  %v8146_v26 = vpop.f32.mrb[78].mxu0  ;;  %v8306_v18 = vpop.f32.mrb[86].mxu1 }
 0xc8e   :  { %v12671_v54 = vadd.f32 %v14719_v21, %v8146_v26  ;;  %v8310_v17 = vadd.f32 %v8306_v18, %v15300_v20  ;;  %v11728_v0 = vpop.f32.mrb[79].mxu0  ;;  %v11750_v15 = vpop.f32.mrb[87].mxu1 }
 0xc8f   :  { %13017 = vrcp.f32 %v8154_v5 }
 0xc90   :  { %13019 = vtanh.f32 %v12671_v54  ;;  %v10017_v32 = vmul.f32 -1.442695, %v8310_v17  ;;  %v15303_v17 = vld [vmem:[#allocation45_spill] sm:$0xff] }
 0xc92   :  { %13021 = vpow2.f32 %v10017_v32 }
 0xc94   :  { %v13016_v50 = vpop.eup %13015 }
 0xc95   :  { %v8385_v2 = vadd.f32 1.0, %v13016_v50  ;;  %v8377_v16 = vpop.f32.mrb[80].mxu0 }
 0xc96   :  { %v8381_v38 = vadd.f32 %v8377_v16, %v15301_v36  ;;  %v11761_v33 = vpop.f32.mrb[81].mxu0  ;;  %v15304_v36 = vld [vmem:[#allocation46_spill] sm:$0xff] }
 0xc97   :  { %13023 = vrcp.f32 %v8385_v2 }
 0xc98   :  { %13025 = vtanh.f32 %v8381_v38 }
 0xc99   :  { %v13018_v34 = vpop.eup %13017  ;;  %13027 = vpow2.f32 %v10012_v7 }
 0xc9a   :  { %v8164_v41 = vmul.f32 %v13018_v34, %v14896_v35  ;;  %v13020_v58 = vpop.eup %13019 }
 0xc9b   :  { %v8165_v55 = vmul.f32 %v13020_v58, %v14146_v6 }
 0xc9c   :  { %v13022_v52 = vpop.eup %13021 }
 0xc9d   :  { %v14975_v28 = vadd.f32 %v8165_v55, %v8164_v41  ;;  %v8391_v24 = vadd.f32 1.0, %v13022_v52 }
 0xc9f   :  { %13029 = vrcp.f32 %v8391_v24 }
 0xca1   :  { %v13024_v27 = vpop.eup %13023 }
 0xca2   :  { %v13026_v49 = vpop.eup %13025  ;;  %v8395_v8 = vmul.f32 %v13024_v27, %v14900_v25 }
 0xca3   :  { %v8396_v59 = vmul.f32 %v13026_v49, %v13972_v43  ;;  %v13028_v35 = vpop.eup %13027 }
 0xca4   :  { %v8160_v46 = vadd.f32 1.0, %v13028_v35 }
 0xca5   :  { %v14979_v62 = vadd.f32 %v8396_v59, %v8395_v8 }
 0xca7   :  { %13031 = vtanh.f32 %v14979_v62 }
 0xca8   :  { %13033 = vtanh.f32 %v14975_v28 }
 0xca9   :  { %13035 = vrcp.f32 %v8160_v46  ;;  %v13030_v4 = vpop.eup %13029 }
 0xcb1   :  { %v13032_v56 = vpop.eup %13031 }
 0xcb2   :  { %v8399_v3 = vmul.f32 %v13032_v56, %v13030_v4  ;;  %v13034_v25 = vpop.eup %13033 }
 0xcb3   :  { %v13036_v10 = vpop.eup %13035 }
 0xcb4   :  { %11771 = vmatmul.mubr.msk.f32.vlgmr.msra.gmra.mrb[88].mxu1 %vm1391_vm7, %v8399_v3  ;;  %11793 = vmatmul.mubr.msk.f32.vlgmr.msra.gmra.mrb[82].mxu0 %vm1391_vm7, %v8399_v3  ;;  %v8168_v53 = vmul.f32 %v13036_v10, %v13034_v25 }
 0xcb5   :  { %12534 = vmatpush3.bf16.msra.mxu1 %v13990_v45  ;;  %12546 = vmatpush3.bf16.msra.mxu0 %v13992_v13 }
 0xcb6   :  { %12535 = vmatprep.subr.bf16.mxu1 %v15253_v19  ;;  %12547 = vmatprep.subr.bf16.mxu0 %v15253_v19 }
 0xcb7   :  { %11781 = vmatprep.mubr.msk.f32.mxu1 %vm13330_vm0, %v15254_v47  ;;  %11803 = vmatprep.mubr.msk.f32.mxu0 %vm13330_vm0, %v15254_v47 }
 0xcb9   :  { %12537 = vmatpush3.bf16.msra.mxu1 %v14014_v37  ;;  %12549 = vmatpush3.bf16.msra.mxu0 %v14016_v51 }
 0xcba   :  { %12550 = vmatprep.subr.bf16.mxu1 %v15253_v19  ;;  %12562 = vmatprep.subr.bf16.mxu0 %v15253_v19 }
 0xcbc   :  { %11782 = vmatmul.mubr.msk.f32.vlgmr.msra.gmra.mrb[88].mxu1 %vm1391_vm7, %v8168_v53  ;;  %11804 = vmatmul.mubr.msk.f32.vlgmr.msra.gmra.mrb[82].mxu0 %vm1391_vm7, %v8168_v53 }
 0xcbd   :  { %12552 = vmatpush3.bf16.msra.mxu1 %v14032_v23  ;;  %12564 = vmatpush3.bf16.msra.mxu0 %v13723_v22 }
 0xcbe   :  { %12553 = vmatprep.subr.bf16.mxu1 %v15253_v19  ;;  %12565 = vmatprep.subr.bf16.mxu0 %v15253_v19 }
 0xcbf   :  { %11814 = vmatprep.mubr.msk.f32.mxu1 %vm13330_vm0, %v15254_v47  ;;  %11836 = vmatprep.mubr.msk.f32.mxu0 %vm13330_vm0, %v15254_v47 }
 0xcc1   :  { %12555 = vmatpush3.bf16.msra.mxu1 %v14048_v12  ;;  %12567 = vmatpush3.bf16.msra.mxu0 %v13745_v29 }
 0xcc2   :  { %12556 = vmatprep.subr.bf16.mxu1 %v15253_v19  ;;  %12568 = vmatprep.subr.bf16.mxu0 %v15253_v19 }
 0xcc4   :  { %11815 = vmatmul.mubr.msk.f32.vlgmr.msra.gmra.mrb[90].mxu1 %vm1391_vm7, %v8399_v3  ;;  %11837 = vmatmul.mubr.msk.f32.vlgmr.msra.gmra.mrb[84].mxu0 %vm1391_vm7, %v8399_v3 }
 0xcc5   :  { %12558 = vmatpush3.bf16.msra.mxu1 %v14066_v57  ;;  %12570 = vmatpush3.bf16.msra.mxu0 %v13796_v39 }
 0xcc6   :  { %12559 = vmatprep.subr.bf16.mxu1 %v15253_v19  ;;  %12571 = vmatprep.subr.bf16.mxu0 %v15253_v19 }
 0xcc7   :  { %11825 = vmatprep.mubr.msk.f32.mxu1 %vm13330_vm0, %v15254_v47  ;;  %11847 = vmatprep.mubr.msk.f32.mxu0 %vm13330_vm0, %v15254_v47 }
 0xcc9   :  { %12561 = vmatpush3.bf16.msra.mxu1 %v14083_v11  ;;  %12573 = vmatpush3.bf16.msra.mxu0 %v15273_v48 }
 0xcca   :  { %12574 = vmatprep.subr.bf16.mxu1 %v15253_v19  ;;  %12580 = vmatprep.subr.bf16.mxu0 %v15253_v19 }
 0xccc   :  { %11826 = vmatmul.mubr.msk.f32.vlgmr.msra.gmra.mrb[90].mxu1 %vm1391_vm7, %v8168_v53  ;;  %11848 = vmatmul.mubr.msk.f32.vlgmr.msra.gmra.mrb[86].mxu0 %vm1391_vm7, %v8399_v3  ;;  %v9533_v53 = vld [vmem:[#allocation16 + $0x10] sm:$0xff] }
 0xccd   :  { %12576 = vmatpush3.bf16.msra.mxu1 %v15274_v1  ;;  %11858 = vmatprep.mubr.msk.f32.mxu1 %vm13330_vm0, %v15254_v47 }
 0xcce   :  { %12577 = vmatprep.subr.bf16.mxu1 %v15253_v19  ;;  %12582 = vmatpush3.bf16.msra.mxu0 %v15288_v61 }
 0xccf   :  { %12583 = vmatprep.subr.bf16.mxu0 %v15253_v19  ;;  %11869 = vmatprep.mubr.msk.f32.mxu0 %vm13330_vm0, %v15254_v47 }
 0xcd1   :  { %12579 = vmatpush3.bf16.msra.mxu1 %v15289_v31 }
 0xcd2   :  { %12592 = vmatprep.subr.bf16.mxu1 %v15253_v19  ;;  %12585 = vmatpush3.bf16.msra.mxu0 %v15290_v44  ;;  %v15302_v44 = vld [vmem:[#allocation34_spill] sm:$0xff] }
 0xcd3   :  { %12586 = vmatprep.subr.bf16.mxu0 %v15253_v19 }
 0xcd4   :  { %11859 = vmatmul.mubr.msk.f32.vlgmr.msra.gmra.mrb[92].mxu1 %vm1391_vm7, %v8399_v3 }
 0xcd5   :  { %12594 = vmatpush3.bf16.msra.mxu1 %v15291_v30  ;;  %11891 = vmatprep.mubr.msk.f32.mxu1 %vm13330_vm0, %v15254_v47 }
 0xcd6   :  { %12595 = vmatprep.subr.bf16.mxu1 %v15253_v19 }
 0xcd9   :  { %12597 = vmatpush3.bf16.msra.mxu1 %v15292_v40 }
 0xcda   :  { %12598 = vmatprep.subr.bf16.mxu1 %v15253_v19 }
 0xd8f   :  { %v8542_v22 = vpop.f32.mrb[88].mxu1  ;;  %v8683_v29 = vpop.f32.mrb[82].mxu0 }
 0xd90   :  { %v12672_v39 = vadd.f32 %v14715_v60, %v8542_v22  ;;  %v11783_v48 = vpop.f32.mrb[89].mxu1  ;;  %v11805_v1 = vpop.f32.mrb[83].mxu0  ;;  %v12673_v42 = vadd.f32 %v14810_v63, %v8683_v29  ;;  %v9534_v22 = vld [vmem:[#allocation16 + $0x18] sm:$0xff] }
 0xd91   :  { %v12620_v29 = vpack.c.bf16 %v9534_v22, %v9533_v53  ;;  %v9692_v48 = vld [vmem:[%s15172_s20 + $0x10] sm:$0xff] }
 0xd92   :  { %v10024_v61 = vmul.f32 -1.442695, %v12672_v39  ;;  %v10025_v41 = vmul.f32 -1.442695, %v12673_v42  ;;  %v9691_v39 = vld [vmem:[%s15172_s20 + $0x8] sm:$0xff] }
 0xd94   :  { %13037 = vpow2.f32 %v10024_v61  ;;  %v9693_v61 = vld [vmem:[%s15172_s20 + $0x18] sm:$0xff] }
 0xd97   :  { %v8913_v31 = vpop.f32.mrb[84].mxu0 }
 0xd98   :  { %v8917_v30 = vadd.f32 %v8913_v31, %v15302_v44  ;;  %v11838_v14 = vpop.f32.mrb[85].mxu0  ;;  %v12632_v31 = vpack.c.bf16 %v9693_v61, %v9692_v48 }
 0xd99   :  { %v13079_v14 = vld [vmem:[#allocation7] ss:$0 sm:$0xff] }
 0xd9a   :  { %v10029_v5 = vmul.f32 -1.442695, %v8917_v30 }
 0xd9c   :  { %13039 = vpow2.f32 %v10029_v5 }
 0xd9e   :  { %v13038_v26 = vpop.eup %13037 }
 0xd9f   :  { %v8832_v18 = vadd.f32 1.0, %v13038_v26  ;;  %v8824_v54 = vpop.f32.mrb[90].mxu1  ;;  %v8984_v40 = vpop.f32.mrb[86].mxu0 }
 0xda0   :  { %v12674_v20 = vadd.f32 %v14719_v21, %v8824_v54  ;;  %v8988_v0 = vadd.f32 %v8984_v40, %v15303_v17  ;;  %v11827_v15 = vpop.f32.mrb[91].mxu1  ;;  %v11849_v60 = vpop.f32.mrb[87].mxu0 }
 0xda1   :  { %13041 = vrcp.f32 %v8832_v18 }
 0xda2   :  { %13043 = vtanh.f32 %v12674_v20  ;;  %v10030_v32 = vmul.f32 -1.442695, %v8988_v0 }
 0xda4   :  { %13045 = vpow2.f32 %v10030_v32 }
 0xda6   :  { %v13040_v50 = vpop.eup %13039 }
 0xda7   :  { %v9063_v2 = vadd.f32 1.0, %v13040_v50  ;;  %v9055_v16 = vpop.f32.mrb[92].mxu1  ;;  %v13080_v50 = vld [vmem:[#allocation7 + $0x2] ss:$0 sm:$0xff] }
 0xda8   :  { %v9059_v38 = vadd.f32 %v9055_v16, %v15304_v36  ;;  %v11860_v33 = vpop.f32.mrb[93].mxu1 }
 0xda9   :  { %13047 = vrcp.f32 %v9063_v2 }
 0xdaa   :  { %13049 = vtanh.f32 %v9059_v38 }
 0xdab   :  { %v13042_v34 = vpop.eup %13041  ;;  %13051 = vpow2.f32 %v10025_v41 }
 0xdac   :  { %v8842_v21 = vmul.f32 %v13042_v34, %v14975_v28  ;;  %v13044_v7 = vpop.eup %13043 }
 0xdad   :  { %v8843_v58 = vmul.f32 %v13044_v7, %v14146_v6 }
 0xdae   :  { %v13046_v52 = vpop.eup %13045 }
 0xdaf   :  { %v15054_v55 = vadd.f32 %v8843_v58, %v8842_v21  ;;  %v9069_v24 = vadd.f32 1.0, %v13046_v52 }
 0xdb1   :  { %13053 = vrcp.f32 %v9069_v24 }
 0xdb3   :  { %v13048_v27 = vpop.eup %13047 }
 0xdb4   :  { %v13050_v49 = vpop.eup %13049  ;;  %v9073_v8 = vmul.f32 %v13048_v27, %v14979_v62  ;;  %v9532_v62 = vld [vmem:[#allocation16 + $0x8] sm:$0xff]  ;;  %v9694_v27 = vld [vmem:[%s15172_s20 + $0x20] sm:$0xff] }
 0xdb5   :  { %v9074_v59 = vmul.f32 %v13050_v49, %v13972_v43  ;;  %v13052_v46 = vpop.eup %13051  ;;  %v9531_v43 = vld [vmem:[#allocation16] sm:$0xff] }
 0xdb6   :  { %v8838_v28 = vadd.f32 1.0, %v13052_v46 }
 0xdb7   :  { %v9075_v35 = vadd.f32 %v9074_v59, %v9073_v8  ;;  %v9697_v8 = vld [vmem:[%s15172_s20 + $0x38] sm:$0xff] }
 0xdb9   :  { %13055 = vtanh.f32 %v9075_v35  ;;  %v10041_v35 = vld [vmem:[%s15171_s19] ss:$0 sm:$0xff] }
 0xdba   :  { %13057 = vtanh.f32 %v15054_v55 }
 0xdbb   :  { %13059 = vrcp.f32 %v8838_v28  ;;  %v13054_v4 = vpop.eup %13053 }
 0xdc3   :  { %v13056_v56 = vpop.eup %13055 }
 0xdc4   :  { %v9077_v3 = vmul.f32 %v13056_v56, %v13054_v4  ;;  %v13058_v25 = vpop.eup %13057  ;;  %v10042_v56 = vld [vmem:[%s15305_s10] ss:$0 sm:$0xff] }
 0xdc5   :  { %v13060_v10 = vpop.eup %13059 }
 0xdc6   :  { %11870 = vmatmul.mubr.msk.f32.vlgmr.msra.gmra.mrb[88].mxu0 %vm1391_vm7, %v9077_v3  ;;  %11892 = vmatmul.mubr.msk.f32.vlgmr.msra.gmra.mrb[94].mxu1 %vm1391_vm7, %v9077_v3 }
 0xdc7   :  { %12588 = vmatpush3.bf16.msra.mxu0 %v13990_v45  ;;  %12600 = vmatpush3.bf16.msra.mxu1 %v13992_v13  ;;  %v12617_v45 = vpack.c.bf16 %v9532_v62, %v9531_v43  ;;  %v8846_v13 = vmul.f32 %v13060_v10, %v13058_v25 }
 0xdc8   :  { %12589 = vmatprep.subr.bf16.mxu0 %v15253_v19  ;;  %12601 = vmatprep.subr.bf16.mxu1 %v15253_v19 }
 0xdc9   :  { %11880 = vmatprep.mubr.msk.f32.mxu0 %vm13330_vm0, %v15254_v47  ;;  %11902 = vmatprep.mubr.msk.f32.mxu1 %vm13330_vm0, %v15254_v47 }
 0xdcb   :  { %12591 = vmatpush3.bf16.msra.mxu0 %v14014_v37  ;;  %12603 = vmatpush3.bf16.msra.mxu1 %v14016_v51  ;;  %v9526_v37 = vmax.f32 %v14822_v9, 0.0  ;;  %v9527_v51 = vld [vmem:[%s15169_s17] sm:$0xff] }
 0xdcc   :  { %12604 = vmatprep.subr.bf16.mxu0 %v15253_v19  ;;  %12616 = vmatprep.subr.bf16.mxu1 %v15253_v19 }
 0xdce   :  { %11881 = vmatmul.mubr.msk.f32.vlgmr.msra.gmra.mrb[88].mxu0 %vm1391_vm7, %v8846_v13  ;;  %11903 = vmatmul.mubr.msk.f32.vlgmr.msra.gmra.mrb[94].mxu1 %vm1391_vm7, %v8846_v13 }
 0xdcf   :  { %12606 = vmatpush3.bf16.msra.mxu0 %v14032_v23  ;;  %12618 = vmatpush3.bf16.msra.mxu1 %v12617_v45  ;;  %v9528_v23 = vld [vmem:[%s15169_s17 + $0x8] sm:$0xff] }
 0xdd0   :  { %12607 = vmatprep.subr.bf16.mxu0 %v15253_v19  ;;  %12619 = vmatprep.subr.bf16.mxu1 %v15253_v19 }
 0xdd1   :  { %11913 = vmatprep.mubr.msk.f32.mxu0 %vm13330_vm0, %v15254_v47  ;;  %11935 = vmatprep.mubr.msk.f32.mxu1 %vm13330_vm0, %v15254_v47 }
 0xdd3   :  { %12609 = vmatpush3.bf16.msra.mxu0 %v14048_v12  ;;  %12621 = vmatpush3.bf16.msra.mxu1 %v12620_v29  ;;  %v9529_v12 = vld [vmem:[%s15169_s17 + $0x10] sm:$0xff] }
 0xdd4   :  { %12610 = vmatprep.subr.bf16.mxu0 %v15253_v19  ;;  %12622 = vmatprep.subr.bf16.mxu1 %v15253_v19 }
 0xdd6   :  { %11914 = vmatmul.mubr.msk.f32.vlgmr.msra.gmra.mrb[90].mxu0 %vm1391_vm7, %v9077_v3  ;;  %11936 = vmatmul.mubr.msk.f32.vlgmr.msra.gmra.mrb[96].mxu1 %vm1391_vm7, %v9526_v37 }
 0xdd7   :  { %12612 = vmatpush3.bf16.msra.mxu0 %v14066_v57  ;;  %11924 = vmatprep.mubr.msk.f32.mxu0 %vm13330_vm0, %v15254_v47  ;;  %v12623_v57 = vpack.c.bf16 %v9528_v23, %v9527_v51 }
 0xdd8   :  { %12613 = vmatprep.subr.bf16.mxu0 %v15253_v19  ;;  %11946 = vmatprep.mubr.msk.f32.mxu1 %vm13330_vm0, %v15254_v47 }
 0xdd9   :  { %12624 = vmatpush3.bf16.msra.mxu1 %v12623_v57 }
 0xdda   :  { %12625 = vmatprep.subr.bf16.mxu1 %v15253_v19 }
 0xddb   :  { %12615 = vmatpush3.bf16.msra.mxu0 %v14083_v11  ;;  %v9530_v11 = vld [vmem:[%s15169_s17 + $0x18] sm:$0xff] }
 0xddc   :  { %12628 = vmatprep.subr.bf16.mxu0 %v15253_v19  ;;  %v12626_v9 = vpack.c.bf16 %v9530_v11, %v9529_v12 }
 0xdde   :  { %11925 = vmatmul.mubr.msk.f32.vlgmr.msra.gmra.mrb[90].mxu0 %vm1391_vm7, %v8846_v13  ;;  %12627 = vmatpush3.bf16.msra.mxu1 %v12626_v9 }
 0xddf   :  { %11965 = vmatprep.mubr.msk.f32.mxu0 %vm13330_vm0, %v15254_v47  ;;  %v9690_v47 = vld [vmem:[%s15172_s20] sm:$0xff] }
 0xde0   :  { %v12629_v1 = vpack.c.bf16 %v9691_v39, %v9690_v47 }
 0xde2   :  { %12630 = vmatpush3.bf16.msra.mxu0 %v12629_v1 }
 0xde3   :  { %12631 = vmatprep.subr.bf16.mxu0 %v15253_v19 }
 0xde6   :  { %12633 = vmatpush3.bf16.msra.mxu0 %v12632_v31 }
 0xde7   :  { %12634 = vmatprep.subr.bf16.mxu0 %v15253_v19 }
 0xea1   :  { %v9220_v44 = vpop.f32.mrb[88].mxu0  ;;  %v9361_v30 = vpop.f32.mrb[94].mxu1 }
 0xea2   :  { %v12675_v5 = vadd.f32 %v13079_v14, %v9220_v44  ;;  %v11882_v26 = vpop.f32.mrb[89].mxu0  ;;  %v11904_v18 = vpop.f32.mrb[95].mxu1  ;;  %v12676_v20 = vadd.f32 %v14810_v63, %v9361_v30 }
 0xea4   :  { %v10037_v54 = vmul.f32 -1.442695, %v12675_v5  ;;  %v10038_v0 = vmul.f32 -1.442695, %v12676_v20 }
 0xea6   :  { %13061 = vpow2.f32 %v10037_v54 }
 0xea7   :  { %13063 = vpow2.f32 %v10038_v0 }
 0xea9   :  { %v9604_v40 = vpop.f32.mrb[96].mxu1 }
 0xeaa   :  { %v11937_v17 = vpop.f32.mrb[97].mxu1 }
 0xeb0   :  { %v13062_v15 = vpop.eup %13061 }
 0xeb1   :  { %v9510_v60 = vadd.f32 1.0, %v13062_v15  ;;  %v9502_v32 = vpop.f32.mrb[90].mxu0  ;;  %v13064_v42 = vpop.eup %13063 }
 0xeb2   :  { %v12677_v2 = vadd.f32 %v13080_v50, %v9502_v32  ;;  %v11926_v16 = vpop.f32.mrb[91].mxu0  ;;  %v9516_v34 = vadd.f32 1.0, %v13064_v42 }
 0xeb3   :  { %13065 = vrcp.f32 %v9510_v60 }
 0xeb4   :  { %13067 = vtanh.f32 %v12677_v2 }
 0xeb5   :  { %13069 = vrcp.f32 %v9516_v34 }
 0xebd   :  { %v13066_v36 = vpop.eup %13065 }
 0xebe   :  { %v9520_v38 = vmul.f32 %v13066_v36, %v15054_v55  ;;  %v13068_v33 = vpop.eup %13067  ;;  %v9695_v55 = vld [vmem:[%s15172_s20 + $0x28] sm:$0xff] }
 0xebf   :  { %v9521_v21 = vmul.f32 %v13068_v33, %v14146_v6  ;;  %v13070_v41 = vpop.eup %13069  ;;  %v12635_v49 = vpack.c.bf16 %v9695_v55, %v9694_v27  ;;  %v9696_v6 = vld [vmem:[%s15172_s20 + $0x30] sm:$0xff] }
 0xec0   :  { %v12638_v24 = vpack.c.bf16 %v9697_v8, %v9696_v6 }
 0xec1   :  { %v9522_v63 = vadd.f32 %v9521_v21, %v9520_v38  ;;  %12636 = vmatpush3.bf16.msra.mxu0 %v12635_v49 }
 0xec2   :  { %12637 = vmatprep.subr.bf16.mxu0 %v15253_v19 }
 0xec3   :  { %13071 = vtanh.f32 %v9522_v63 }
 0xec5   :  { %12639 = vmatpush3.bf16.msra.mxu0 %v12638_v24 }
 0xecd   :  { %v13072_v7 = vpop.eup %13071 }
 0xece   :  { %v9524_v58 = vmul.f32 %v13072_v7, %v13070_v41 }
 0xed0   :  { %v9525_v52 = vmax.f32 %v9524_v58, 0.0 }
 0xed2   :  { %11947 = vmatmul.mubr.msk.f32.vlgmr.msra.gmra.mrb[98].mxu1 %vm1391_vm7, %v9525_v52 }
 0xfa5   :  { %v9677_v59 = vpop.f32.mrb[98].mxu1 }
 0xfa6   :  { %v9678_v46 = vadd.f32 %v9677_v59, %v9604_v40  ;;  %v11948_v28 = vpop.f32.mrb[99].mxu1 }
 0xfa8   :  { %v9688_v4 = vadd.f32 %v10041_v35, %v9678_v46 }
 0xfaa   :  { %v9689_v19 = vmax.f32 %v9688_v4, 0.0 }
 0xfac   :  { %11966 = vmatmul.mubr.msk.f32.vlgmr.msra.gmra.mrb[92].mxu0 %vm9705_vm8, %v9689_v19 }
0x107f   :  { %v9775_v3 = vpop.f32.mrb[92].mxu0 }
0x1080   :  { %v9776_v43 = vadd.f32 %v10042_v56, %v9775_v3  ;;  %v11967_v62 = vpop.f32.mrb[93].mxu0 }
0x1082   :  { %9780 = vst.msk [vmem:[%s15306_s18] sm:$0xff] %vm9779_vm9, %v9776_v43 }
0x1083   :  { %9785 = vsyncpa [#allocation3], 1 }
0x1084   :  { %9786 = vsyncpa [#allocation5], 1 }
0x1085   :  { %9787 = vsyncpa [#allocation8], 1 }
0x1086   :  { %9788 = vsyncpa [#allocation11], 1 }
0x1087   :  { %9789 = vsyncpa [#allocation14], 1 }
0x1088   :  { %9790 = vsyncpa [#allocation17], 1 }

</bundles_post_ra>
